<compile_context>
chip_gen: v6e
topology: v6e:2x2x1
jax: 0.10.0
libtpu: 0.0.40
codegen_flags: <defaults>
</compile_context>

<pallas_src>
import jax
import jax.numpy as jnp
import numpy as np
from jax.experimental import pallas as pl
from jax.experimental.pallas import tpu as pltpu

# ---------------------------------------------------------------------------
# Static module configuration (equivalent of __init__).
# ---------------------------------------------------------------------------
# (mul, l, parity)  ->  "8x0e + 4x1o + 2x2e"
IRREPS = ((8, 0, 1), (4, 1, -1), (2, 2, 1))
EPS = 1e-5
AFFINE = True
NORMALIZATION = "component"   # 'norm' or 'component'

NUM_SCALAR = sum(mul for (mul, l, p) in IRREPS if l == 0 and p == 1)
NUM_FEATURES = sum(mul for (mul, _, _) in IRREPS)
TOTAL_DIM = sum(mul * (2 * l + 1) for (mul, l, _) in IRREPS)


def _round_up(a, b):
    return (a + b - 1) // b * b


# ---------------------------------------------------------------------------
# Pallas kernel: one (TN, D) tile of nodes, whole feature dim per tile.
# ---------------------------------------------------------------------------
def eqln_kernel(x_ref, w_ref, b_ref, o_ref):
    x = x_ref[...].astype(jnp.float32)          # (TN, D)
    w = w_ref[...]                              # (1, D)  expanded weight, loaded once
    b = b_ref[...]                              # (1, D)  zero-padded bias, loaded once

    out_parts = []
    ix = 0
    for mul, l, p in IRREPS:
        d = 2 * l + 1
        seg = x[:, ix:ix + mul * d]             # (TN, mul*d)  in-register slice
        wseg = w[:, ix:ix + mul * d]            # (1, mul*d)

        if l == 0 and p == 1:
            # Scalar irreps: standard layer norm over the `mul` channels.
            bseg = b[:, ix:ix + mul * d]
            mean = jnp.mean(seg, axis=-1, keepdims=True)                  # (TN, 1)
            var = jnp.mean((seg - mean) ** 2, axis=-1, keepdims=True)     # (TN, 1)
            inv = jax.lax.rsqrt(var + EPS)
            out_parts.append((seg - mean) * inv * wseg + bseg)
        else:
            # Non-scalar irreps: RMS-style norm over (mul, d), no mean removal.
            # 'component': mean over d then mean over mul == mean over segment.
            # 'norm'     : sum over d then mean over mul == sum over segment / mul.
            if NORMALIZATION == "component":
                nrm = jnp.mean(seg * seg, axis=-1, keepdims=True)         # (TN, 1)
            else:  # 'norm'
                nrm = jnp.sum(seg * seg, axis=-1, keepdims=True) * (1.0 / mul)
            inv = jax.lax.rsqrt(nrm + EPS)
            out_parts.append(seg * inv * wseg)   # bias is zero for non-scalars

        ix += mul * d
    assert ix == TOTAL_DIM

    # Single fused full-width store for the whole block.
    out = jnp.concatenate(out_parts, axis=-1)    # (TN, D)
    o_ref[...] = out.astype(o_ref.dtype)


# ---------------------------------------------------------------------------
# Wrapper
# ---------------------------------------------------------------------------
def _expanded_params(affine_weight, affine_bias):
    """Expand per-channel affine params to per-feature (1, TOTAL_DIM) vectors."""
    if not AFFINE:
        return (jnp.ones((1, TOTAL_DIM), jnp.float32),
                jnp.zeros((1, TOTAL_DIM), jnp.float32))
    w_parts, b_parts = [], []
    iw = ib = 0
    for mul, l, p in IRREPS:
        d = 2 * l + 1
        w_parts.append(jnp.repeat(affine_weight[iw:iw + mul].astype(jnp.float32), d))
        iw += mul
        if l == 0 and p == 1:
            b_parts.append(affine_bias[ib:ib + mul].astype(jnp.float32))
            ib += mul
        else:
            b_parts.append(jnp.zeros(mul * d, jnp.float32))
    w_exp = jnp.concatenate(w_parts).reshape(1, TOTAL_DIM)
    b_exp = jnp.concatenate(b_parts).reshape(1, TOTAL_DIM)
    return w_exp, b_exp


def equivariant_layer_norm(x, affine_weight, affine_bias, *, tn=4096):
    N, D = x.shape
    assert D == TOTAL_DIM

    # Tile choice: large tiles amortize per-grid-step overhead; keep at least
    # two grid steps (when N allows) so the "parallel" axis can use both v7x
    # TensorCores.  Rows rounded to a multiple of 16 (covers f32 and bf16 tiling).
    if N >= 32:
        cap = _round_up(pl.cdiv(N, 2), 16)
    else:
        cap = _round_up(max(N, 1), 16)
    tn_eff = max(16, min(_round_up(tn, 16), cap))

    n_pad = _round_up(N, tn_eff)
    x_p = jnp.pad(x, ((0, n_pad - N), (0, 0))) if n_pad != N else x

    w_exp, b_exp = _expanded_params(affine_weight, affine_bias)

    out = pl.pallas_call(
        eqln_kernel,
        out_shape=jax.ShapeDtypeStruct((n_pad, D), x.dtype),
        grid_spec=pltpu.PrefetchScalarGridSpec(
            num_scalar_prefetch=0,
            grid=(n_pad // tn_eff,),
            in_specs=[
                pl.BlockSpec((tn_eff, D), lambda i: (i, 0)),
                pl.BlockSpec((1, TOTAL_DIM), lambda i: (0, 0)),
                pl.BlockSpec((1, TOTAL_DIM), lambda i: (0, 0)),
            ],
            out_specs=pl.BlockSpec((tn_eff, D), lambda i: (i, 0)),
        ),
        compiler_params=pltpu.CompilerParams(
            dimension_semantics=("parallel",),
            vmem_limit_bytes=64 * 1024 * 1024,
        ),
    )(x_p, w_exp, b_exp)

    return out[:N] if n_pad != N else out


# ---------------------------------------------------------------------------
# Pure-JAX reference (mirrors the PyTorch forward) for verification.
# ---------------------------------------------------------------------------
def reference(x, affine_weight, affine_bias):
    fields = []
    ix = iw = ib = 0
    for mul, l, p in IRREPS:
        d = 2 * l + 1
        field = x[:, ix:ix + mul * d]
        ix += mul * d
        if l == 0 and p == 1:
            w = affine_weight[iw:iw + mul]
            b = affine_bias[ib:ib + mul]
            iw += mul
            ib += mul
            mean = jnp.mean(field, axis=-1, keepdims=True)
            var = jnp.mean((field - mean) ** 2, axis=-1, keepdims=True)
            field = (field - mean) / jnp.sqrt(var + EPS) * w + b
            fields.append(field.reshape(-1, mul * d))
            continue
        field = field.reshape(-1, mul, d)
        if NORMALIZATION == "norm":
            field_norm = jnp.sum(field ** 2, axis=-1)
        else:
            field_norm = jnp.mean(field ** 2, axis=-1)
        field_norm = jnp.mean(field_norm, axis=1, keepdims=True)
        field_norm = 1.0 / jnp.sqrt(field_norm + EPS)
        if AFFINE:
            w = affine_weight[None, iw:iw + mul]
            iw += mul
            field_norm = field_norm * w
        field = field * field_norm[..., None]
        fields.append(field.reshape(-1, mul * d))
    return jnp.concatenate(fields, axis=-1)


if __name__ == "__main__":
    key = jax.random.PRNGKey(0)
    N = 1024
    x = jax.random.normal(key, (N, TOTAL_DIM), dtype=jnp.float32)

    # Deterministic parameter init (module init is ones/zeros; perturb slightly
    # so the affine path is actually exercised).
    affine_weight = 1.0 + 0.05 * jnp.arange(NUM_FEATURES, dtype=jnp.float32)
    affine_bias = 0.01 * jnp.arange(NUM_SCALAR, dtype=jnp.float32)

    out = equivariant_layer_norm(x, affine_weight, affine_bias)
    out = jax.block_until_ready(out)

    ref = jax.block_until_ready(reference(x, affine_weight, affine_bias))
    assert out.shape == (N, TOTAL_DIM)
    assert np.allclose(np.asarray(out), np.asarray(ref), atol=1e-5, rtol=1e-5)

    print("KERNEL_OK")
</pallas_src>

<mosaic_0001>
module attributes {stable_mosaic.version = 11 : i64} {
  func.func @eqln_kernel(%arg0: i32, %arg1: memref<512x30xf32, #tpu.memory_space<vmem>>, %arg2: memref<1x30xf32, #tpu.memory_space<vmem>>, %arg3: memref<1x30xf32, #tpu.memory_space<vmem>>, %arg4: memref<512x30xf32, #tpu.memory_space<vmem>>) attributes {dimension_semantics = [#tpu.dimension_semantics<parallel>], iteration_bounds = array<i64: 2>, scalar_prefetch = 0 : i64, scratch_operands = 0 : i64, tpu.core_type = #tpu.core_type<tc>, window_params = [{transform_indices = @transform_0, window_bounds = array<i64: 512, 30>}, {pipeline_mode = #tpu.pipeline_mode<synchronous>, transform_indices = @transform_1, window_bounds = array<i64: 1, 30>}, {pipeline_mode = #tpu.pipeline_mode<synchronous>, transform_indices = @transform_2, window_bounds = array<i64: 1, 30>}, {transform_indices = @transform_3, window_bounds = array<i64: 512, 30>}]} {
    %c0 = arith.constant 0 : index
    %c0_0 = arith.constant 0 : index
    %0 = vector.load %arg1[%c0, %c0_0] : memref<512x30xf32, #tpu.memory_space<vmem>>, vector<512x30xf32>
    %c0_1 = arith.constant 0 : index
    %c0_2 = arith.constant 0 : index
    %1 = vector.load %arg2[%c0_1, %c0_2] : memref<1x30xf32, #tpu.memory_space<vmem>>, vector<1x30xf32>
    %c0_3 = arith.constant 0 : index
    %c0_4 = arith.constant 0 : index
    %2 = vector.load %arg3[%c0_3, %c0_4] : memref<1x30xf32, #tpu.memory_space<vmem>>, vector<1x30xf32>
    %3 = vector.extract_strided_slice %0 {offsets = [0, 0], sizes = [512, 8], strides = [1, 1]} : vector<512x30xf32> to vector<512x8xf32>
    %4 = vector.extract_strided_slice %1 {offsets = [0, 0], sizes = [1, 8], strides = [1, 1]} : vector<1x30xf32> to vector<1x8xf32>
    %5 = vector.extract_strided_slice %2 {offsets = [0, 0], sizes = [1, 8], strides = [1, 1]} : vector<1x30xf32> to vector<1x8xf32>
    %cst = arith.constant dense<0.000000e+00> : vector<512xf32>
    %6 = vector.multi_reduction <add>, %3, %cst [1] : vector<512x8xf32> to vector<512xf32>
    %7 = vector.shape_cast %6 : vector<512xf32> to vector<512x1xf32>
    %cst_5 = arith.constant 8.000000e+00 : f32
    %8 = vector.broadcast %cst_5 : f32 to vector<512x1xf32>
    %9 = arith.divf %7, %8 : vector<512x1xf32>
    %10 = vector.broadcast %9 : vector<512x1xf32> to vector<512x8xf32>
    %11 = arith.subf %3, %10 : vector<512x8xf32>
    %12 = arith.mulf %11, %11 : vector<512x8xf32>
    %cst_6 = arith.constant dense<0.000000e+00> : vector<512xf32>
    %13 = vector.multi_reduction <add>, %12, %cst_6 [1] : vector<512x8xf32> to vector<512xf32>
    %14 = vector.shape_cast %13 : vector<512xf32> to vector<512x1xf32>
    %cst_7 = arith.constant 8.000000e+00 : f32
    %15 = vector.broadcast %cst_7 : f32 to vector<512x1xf32>
    %16 = arith.divf %14, %15 : vector<512x1xf32>
    %cst_8 = arith.constant 9.99999974E-6 : f32
    %17 = vector.broadcast %cst_8 : f32 to vector<512x1xf32>
    %18 = arith.addf %16, %17 : vector<512x1xf32>
    %19 = math.rsqrt %18 : vector<512x1xf32>
    %20 = vector.broadcast %9 : vector<512x1xf32> to vector<512x8xf32>
    %21 = arith.subf %3, %20 : vector<512x8xf32>
    %22 = vector.broadcast %19 : vector<512x1xf32> to vector<512x8xf32>
    %23 = arith.mulf %21, %22 : vector<512x8xf32>
    %24 = vector.broadcast %4 : vector<1x8xf32> to vector<512x8xf32>
    %25 = arith.mulf %23, %24 : vector<512x8xf32>
    %26 = vector.broadcast %5 : vector<1x8xf32> to vector<512x8xf32>
    %27 = arith.addf %25, %26 : vector<512x8xf32>
    %28 = vector.extract_strided_slice %0 {offsets = [0, 8], sizes = [512, 12], strides = [1, 1]} : vector<512x30xf32> to vector<512x12xf32>
    %29 = vector.extract_strided_slice %1 {offsets = [0, 8], sizes = [1, 12], strides = [1, 1]} : vector<1x30xf32> to vector<1x12xf32>
    %30 = arith.mulf %28, %28 : vector<512x12xf32>
    %cst_9 = arith.constant dense<0.000000e+00> : vector<512xf32>
    %31 = vector.multi_reduction <add>, %30, %cst_9 [1] : vector<512x12xf32> to vector<512xf32>
    %32 = vector.shape_cast %31 : vector<512xf32> to vector<512x1xf32>
    %cst_10 = arith.constant 1.200000e+01 : f32
    %33 = vector.broadcast %cst_10 : f32 to vector<512x1xf32>
    %34 = arith.divf %32, %33 : vector<512x1xf32>
    %cst_11 = arith.constant 9.99999974E-6 : f32
    %35 = vector.broadcast %cst_11 : f32 to vector<512x1xf32>
    %36 = arith.addf %34, %35 : vector<512x1xf32>
    %37 = math.rsqrt %36 : vector<512x1xf32>
    %38 = vector.broadcast %37 : vector<512x1xf32> to vector<512x12xf32>
    %39 = arith.mulf %28, %38 : vector<512x12xf32>
    %40 = vector.broadcast %29 : vector<1x12xf32> to vector<512x12xf32>
    %41 = arith.mulf %39, %40 : vector<512x12xf32>
    %42 = vector.extract_strided_slice %0 {offsets = [0, 20], sizes = [512, 10], strides = [1, 1]} : vector<512x30xf32> to vector<512x10xf32>
    %43 = vector.extract_strided_slice %1 {offsets = [0, 20], sizes = [1, 10], strides = [1, 1]} : vector<1x30xf32> to vector<1x10xf32>
    %44 = arith.mulf %42, %42 : vector<512x10xf32>
    %cst_12 = arith.constant dense<0.000000e+00> : vector<512xf32>
    %45 = vector.multi_reduction <add>, %44, %cst_12 [1] : vector<512x10xf32> to vector<512xf32>
    %46 = vector.shape_cast %45 : vector<512xf32> to vector<512x1xf32>
    %cst_13 = arith.constant 1.000000e+01 : f32
    %47 = vector.broadcast %cst_13 : f32 to vector<512x1xf32>
    %48 = arith.divf %46, %47 : vector<512x1xf32>
    %cst_14 = arith.constant 9.99999974E-6 : f32
    %49 = vector.broadcast %cst_14 : f32 to vector<512x1xf32>
    %50 = arith.addf %48, %49 : vector<512x1xf32>
    %51 = math.rsqrt %50 : vector<512x1xf32>
    %52 = vector.broadcast %51 : vector<512x1xf32> to vector<512x10xf32>
    %53 = arith.mulf %42, %52 : vector<512x10xf32>
    %54 = vector.broadcast %43 : vector<1x10xf32> to vector<512x10xf32>
    %55 = arith.mulf %53, %54 : vector<512x10xf32>
    %56 = tpu.concatenate %27, %41, %55 in 1 : vector<512x8xf32>, vector<512x12xf32>, vector<512x10xf32> -> vector<512x30xf32>
    %c0_15 = arith.constant 0 : index
    %c0_16 = arith.constant 0 : index
    %57 = vector.load %arg4[%c0_15, %c0_16] : memref<512x30xf32, #tpu.memory_space<vmem>>, vector<512x30xf32>
    tpu.vector_store %arg4[%c0_15, %c0_16], %56 {strides = array<i32>} : memref<512x30xf32, #tpu.memory_space<vmem>>, vector<512x30xf32>,
    return
  }
  func.func @transform_0(%arg0: i32) -> (i32, i32) {
    %c0_i32 = arith.constant 0 : i32
    %c0_i32_0 = arith.constant 0 : i32
    return %arg0, %c0_i32 : i32, i32
  }
  func.func @transform_1(%arg0: i32) -> (i32, i32) {
    %c0_i32 = arith.constant 0 : i32
    %c0_i32_0 = arith.constant 0 : i32
    %c0_i32_1 = arith.constant 0 : i32
    return %c0_i32, %c0_i32_0 : i32, i32
  }
  func.func @transform_2(%arg0: i32) -> (i32, i32) {
    %c0_i32 = arith.constant 0 : i32
    %c0_i32_0 = arith.constant 0 : i32
    %c0_i32_1 = arith.constant 0 : i32
    return %c0_i32, %c0_i32_0 : i32, i32
  }
  func.func @transform_3(%arg0: i32) -> (i32, i32) {
    %c0_i32 = arith.constant 0 : i32
    %c0_i32_0 = arith.constant 0 : i32
    return %arg0, %c0_i32 : i32, i32
  }
}

</mosaic_0001>

<bundles_post_ra>
// kernel: tpu_custom_call.1
= control target key start
LH: loop header
LB: loop body
LE: loop exit
PB: predicated region body
PF: predicated region fallthrough
CT: control target
= control target key end

     0   :  { %s3574_s12 = smov 0   ;;  %s6710_s0 = inlined_call_operand.vmem [shape: f32[1024,30], index: 0, kind: input, shape index: {}]   ;;  %s6711_s1 = inlined_call_operand.vmem [shape: f32[1,30], index: 1, kind: input, shape index: {}]   ;;  %s6712_s2 = inlined_call_operand.vmem [shape: f32[1,30], index: 2, kind: input, shape index: {}]   ;;  %s6713_s3 = inlined_call_operand.vmem [shape: f32[1024,30], index: 3, kind: output, shape index: {}]  }
   0x1 LB: > { %s3004_s13 = sadd.s32 4294967295, %s3550_s12   ;;  %p3008_p0 = scmp.ge.s32.totalorder %s3550_s12, 1  ;;  %s3550_s12 = sphi %s3574_s12, %s13_s12  }
   0x2   : > { %p138_p1 = scmp.lt.s32.totalorder %s3550_s12, 3 }
   0x4   : > { %p139_p2 = pnand %p3008_p0, %p138_p1 }
   0x6   : > { %142 = sbr.rel (%p139_p2) target bundleno = 1056 (0x420), region = 32 }
   0xb   : > { %s3009_s14 = sshll.u32 %s3004_s13, 6  ;;  %vm240_vm0 = vcmask 64512   ;;  %s3552_s19 = smov 120   ;;  %vm1534_vm1 = vcmask 97280   ;;  %vm2240_vm2 = vcmask 80896   ;;  %vm2818_vm3 = vcmask 162816  }
   0xc   : > { %p163_p3 = scmp.lt.s32.totalorder %s3009_s14, 127  ;;  %s3553_s20 = smov 108   ;;  %vm2883_vm4 = vcmask 244736  }
   0xe   : > { %s7455_s14 = smov (!%p163_p3, %s3009_s14), 127 }
   0xf   : > { %s3010_s15 = sshll.u32 %s7455_s14, 3 }
  0x10   : > { %s3590_s18 = scalar_lea.vmem %s6710_s0, %s3010_s15  ;;  %s6040_s4 = scalar_lea.vmem %s6713_s3, %s3010_s15 }
  0x11   : > { %v3593_v0 = vld [vmem:[%s3590_s18] sm:$0xff]  ;;  %v3596_v1 = vld [vmem:[%s3590_s18 + $0x10] sm:$0xff]  ;;  %v3599_v2 = vld [vmem:[%s3590_s18 + $0x8] sm:$0xff] }
  0x12   : > { %v241_v3 = vsel %vm240_vm0, %v3593_v0, 0.0  ;;  %v247_v4 = vsel %vm240_vm0, %v3596_v1, 0.0  ;;  %v3606_v5 = vld [vmem:[%s3590_s18 + $0x18] sm:$0xff]  ;;  %v244_v6 = vsel %vm240_vm0, %v3599_v2, 0.0  ;;  %v3613_v8 = vld [vmem:[%s3590_s18 + $0x20] sm:$0xff]  ;;  %v3616_v9 = vld [vmem:[%s3590_s18 + $0x28] sm:$0xff] }
  0x13   : > { %242 = vadd.xlane.f32.xlu0 %v241_v3  ;;  %248 = vadd.xlane.f32.xlu1 %v247_v4  ;;  %v250_v7 = vsel %vm240_vm0, %v3606_v5, 0.0  ;;  %v253_v10 = vsel %vm240_vm0, %v3613_v8, 0.0  ;;  %v256_v11 = vsel %vm240_vm0, %v3616_v9, 0.0  ;;  %v3623_v12 = vld [vmem:[%s3590_s18 + $0x30] sm:$0xff]  ;;  %v3626_v13 = vld [vmem:[%s3590_s18 + $0x38] sm:$0xff]  ;;  %v3633_v16 = vld [vmem:[%s3590_s18 + $0x40] sm:$0xff] }
  0x14   : > { %v259_v14 = vsel %vm240_vm0, %v3623_v12, 0.0  ;;  %v262_v15 = vsel %vm240_vm0, %v3626_v13, 0.0  ;;  %v3636_v17 = vld [vmem:[%s3590_s18 + $0x48] sm:$0xff]  ;;  %v265_v18 = vsel %vm240_vm0, %v3633_v16, 0.0  ;;  %v3643_v20 = vld [vmem:[%s3590_s18 + $0x50] sm:$0xff]  ;;  %v3646_v21 = vld [vmem:[%s3590_s18 + $0x58] sm:$0xff] }
  0x15   : > { %v268_v19 = vsel %vm240_vm0, %v3636_v17, 0.0  ;;  %v271_v22 = vsel %vm240_vm0, %v3643_v20, 0.0  ;;  %v274_v23 = vsel %vm240_vm0, %v3646_v21, 0.0  ;;  %v3653_v24 = vld [vmem:[%s3590_s18 + $0x60] sm:$0xff]  ;;  %v3656_v25 = vld [vmem:[%s3590_s18 + $0x68] sm:$0xff]  ;;  %v3663_v28 = vld [vmem:[%s3590_s18 + $0x70] sm:$0xff] }
  0x16   : > { %v277_v26 = vsel %vm240_vm0, %v3653_v24, 0.0  ;;  %v280_v27 = vsel %vm240_vm0, %v3656_v25, 0.0  ;;  %v3666_v29 = vld [vmem:[%s3590_s18 + $0x78] sm:$0xff]  ;;  %v283_v30 = vsel %vm240_vm0, %v3663_v28, 0.0  ;;  %v3673_v32 = vld [vmem:[%s3590_s18 + $0x80] sm:$0xff]  ;;  %v3676_v33 = vld [vmem:[%s3590_s18 + $0x88] sm:$0xff] }
  0x17   : > { %245 = vadd.xlane.f32.xlu0 %v244_v6  ;;  %251 = vadd.xlane.f32.xlu1 %v250_v7  ;;  %v286_v31 = vsel %vm240_vm0, %v3666_v29, 0.0  ;;  %v289_v34 = vsel %vm240_vm0, %v3673_v32, 0.0  ;;  %v292_v35 = vsel %vm240_vm0, %v3676_v33, 0.0  ;;  %v3683_v36 = vld [vmem:[%s3590_s18 + $0x90] sm:$0xff]  ;;  %v3686_v37 = vld [vmem:[%s3590_s18 + $0x98] sm:$0xff]  ;;  %v3693_v40 = vld [vmem:[%s3590_s18 + $0xa0] sm:$0xff] }
  0x18   : > { %v295_v38 = vsel %vm240_vm0, %v3683_v36, 0.0  ;;  %v298_v39 = vsel %vm240_vm0, %v3686_v37, 0.0  ;;  %v3696_v41 = vld [vmem:[%s3590_s18 + $0xa8] sm:$0xff]  ;;  %v301_v42 = vsel %vm240_vm0, %v3693_v40, 0.0  ;;  %v3703_v44 = vld [vmem:[%s3590_s18 + $0xb0] sm:$0xff]  ;;  %v3706_v45 = vld [vmem:[%s3590_s18 + $0xb8] sm:$0xff] }
  0x19   : > { %v304_v43 = vsel %vm240_vm0, %v3696_v41, 0.0  ;;  %v307_v46 = vsel %vm240_vm0, %v3703_v44, 0.0  ;;  %v310_v47 = vsel %vm240_vm0, %v3706_v45, 0.0  ;;  %v3713_v48 = vld [vmem:[%s3590_s18 + $0xc0] sm:$0xff]  ;;  %v3716_v49 = vld [vmem:[%s3590_s18 + $0xc8] sm:$0xff]  ;;  %v3723_v52 = vld [vmem:[%s3590_s18 + $0xd0] sm:$0xff] }
  0x1a   : > { %v313_v50 = vsel %vm240_vm0, %v3713_v48, 0.0  ;;  %v316_v51 = vsel %vm240_vm0, %v3716_v49, 0.0  ;;  %v3726_v53 = vld [vmem:[%s3590_s18 + $0xd8] sm:$0xff]  ;;  %v319_v54 = vsel %vm240_vm0, %v3723_v52, 0.0  ;;  %v3733_v56 = vld [vmem:[%s3590_s18 + $0xe0] sm:$0xff]  ;;  %v3736_v57 = vld [vmem:[%s3590_s18 + $0xe8] sm:$0xff] }
  0x1b   : > { %254 = vadd.xlane.f32.xlu0 %v253_v10  ;;  %257 = vadd.xlane.f32.xlu1 %v256_v11  ;;  %v322_v55 = vsel %vm240_vm0, %v3726_v53, 0.0  ;;  %v325_v58 = vsel %vm240_vm0, %v3733_v56, 0.0  ;;  %v328_v59 = vsel %vm240_vm0, %v3736_v57, 0.0  ;;  %v3743_v60 = vld [vmem:[%s3590_s18 + $0xf0] sm:$0xff]  ;;  %v3746_v61 = vld [vmem:[%s3590_s18 + $0xf8] sm:$0xff]  ;;  %v3753_v3 = vld [vmem:[%s3590_s18 + $0x100] sm:$0xff] }
  0x1c   : > { %v331_v62 = vsel %vm240_vm0, %v3743_v60, 0.0  ;;  %v334_v63 = vsel %vm240_vm0, %v3746_v61, 0.0  ;;  %v3756_v4 = vld [vmem:[%s3590_s18 + $0x108] sm:$0xff]  ;;  %v337_v6 = vsel %vm240_vm0, %v3753_v3, 0.0  ;;  %v3763_v10 = vld [vmem:[%s3590_s18 + $0x110] sm:$0xff]  ;;  %v3766_v11 = vld [vmem:[%s3590_s18 + $0x118] sm:$0xff] }
  0x1d   : > { %v340_v7 = vsel %vm240_vm0, %v3756_v4, 0.0 }
  0x1f   : > { %260 = vadd.xlane.f32.xlu0 %v259_v14  ;;  %263 = vadd.xlane.f32.xlu1 %v262_v15  ;;  %v343_v14 = vsel %vm240_vm0, %v3763_v10, 0.0  ;;  %v346_v15 = vsel %vm240_vm0, %v3766_v11, 0.0 }
  0x23   : > { %266 = vadd.xlane.f32.xlu0 %v265_v18  ;;  %269 = vadd.xlane.f32.xlu1 %v268_v19  ;;  %v3773_v18 = vld [vmem:[%s3590_s18 + $0x120] sm:$0xff]  ;;  %v3776_v19 = vld [vmem:[%s3590_s18 + $0x128] sm:$0xff] }
  0x27   : > { %272 = vadd.xlane.f32.xlu0 %v271_v22  ;;  %275 = vadd.xlane.f32.xlu1 %v274_v23  ;;  %v349_v22 = vsel %vm240_vm0, %v3773_v18, 0.0  ;;  %v352_v23 = vsel %vm240_vm0, %v3776_v19, 0.0 }
  0x2b   : > { %278 = vadd.xlane.f32.xlu0 %v277_v26  ;;  %281 = vadd.xlane.f32.xlu1 %v280_v27  ;;  %v3783_v26 = vld [vmem:[%s3590_s18 + $0x130] sm:$0xff]  ;;  %v3786_v27 = vld [vmem:[%s3590_s18 + $0x138] sm:$0xff] }
  0x2f   : > { %284 = vadd.xlane.f32.xlu0 %v283_v30  ;;  %287 = vadd.xlane.f32.xlu1 %v286_v31  ;;  %v355_v30 = vsel %vm240_vm0, %v3783_v26, 0.0  ;;  %v358_v31 = vsel %vm240_vm0, %v3786_v27, 0.0 }
  0x33   : > { %290 = vadd.xlane.f32.xlu0 %v289_v34  ;;  %293 = vadd.xlane.f32.xlu1 %v292_v35  ;;  %v3793_v34 = vld [vmem:[%s3590_s18 + $0x140] sm:$0xff]  ;;  %v3796_v35 = vld [vmem:[%s3590_s18 + $0x148] sm:$0xff] }
  0x37   : > { %296 = vadd.xlane.f32.xlu0 %v295_v38  ;;  %299 = vadd.xlane.f32.xlu1 %v298_v39  ;;  %v361_v38 = vsel %vm240_vm0, %v3793_v34, 0.0  ;;  %v364_v39 = vsel %vm240_vm0, %v3796_v35, 0.0 }
  0x3b   : > { %302 = vadd.xlane.f32.xlu0 %v301_v42  ;;  %305 = vadd.xlane.f32.xlu1 %v304_v43  ;;  %v3803_v42 = vld [vmem:[%s3590_s18 + $0x150] sm:$0xff]  ;;  %v3806_v43 = vld [vmem:[%s3590_s18 + $0x158] sm:$0xff] }
  0x3f   : > { %308 = vadd.xlane.f32.xlu0 %v307_v46  ;;  %311 = vadd.xlane.f32.xlu1 %v310_v47  ;;  %v367_v46 = vsel %vm240_vm0, %v3803_v42, 0.0  ;;  %v370_v47 = vsel %vm240_vm0, %v3806_v43, 0.0 }
  0x43   : > { %314 = vadd.xlane.f32.xlu0 %v313_v50  ;;  %317 = vadd.xlane.f32.xlu1 %v316_v51  ;;  %v3813_v50 = vld [vmem:[%s3590_s18 + $0x160] sm:$0xff]  ;;  %v3816_v51 = vld [vmem:[%s3590_s18 + $0x168] sm:$0xff] }
  0x47   : > { %320 = vadd.xlane.f32.xlu0 %v319_v54  ;;  %323 = vadd.xlane.f32.xlu1 %v322_v55  ;;  %v373_v54 = vsel %vm240_vm0, %v3813_v50, 0.0  ;;  %v376_v55 = vsel %vm240_vm0, %v3816_v51, 0.0 }
  0x4b   : > { %326 = vadd.xlane.f32.xlu0 %v325_v58  ;;  %329 = vadd.xlane.f32.xlu1 %v328_v59  ;;  %v3823_v58 = vld [vmem:[%s3590_s18 + $0x170] sm:$0xff]  ;;  %v3826_v59 = vld [vmem:[%s3590_s18 + $0x178] sm:$0xff] }
  0x4f   : > { %332 = vadd.xlane.f32.xlu0 %v331_v62  ;;  %335 = vadd.xlane.f32.xlu1 %v334_v63  ;;  %v379_v62 = vsel %vm240_vm0, %v3823_v58, 0.0  ;;  %v382_v63 = vsel %vm240_vm0, %v3826_v59, 0.0 }
  0x53   : > { %338 = vadd.xlane.f32.xlu0 %v337_v6  ;;  %341 = vadd.xlane.f32.xlu1 %v340_v7  ;;  %v3833_v6 = vld [vmem:[%s3590_s18 + $0x180] sm:$0xff]  ;;  %v3836_v7 = vld [vmem:[%s3590_s18 + $0x188] sm:$0xff] }
  0x57   : > { %344 = vadd.xlane.f32.xlu0 %v343_v14  ;;  %347 = vadd.xlane.f32.xlu1 %v346_v15  ;;  %v385_v14 = vsel %vm240_vm0, %v3833_v6, 0.0  ;;  %v388_v15 = vsel %vm240_vm0, %v3836_v7, 0.0 }
  0x5b   : > { %350 = vadd.xlane.f32.xlu0 %v349_v22  ;;  %353 = vadd.xlane.f32.xlu1 %v352_v23  ;;  %v3843_v22 = vld [vmem:[%s3590_s18 + $0x190] sm:$0xff]  ;;  %v3846_v23 = vld [vmem:[%s3590_s18 + $0x198] sm:$0xff] }
  0x5c   : > { %6840 = vst [vmem:[#allocation2_spill] sm:$0xff] %v3843_v22  ;;  %6841 = vst [vmem:[#allocation3_spill] sm:$0xff] %v3846_v23 }
  0x5f   : > { %356 = vadd.xlane.f32.xlu0 %v355_v30  ;;  %359 = vadd.xlane.f32.xlu1 %v358_v31  ;;  %v391_v30 = vsel %vm240_vm0, %v3843_v22, 0.0  ;;  %v394_v31 = vsel %vm240_vm0, %v3846_v23, 0.0 }
  0x63   : > { %362 = vadd.xlane.f32.xlu0 %v361_v38  ;;  %365 = vadd.xlane.f32.xlu1 %v364_v39  ;;  %v3853_v38 = vld [vmem:[%s3590_s18 + $0x1a0] sm:$0xff]  ;;  %v3856_v39 = vld [vmem:[%s3590_s18 + $0x1a8] sm:$0xff] }
  0x64   : > { %6842 = vst [vmem:[#allocation4_spill] sm:$0xff] %v3853_v38  ;;  %6843 = vst [vmem:[#allocation5_spill] sm:$0xff] %v3856_v39 }
  0x67   : > { %368 = vadd.xlane.f32.xlu0 %v367_v46  ;;  %371 = vadd.xlane.f32.xlu1 %v370_v47  ;;  %v397_v46 = vsel %vm240_vm0, %v3853_v38, 0.0  ;;  %v400_v47 = vsel %vm240_vm0, %v3856_v39, 0.0 }
  0x6b   : > { %374 = vadd.xlane.f32.xlu0 %v373_v54  ;;  %377 = vadd.xlane.f32.xlu1 %v376_v55  ;;  %v3863_v54 = vld [vmem:[%s3590_s18 + $0x1b0] sm:$0xff]  ;;  %v3866_v55 = vld [vmem:[%s3590_s18 + $0x1b8] sm:$0xff] }
  0x6c   : > { %6844 = vst [vmem:[#allocation6_spill] sm:$0xff] %v3863_v54  ;;  %6845 = vst [vmem:[#allocation7_spill] sm:$0xff] %v3866_v55 }
  0x6f   : > { %380 = vadd.xlane.f32.xlu0 %v379_v62  ;;  %383 = vadd.xlane.f32.xlu1 %v382_v63  ;;  %v403_v62 = vsel %vm240_vm0, %v3863_v54, 0.0  ;;  %v406_v63 = vsel %vm240_vm0, %v3866_v55, 0.0  ;;  %v3896_v54 = vld [vmem:[%s3590_s18 + $0x1e8] sm:$0xff] }
  0x70   : > { %6851 = vst [vmem:[#allocation13_spill] sm:$0xff] %v3896_v54 }
  0x73   : > { %386 = vadd.xlane.f32.xlu0 %v385_v14  ;;  %389 = vadd.xlane.f32.xlu1 %v388_v15  ;;  %v3873_v14 = vld [vmem:[%s3590_s18 + $0x1c0] sm:$0xff]  ;;  %v3876_v15 = vld [vmem:[%s3590_s18 + $0x1c8] sm:$0xff] }
  0x74   : > { %6846 = vst [vmem:[#allocation8_spill] sm:$0xff] %v3873_v14  ;;  %6847 = vst [vmem:[#allocation9_spill] sm:$0xff] %v3876_v15 }
  0x77   : > { %392 = vadd.xlane.f32.xlu0 %v391_v30  ;;  %395 = vadd.xlane.f32.xlu1 %v394_v31  ;;  %v409_v30 = vsel %vm240_vm0, %v3873_v14, 0.0  ;;  %v412_v31 = vsel %vm240_vm0, %v3876_v15, 0.0  ;;  %v424_v14 = vsel %vm240_vm0, %v3896_v54, 0.0 }
  0x7b   : > { %398 = vadd.xlane.f32.xlu0 %v397_v46  ;;  %401 = vadd.xlane.f32.xlu1 %v400_v47  ;;  %v3883_v46 = vld [vmem:[%s3590_s18 + $0x1d0] sm:$0xff]  ;;  %v3886_v47 = vld [vmem:[%s3590_s18 + $0x1d8] sm:$0xff] }
  0x7c   : > { %6848 = vst [vmem:[#allocation10_spill] sm:$0xff] %v3883_v46  ;;  %6849 = vst [vmem:[#allocation11_spill] sm:$0xff] %v3886_v47  ;;  %v415_v55 = vsel %vm240_vm0, %v3883_v46, 0.0 }
  0x7f   : > { %404 = vadd.xlane.f32.xlu0 %v403_v62  ;;  %407 = vadd.xlane.f32.xlu1 %v406_v63  ;;  %v418_v62 = vsel %vm240_vm0, %v3886_v47, 0.0  ;;  %v3893_v63 = vld [vmem:[%s3590_s18 + $0x1e0] sm:$0xff] }
  0x80   : > { %6850 = vst [vmem:[#allocation12_spill] sm:$0xff] %v3893_v63  ;;  %v421_v15 = vsel %vm240_vm0, %v3893_v63, 0.0 }
  0x83   : > { %410 = vadd.xlane.f32.xlu0 %v409_v30  ;;  %413 = vadd.xlane.f32.xlu1 %v412_v31  ;;  %v3903_v30 = vld [vmem:[%s3590_s18 + $0x1f0] sm:$0xff]  ;;  %v3906_v31 = vld [vmem:[%s3590_s18 + $0x1f8] sm:$0xff] }
  0x84   : > { %6852 = vst [vmem:[#allocation14_spill] sm:$0xff] %v3903_v30  ;;  %v427_v47 = vsel %vm240_vm0, %v3903_v30, 0.0  ;;  %v430_v46 = vsel %vm240_vm0, %v3906_v31, 0.0 }
  0x87   : > { %416 = vadd.xlane.f32.xlu0 %v415_v55  ;;  %419 = vadd.xlane.f32.xlu1 %v418_v62 }
  0x8b   : > { %422 = vadd.xlane.f32.xlu0 %v421_v15  ;;  %425 = vadd.xlane.f32.xlu1 %v424_v14 }
  0x8f   : > { %428 = vadd.xlane.f32.xlu0 %v427_v47  ;;  %431 = vadd.xlane.f32.xlu1 %v430_v46 }
  0x9c   : > { %v243_v55 = vpop.xlane.xlu0 %242  ;;  %v249_v62 = vpop.xlane.xlu1 %248 }
  0x9d   : > { %v434_v63 = vmul.f32 0.125, %v243_v55  ;;  %v436_v39 = vmul.f32 0.125, %v249_v62 }
  0x9f   : > { %v3913_v54 = vsub.f32 %v3593_v0, %v434_v63  ;;  %v3916_v38 = vsub.f32 %v3596_v1, %v436_v39 }
  0xa0   : > { %v246_v15 = vpop.xlane.xlu0 %245  ;;  %v252_v14 = vpop.xlane.xlu1 %251 }
  0xa1   : > { %6853 = vst [vmem:[#allocation15_spill] sm:$0xff] %v3913_v54  ;;  %6854 = vst [vmem:[#allocation16_spill] sm:$0xff] %v3916_v38  ;;  %v435_v23 = vmul.f32 0.125, %v246_v15  ;;  %v437_v22 = vmul.f32 0.125, %v252_v14  ;;  %v562_v30 = vmul.f32 %v3913_v54, %v3913_v54  ;;  %v564_v46 = vmul.f32 %v3916_v38, %v3916_v38 }
  0xa3   : > { %v3923_v47 = vsub.f32 %v3599_v2, %v435_v23  ;;  %v3926_v55 = vsub.f32 %v3606_v5, %v437_v22  ;;  %v626_v0 = vsel %vm240_vm0, %v562_v30, 0.0  ;;  %v632_v63 = vsel %vm240_vm0, %v564_v46, 0.0 }
  0xa4   : > { %627 = vadd.xlane.f32.xlu0 %v626_v0  ;;  %v255_v1 = vpop.xlane.xlu0 %254  ;;  %v258_v39 = vpop.xlane.xlu1 %257 }
  0xa5   : > { %6855 = vst [vmem:[#allocation17_spill] sm:$0xff] %v3923_v47  ;;  %6856 = vst [vmem:[#allocation18_spill] sm:$0xff] %v3926_v55  ;;  %v438_v62 = vmul.f32 0.125, %v255_v1  ;;  %v439_v15 = vmul.f32 0.125, %v258_v39  ;;  %v563_v14 = vmul.f32 %v3923_v47, %v3923_v47  ;;  %v565_v38 = vmul.f32 %v3926_v55, %v3926_v55 }
  0xa7   : > { %v3935_v2 = vsub.f32 %v3613_v8, %v438_v62  ;;  %v3938_v5 = vsub.f32 %v3616_v9, %v439_v15  ;;  %v629_v22 = vsel %vm240_vm0, %v563_v14, 0.0  ;;  %v635_v46 = vsel %vm240_vm0, %v565_v38, 0.0 }
  0xa8   : > { %633 = vadd.xlane.f32.xlu0 %v632_v63  ;;  %630 = vadd.xlane.f32.xlu1 %v629_v22  ;;  %v261_v23 = vpop.xlane.xlu0 %260  ;;  %v264_v30 = vpop.xlane.xlu1 %263 }
  0xa9   : > { %6857 = vst [vmem:[#allocation19_spill] sm:$0xff] %v3935_v2  ;;  %6858 = vst [vmem:[#allocation20_spill] sm:$0xff] %v3938_v5  ;;  %v440_v0 = vmul.f32 0.125, %v261_v23  ;;  %v441_v1 = vmul.f32 0.125, %v264_v30  ;;  %v566_v39 = vmul.f32 %v3935_v2, %v3935_v2  ;;  %v567_v8 = vmul.f32 %v3938_v5, %v3938_v5 }
  0xab   : > { %v3947_v62 = vsub.f32 %v3623_v12, %v440_v0  ;;  %v3950_v9 = vsub.f32 %v3626_v13, %v441_v1  ;;  %v638_v63 = vsel %vm240_vm0, %v566_v39, 0.0  ;;  %v641_v14 = vsel %vm240_vm0, %v567_v8, 0.0 }
  0xac   : > { %636 = vadd.xlane.f32.xlu1 %v635_v46  ;;  %639 = vadd.xlane.f32.xlu0 %v638_v63  ;;  %v267_v15 = vpop.xlane.xlu0 %266  ;;  %v270_v38 = vpop.xlane.xlu1 %269 }
  0xad   : > { %6859 = vst [vmem:[#allocation21_spill] sm:$0xff] %v3947_v62  ;;  %6860 = vst [vmem:[#allocation22_spill] sm:$0xff] %v3950_v9  ;;  %v442_v22 = vmul.f32 0.125, %v267_v15  ;;  %v443_v23 = vmul.f32 0.125, %v270_v38  ;;  %v568_v30 = vmul.f32 %v3947_v62, %v3947_v62  ;;  %v569_v12 = vmul.f32 %v3950_v9, %v3950_v9 }
  0xaf   : > { %v3959_v0 = vsub.f32 %v3633_v16, %v442_v22  ;;  %v3962_v13 = vsub.f32 %v3636_v17, %v443_v23  ;;  %v644_v46 = vsel %vm240_vm0, %v568_v30, 0.0  ;;  %v647_v8 = vsel %vm240_vm0, %v569_v12, 0.0 }
  0xb0   : > { %642 = vadd.xlane.f32.xlu1 %v641_v14  ;;  %645 = vadd.xlane.f32.xlu0 %v644_v46  ;;  %v273_v1 = vpop.xlane.xlu0 %272  ;;  %v276_v39 = vpop.xlane.xlu1 %275 }
  0xb1   : > { %6861 = vst [vmem:[#allocation23_spill] sm:$0xff] %v3959_v0  ;;  %6862 = vst [vmem:[#allocation24_spill] sm:$0xff] %v3962_v13  ;;  %v444_v63 = vmul.f32 0.125, %v273_v1  ;;  %v445_v15 = vmul.f32 0.125, %v276_v39  ;;  %v570_v38 = vmul.f32 %v3959_v0, %v3959_v0  ;;  %v571_v16 = vmul.f32 %v3962_v13, %v3962_v13 }
  0xb3   : > { %v3971_v22 = vsub.f32 %v3643_v20, %v444_v63  ;;  %v3974_v17 = vsub.f32 %v3646_v21, %v445_v15  ;;  %v650_v14 = vsel %vm240_vm0, %v570_v38, 0.0  ;;  %v653_v12 = vsel %vm240_vm0, %v571_v16, 0.0 }
  0xb4   : > { %648 = vadd.xlane.f32.xlu1 %v647_v8  ;;  %651 = vadd.xlane.f32.xlu0 %v650_v14  ;;  %v279_v23 = vpop.xlane.xlu0 %278  ;;  %v282_v30 = vpop.xlane.xlu1 %281 }
  0xb5   : > { %6863 = vst [vmem:[#allocation25_spill] sm:$0xff] %v3971_v22  ;;  %6864 = vst [vmem:[#allocation26_spill] sm:$0xff] %v3974_v17  ;;  %v446_v46 = vmul.f32 0.125, %v279_v23  ;;  %v447_v1 = vmul.f32 0.125, %v282_v30  ;;  %v572_v39 = vmul.f32 %v3971_v22, %v3971_v22  ;;  %v573_v20 = vmul.f32 %v3974_v17, %v3974_v17  ;;  %v3435_v17 = vld [vmem:[%s3590_s18 + $0xb8] sm:$0xff] }
  0xb7   : > { %v3983_v63 = vsub.f32 %v3653_v24, %v446_v46  ;;  %v3986_v21 = vsub.f32 %v3656_v25, %v447_v1  ;;  %v656_v8 = vsel %vm240_vm0, %v572_v39, 0.0  ;;  %v659_v16 = vsel %vm240_vm0, %v573_v20, 0.0 }
  0xb8   : > { %654 = vadd.xlane.f32.xlu1 %v653_v12  ;;  %657 = vadd.xlane.f32.xlu0 %v656_v8  ;;  %v285_v15 = vpop.xlane.xlu0 %284  ;;  %v288_v38 = vpop.xlane.xlu1 %287 }
  0xb9   : > { %6865 = vst [vmem:[#allocation27_spill] sm:$0xff] %v3983_v63  ;;  %6866 = vst [vmem:[#allocation28_spill] sm:$0xff] %v3986_v21  ;;  %v448_v14 = vmul.f32 0.125, %v285_v15  ;;  %v449_v23 = vmul.f32 0.125, %v288_v38  ;;  %v574_v30 = vmul.f32 %v3983_v63, %v3983_v63  ;;  %v575_v24 = vmul.f32 %v3986_v21, %v3986_v21 }
  0xbb   : > { %v3995_v46 = vsub.f32 %v3663_v28, %v448_v14  ;;  %v3998_v25 = vsub.f32 %v3666_v29, %v449_v23  ;;  %v662_v12 = vsel %vm240_vm0, %v574_v30, 0.0  ;;  %v665_v20 = vsel %vm240_vm0, %v575_v24, 0.0 }
  0xbc   : > { %660 = vadd.xlane.f32.xlu1 %v659_v16  ;;  %663 = vadd.xlane.f32.xlu0 %v662_v12  ;;  %v291_v1 = vpop.xlane.xlu0 %290  ;;  %v294_v39 = vpop.xlane.xlu1 %293 }
  0xbd   : > { %6867 = vst [vmem:[#allocation29_spill] sm:$0xff] %v3995_v46  ;;  %6868 = vst [vmem:[#allocation30_spill] sm:$0xff] %v3998_v25  ;;  %v450_v8 = vmul.f32 0.125, %v291_v1  ;;  %v451_v15 = vmul.f32 0.125, %v294_v39  ;;  %v576_v38 = vmul.f32 %v3995_v46, %v3995_v46  ;;  %v577_v28 = vmul.f32 %v3998_v25, %v3998_v25  ;;  %v3433_v25 = vld [vmem:[%s3590_s18 + $0xa8] sm:$0xff] }
  0xbe   : > { %v4455_v46 = vmul.f32 %v3433_v25, %v3433_v25  ;;  %v3436_v25 = vld [vmem:[%s3590_s18 + $0xd0] sm:$0xff] }
  0xbf   : > { %v4007_v14 = vsub.f32 %v3673_v32, %v450_v8  ;;  %v4010_v29 = vsub.f32 %v3676_v33, %v451_v15  ;;  %v668_v16 = vsel %vm240_vm0, %v576_v38, 0.0  ;;  %v671_v24 = vsel %vm240_vm0, %v577_v28, 0.0 }
  0xc0   : > { %666 = vadd.xlane.f32.xlu1 %v665_v20  ;;  %669 = vadd.xlane.f32.xlu0 %v668_v16  ;;  %v297_v23 = vpop.xlane.xlu0 %296  ;;  %v300_v30 = vpop.xlane.xlu1 %299  ;;  %v4474_v22 = vmul.f32 %v3436_v25, %v3436_v25 }
  0xc1   : > { %6869 = vst [vmem:[#allocation31_spill] sm:$0xff] %v4007_v14  ;;  %6870 = vst [vmem:[#allocation32_spill] sm:$0xff] %v4010_v29  ;;  %v452_v12 = vmul.f32 0.125, %v297_v23  ;;  %v453_v1 = vmul.f32 0.125, %v300_v30  ;;  %v578_v39 = vmul.f32 %v4007_v14, %v4007_v14  ;;  %v579_v32 = vmul.f32 %v4010_v29, %v4010_v29 }
  0xc3   : > { %v4019_v8 = vsub.f32 %v3683_v36, %v452_v12  ;;  %v4022_v33 = vsub.f32 %v3686_v37, %v453_v1  ;;  %v674_v20 = vsel %vm240_vm0, %v578_v39, 0.0  ;;  %v677_v28 = vsel %vm240_vm0, %v579_v32, 0.0 }
  0xc4   : > { %672 = vadd.xlane.f32.xlu1 %v671_v24  ;;  %675 = vadd.xlane.f32.xlu0 %v674_v20  ;;  %v303_v15 = vpop.xlane.xlu0 %302  ;;  %v306_v38 = vpop.xlane.xlu1 %305 }
  0xc5   : > { %6871 = vst [vmem:[#allocation33_spill] sm:$0xff] %v4019_v8  ;;  %6872 = vst [vmem:[#allocation34_spill] sm:$0xff] %v4022_v33  ;;  %v454_v16 = vmul.f32 0.125, %v303_v15  ;;  %v455_v23 = vmul.f32 0.125, %v306_v38  ;;  %v580_v30 = vmul.f32 %v4019_v8, %v4019_v8  ;;  %v581_v36 = vmul.f32 %v4022_v33, %v4022_v33  ;;  %v3431_v33 = vld [vmem:[%s3590_s18 + $0x98] sm:$0xff] }
  0xc6   : > { %v4441_v8 = vmul.f32 %v3431_v33, %v3431_v33  ;;  %v3434_v33 = vld [vmem:[%s3590_s18 + $0xc0] sm:$0xff] }
  0xc7   : > { %v4031_v12 = vsub.f32 %v3693_v40, %v454_v16  ;;  %v4034_v37 = vsub.f32 %v3696_v41, %v455_v23  ;;  %v680_v24 = vsel %vm240_vm0, %v580_v30, 0.0  ;;  %v683_v32 = vsel %vm240_vm0, %v581_v36, 0.0 }
  0xc8   : > { %678 = vadd.xlane.f32.xlu1 %v677_v28  ;;  %681 = vadd.xlane.f32.xlu0 %v680_v24  ;;  %v309_v1 = vpop.xlane.xlu0 %308  ;;  %v312_v39 = vpop.xlane.xlu1 %311  ;;  %v4460_v21 = vmul.f32 %v3434_v33, %v3434_v33 }
  0xc9   : > { %6873 = vst [vmem:[#allocation35_spill] sm:$0xff] %v4031_v12  ;;  %6874 = vst [vmem:[#allocation36_spill] sm:$0xff] %v4034_v37  ;;  %v456_v20 = vmul.f32 0.125, %v309_v1  ;;  %v457_v15 = vmul.f32 0.125, %v312_v39  ;;  %v582_v38 = vmul.f32 %v4031_v12, %v4031_v12  ;;  %v583_v40 = vmul.f32 %v4034_v37, %v4034_v37 }
  0xcb   : > { %v4043_v16 = vsub.f32 %v3703_v44, %v456_v20  ;;  %v4046_v41 = vsub.f32 %v3706_v45, %v457_v15  ;;  %v686_v28 = vsel %vm240_vm0, %v582_v38, 0.0  ;;  %v689_v36 = vsel %vm240_vm0, %v583_v40, 0.0 }
  0xcc   : > { %684 = vadd.xlane.f32.xlu1 %v683_v32  ;;  %687 = vadd.xlane.f32.xlu0 %v686_v28  ;;  %v315_v23 = vpop.xlane.xlu0 %314  ;;  %v318_v30 = vpop.xlane.xlu1 %317 }
  0xcd   : > { %6875 = vst [vmem:[#allocation37_spill] sm:$0xff] %v4043_v16  ;;  %6876 = vst [vmem:[#allocation38_spill] sm:$0xff] %v4046_v41  ;;  %v458_v24 = vmul.f32 0.125, %v315_v23  ;;  %v459_v1 = vmul.f32 0.125, %v318_v30  ;;  %v584_v39 = vmul.f32 %v4043_v16, %v4043_v16  ;;  %v585_v44 = vmul.f32 %v4046_v41, %v4046_v41  ;;  %v3429_v41 = vld [vmem:[%s3590_s18 + $0x88] sm:$0xff] }
  0xce   : > { %v4427_v16 = vmul.f32 %v3429_v41, %v3429_v41  ;;  %v3432_v41 = vld [vmem:[%s3590_s18 + $0xb0] sm:$0xff] }
  0xcf   : > { %v4055_v20 = vsub.f32 %v3713_v48, %v458_v24  ;;  %v4058_v45 = vsub.f32 %v3716_v49, %v459_v1  ;;  %v692_v32 = vsel %vm240_vm0, %v584_v39, 0.0  ;;  %v695_v40 = vsel %vm240_vm0, %v585_v44, 0.0 }
  0xd0   : > { %690 = vadd.xlane.f32.xlu1 %v689_v36  ;;  %693 = vadd.xlane.f32.xlu0 %v692_v32  ;;  %v321_v15 = vpop.xlane.xlu0 %320  ;;  %v324_v38 = vpop.xlane.xlu1 %323  ;;  %v4446_v29 = vmul.f32 %v3432_v41, %v3432_v41 }
  0xd1   : > { %6877 = vst [vmem:[#allocation39_spill] sm:$0xff] %v4055_v20  ;;  %6878 = vst [vmem:[#allocation40_spill] sm:$0xff] %v4058_v45  ;;  %v460_v28 = vmul.f32 0.125, %v321_v15  ;;  %v461_v23 = vmul.f32 0.125, %v324_v38  ;;  %v586_v30 = vmul.f32 %v4055_v20, %v4055_v20  ;;  %v587_v48 = vmul.f32 %v4058_v45, %v4058_v45 }
  0xd3   : > { %v4067_v24 = vsub.f32 %v3723_v52, %v460_v28  ;;  %v4070_v49 = vsub.f32 %v3726_v53, %v461_v23  ;;  %v698_v36 = vsel %vm240_vm0, %v586_v30, 0.0  ;;  %v701_v44 = vsel %vm240_vm0, %v587_v48, 0.0 }
  0xd4   : > { %696 = vadd.xlane.f32.xlu1 %v695_v40  ;;  %699 = vadd.xlane.f32.xlu0 %v698_v36  ;;  %v327_v1 = vpop.xlane.xlu0 %326  ;;  %v330_v39 = vpop.xlane.xlu1 %329 }
  0xd5   : > { %6879 = vst [vmem:[#allocation41_spill] sm:$0xff] %v4067_v24  ;;  %6880 = vst [vmem:[#allocation42_spill] sm:$0xff] %v4070_v49  ;;  %v462_v32 = vmul.f32 0.125, %v327_v1  ;;  %v463_v15 = vmul.f32 0.125, %v330_v39  ;;  %v588_v38 = vmul.f32 %v4067_v24, %v4067_v24  ;;  %v589_v52 = vmul.f32 %v4070_v49, %v4070_v49  ;;  %v3427_v49 = vld [vmem:[%s3590_s18 + $0x78] sm:$0xff] }
  0xd6   : > { %v4413_v24 = vmul.f32 %v3427_v49, %v3427_v49  ;;  %v3430_v49 = vld [vmem:[%s3590_s18 + $0xa0] sm:$0xff] }
  0xd7   : > { %v4079_v28 = vsub.f32 %v3733_v56, %v462_v32  ;;  %v4082_v53 = vsub.f32 %v3736_v57, %v463_v15  ;;  %v704_v40 = vsel %vm240_vm0, %v588_v38, 0.0  ;;  %v707_v48 = vsel %vm240_vm0, %v589_v52, 0.0 }
  0xd8   : > { %702 = vadd.xlane.f32.xlu1 %v701_v44  ;;  %705 = vadd.xlane.f32.xlu0 %v704_v40  ;;  %v333_v23 = vpop.xlane.xlu0 %332  ;;  %v336_v30 = vpop.xlane.xlu1 %335  ;;  %v4432_v37 = vmul.f32 %v3430_v49, %v3430_v49 }
  0xd9   : > { %6881 = vst [vmem:[#allocation43_spill] sm:$0xff] %v4079_v28  ;;  %6882 = vst [vmem:[#allocation44_spill] sm:$0xff] %v4082_v53  ;;  %v464_v36 = vmul.f32 0.125, %v333_v23  ;;  %v465_v1 = vmul.f32 0.125, %v336_v30  ;;  %v590_v39 = vmul.f32 %v4079_v28, %v4079_v28  ;;  %v591_v56 = vmul.f32 %v4082_v53, %v4082_v53 }
  0xdb   : > { %v4091_v32 = vsub.f32 %v3743_v60, %v464_v36  ;;  %v4094_v57 = vsub.f32 %v3746_v61, %v465_v1  ;;  %v710_v44 = vsel %vm240_vm0, %v590_v39, 0.0  ;;  %v713_v52 = vsel %vm240_vm0, %v591_v56, 0.0 }
  0xdc   : > { %708 = vadd.xlane.f32.xlu1 %v707_v48  ;;  %711 = vadd.xlane.f32.xlu0 %v710_v44  ;;  %v339_v15 = vpop.xlane.xlu0 %338  ;;  %v342_v38 = vpop.xlane.xlu1 %341 }
  0xdd   : > { %6883 = vst [vmem:[#allocation45_spill] sm:$0xff] %v4091_v32  ;;  %6884 = vst [vmem:[#allocation46_spill] sm:$0xff] %v4094_v57  ;;  %v466_v40 = vmul.f32 0.125, %v339_v15  ;;  %v467_v23 = vmul.f32 0.125, %v342_v38  ;;  %v592_v30 = vmul.f32 %v4091_v32, %v4091_v32  ;;  %v593_v60 = vmul.f32 %v4094_v57, %v4094_v57  ;;  %v3425_v57 = vld [vmem:[%s3590_s18 + $0x68] sm:$0xff] }
  0xde   : > { %v4399_v32 = vmul.f32 %v3425_v57, %v3425_v57  ;;  %v3428_v57 = vld [vmem:[%s3590_s18 + $0x90] sm:$0xff] }
  0xdf   : > { %v4103_v36 = vsub.f32 %v3753_v3, %v466_v40  ;;  %v4106_v61 = vsub.f32 %v3756_v4, %v467_v23  ;;  %v716_v48 = vsel %vm240_vm0, %v592_v30, 0.0  ;;  %v719_v56 = vsel %vm240_vm0, %v593_v60, 0.0 }
  0xe0   : > { %714 = vadd.xlane.f32.xlu1 %v713_v52  ;;  %717 = vadd.xlane.f32.xlu0 %v716_v48  ;;  %v345_v1 = vpop.xlane.xlu0 %344  ;;  %v348_v39 = vpop.xlane.xlu1 %347  ;;  %v4418_v45 = vmul.f32 %v3428_v57, %v3428_v57 }
  0xe1   : > { %6885 = vst [vmem:[#allocation47_spill] sm:$0xff] %v4103_v36  ;;  %6886 = vst [vmem:[#allocation48_spill] sm:$0xff] %v4106_v61  ;;  %v468_v44 = vmul.f32 0.125, %v345_v1  ;;  %v469_v15 = vmul.f32 0.125, %v348_v39  ;;  %v594_v38 = vmul.f32 %v4103_v36, %v4103_v36  ;;  %v595_v3 = vmul.f32 %v4106_v61, %v4106_v61 }
  0xe3   : > { %v4115_v40 = vsub.f32 %v3763_v10, %v468_v44  ;;  %v4118_v4 = vsub.f32 %v3766_v11, %v469_v15  ;;  %v722_v52 = vsel %vm240_vm0, %v594_v38, 0.0  ;;  %v725_v60 = vsel %vm240_vm0, %v595_v3, 0.0 }
  0xe4   : > { %720 = vadd.xlane.f32.xlu1 %v719_v56  ;;  %723 = vadd.xlane.f32.xlu0 %v722_v52  ;;  %v351_v23 = vpop.xlane.xlu0 %350  ;;  %v354_v30 = vpop.xlane.xlu1 %353 }
  0xe5   : > { %6887 = vst [vmem:[#allocation49_spill] sm:$0xff] %v4115_v40  ;;  %6888 = vst [vmem:[#allocation50_spill] sm:$0xff] %v4118_v4  ;;  %v470_v48 = vmul.f32 0.125, %v351_v23  ;;  %v471_v1 = vmul.f32 0.125, %v354_v30  ;;  %v596_v39 = vmul.f32 %v4115_v40, %v4115_v40  ;;  %v597_v10 = vmul.f32 %v4118_v4, %v4118_v4  ;;  %v3423_v4 = vld [vmem:[%s3590_s18 + $0x58] sm:$0xff] }
  0xe6   : > { %v4385_v40 = vmul.f32 %v3423_v4, %v3423_v4  ;;  %v3426_v4 = vld [vmem:[%s3590_s18 + $0x80] sm:$0xff] }
  0xe7   : > { %v4127_v44 = vsub.f32 %v3773_v18, %v470_v48  ;;  %v4130_v11 = vsub.f32 %v3776_v19, %v471_v1  ;;  %v728_v56 = vsel %vm240_vm0, %v596_v39, 0.0  ;;  %v731_v3 = vsel %vm240_vm0, %v597_v10, 0.0 }
  0xe8   : > { %726 = vadd.xlane.f32.xlu1 %v725_v60  ;;  %729 = vadd.xlane.f32.xlu0 %v728_v56  ;;  %v357_v15 = vpop.xlane.xlu0 %356  ;;  %v360_v38 = vpop.xlane.xlu1 %359  ;;  %v4404_v53 = vmul.f32 %v3426_v4, %v3426_v4 }
  0xe9   : > { %6889 = vst [vmem:[#allocation51_spill] sm:$0xff] %v4127_v44  ;;  %6890 = vst [vmem:[#allocation52_spill] sm:$0xff] %v4130_v11  ;;  %v472_v52 = vmul.f32 0.125, %v357_v15  ;;  %v473_v23 = vmul.f32 0.125, %v360_v38  ;;  %v598_v30 = vmul.f32 %v4127_v44, %v4127_v44  ;;  %v599_v18 = vmul.f32 %v4130_v11, %v4130_v11 }
  0xeb   : > { %v4139_v48 = vsub.f32 %v3783_v26, %v472_v52  ;;  %v4142_v19 = vsub.f32 %v3786_v27, %v473_v23  ;;  %v734_v60 = vsel %vm240_vm0, %v598_v30, 0.0  ;;  %v737_v10 = vsel %vm240_vm0, %v599_v18, 0.0 }
  0xec   : > { %732 = vadd.xlane.f32.xlu1 %v731_v3  ;;  %735 = vadd.xlane.f32.xlu0 %v734_v60  ;;  %v363_v1 = vpop.xlane.xlu0 %362  ;;  %v366_v39 = vpop.xlane.xlu1 %365 }
  0xed   : > { %6891 = vst [vmem:[#allocation53_spill] sm:$0xff] %v4139_v48  ;;  %6892 = vst [vmem:[#allocation54_spill] sm:$0xff] %v4142_v19  ;;  %v474_v56 = vmul.f32 0.125, %v363_v1  ;;  %v475_v15 = vmul.f32 0.125, %v366_v39  ;;  %v600_v38 = vmul.f32 %v4139_v48, %v4139_v48  ;;  %v601_v26 = vmul.f32 %v4142_v19, %v4142_v19  ;;  %v3421_v19 = vld [vmem:[%s3590_s18 + $0x48] sm:$0xff] }
  0xee   : > { %v4371_v48 = vmul.f32 %v3421_v19, %v3421_v19  ;;  %v3424_v19 = vld [vmem:[%s3590_s18 + $0x70] sm:$0xff] }
  0xef   : > { %v4151_v52 = vsub.f32 %v3793_v34, %v474_v56  ;;  %v4154_v27 = vsub.f32 %v3796_v35, %v475_v15  ;;  %v740_v3 = vsel %vm240_vm0, %v600_v38, 0.0  ;;  %v743_v18 = vsel %vm240_vm0, %v601_v26, 0.0 }
  0xf0   : > { %738 = vadd.xlane.f32.xlu1 %v737_v10  ;;  %741 = vadd.xlane.f32.xlu0 %v740_v3  ;;  %v369_v23 = vpop.xlane.xlu0 %368  ;;  %v372_v30 = vpop.xlane.xlu1 %371  ;;  %v4390_v61 = vmul.f32 %v3424_v19, %v3424_v19 }
  0xf1   : > { %6893 = vst [vmem:[#allocation55_spill] sm:$0xff] %v4151_v52  ;;  %6894 = vst [vmem:[#allocation56_spill] sm:$0xff] %v4154_v27  ;;  %v476_v60 = vmul.f32 0.125, %v369_v23  ;;  %v477_v1 = vmul.f32 0.125, %v372_v30  ;;  %v602_v39 = vmul.f32 %v4151_v52, %v4151_v52  ;;  %v603_v34 = vmul.f32 %v4154_v27, %v4154_v27 }
  0xf3   : > { %v4163_v56 = vsub.f32 %v3803_v42, %v476_v60  ;;  %v4166_v35 = vsub.f32 %v3806_v43, %v477_v1  ;;  %v746_v10 = vsel %vm240_vm0, %v602_v39, 0.0  ;;  %v749_v26 = vsel %vm240_vm0, %v603_v34, 0.0 }
  0xf4   : > { %744 = vadd.xlane.f32.xlu1 %v743_v18  ;;  %747 = vadd.xlane.f32.xlu0 %v746_v10  ;;  %v375_v15 = vpop.xlane.xlu0 %374  ;;  %v378_v38 = vpop.xlane.xlu1 %377 }
  0xf5   : > { %6895 = vst [vmem:[#allocation57_spill] sm:$0xff] %v4163_v56  ;;  %6896 = vst [vmem:[#allocation58_spill] sm:$0xff] %v4166_v35  ;;  %v478_v3 = vmul.f32 0.125, %v375_v15  ;;  %v479_v23 = vmul.f32 0.125, %v378_v38  ;;  %v604_v30 = vmul.f32 %v4163_v56, %v4163_v56  ;;  %v605_v42 = vmul.f32 %v4166_v35, %v4166_v35  ;;  %v3419_v35 = vld [vmem:[%s3590_s18 + $0x38] sm:$0xff] }
  0xf6   : > { %v4357_v56 = vmul.f32 %v3419_v35, %v3419_v35  ;;  %v3422_v35 = vld [vmem:[%s3590_s18 + $0x60] sm:$0xff] }
  0xf7   : > { %v4175_v60 = vsub.f32 %v3813_v50, %v478_v3  ;;  %v4178_v43 = vsub.f32 %v3816_v51, %v479_v23  ;;  %v752_v18 = vsel %vm240_vm0, %v604_v30, 0.0  ;;  %v755_v34 = vsel %vm240_vm0, %v605_v42, 0.0 }
  0xf8   : > { %750 = vadd.xlane.f32.xlu1 %v749_v26  ;;  %753 = vadd.xlane.f32.xlu0 %v752_v18  ;;  %v381_v1 = vpop.xlane.xlu0 %380  ;;  %v384_v39 = vpop.xlane.xlu1 %383  ;;  %v4376_v11 = vmul.f32 %v3422_v35, %v3422_v35 }
  0xf9   : > { %6897 = vst [vmem:[#allocation59_spill] sm:$0xff] %v4175_v60  ;;  %6898 = vst [vmem:[#allocation60_spill] sm:$0xff] %v4178_v43  ;;  %v480_v10 = vmul.f32 0.125, %v381_v1  ;;  %v481_v15 = vmul.f32 0.125, %v384_v39  ;;  %v606_v38 = vmul.f32 %v4175_v60, %v4175_v60  ;;  %v607_v50 = vmul.f32 %v4178_v43, %v4178_v43 }
  0xfb   : > { %v4187_v3 = vsub.f32 %v3823_v58, %v480_v10  ;;  %v4190_v51 = vsub.f32 %v3826_v59, %v481_v15  ;;  %v758_v26 = vsel %vm240_vm0, %v606_v38, 0.0  ;;  %v761_v42 = vsel %vm240_vm0, %v607_v50, 0.0 }
  0xfc   : > { %756 = vadd.xlane.f32.xlu1 %v755_v34  ;;  %759 = vadd.xlane.f32.xlu0 %v758_v26  ;;  %v387_v23 = vpop.xlane.xlu0 %386  ;;  %v390_v30 = vpop.xlane.xlu1 %389 }
  0xfd   : > { %6899 = vst [vmem:[#allocation61_spill] sm:$0xff] %v4187_v3  ;;  %6900 = vst [vmem:[#allocation62_spill] sm:$0xff] %v4190_v51  ;;  %v482_v18 = vmul.f32 0.125, %v387_v23  ;;  %v483_v1 = vmul.f32 0.125, %v390_v30  ;;  %v608_v39 = vmul.f32 %v4187_v3, %v4187_v3  ;;  %v609_v58 = vmul.f32 %v4190_v51, %v4190_v51 }
  0xff   : > { %v4199_v10 = vsub.f32 %v3833_v6, %v482_v18  ;;  %v4202_v59 = vsub.f32 %v3836_v7, %v483_v1  ;;  %v764_v34 = vsel %vm240_vm0, %v608_v39, 0.0  ;;  %v767_v50 = vsel %vm240_vm0, %v609_v58, 0.0  ;;  %v6903_v18 = vld [vmem:[#allocation2_spill] sm:$0xff]  ;;  %v6905_v7 = vld [vmem:[#allocation3_spill] sm:$0xff] }
 0x100   : > { %762 = vadd.xlane.f32.xlu1 %v761_v42  ;;  %765 = vadd.xlane.f32.xlu0 %v764_v34  ;;  %v393_v15 = vpop.xlane.xlu0 %392  ;;  %v396_v38 = vpop.xlane.xlu1 %395 }
 0x101   : > { %6901 = vst [vmem:[#allocation63_spill] sm:$0xff] %v4199_v10  ;;  %6902 = vst [vmem:[#allocation64_spill] sm:$0xff] %v4202_v59  ;;  %v484_v26 = vmul.f32 0.125, %v393_v15  ;;  %v485_v23 = vmul.f32 0.125, %v396_v38  ;;  %v610_v30 = vmul.f32 %v4199_v10, %v4199_v10  ;;  %v611_v6 = vmul.f32 %v4202_v59, %v4202_v59 }
 0x103   : > { %v4211_v51 = vsub.f32 %v6903_v18, %v484_v26  ;;  %v4214_v1 = vsub.f32 %v6905_v7, %v485_v23  ;;  %v770_v42 = vsel %vm240_vm0, %v610_v30, 0.0  ;;  %v773_v34 = vsel %vm240_vm0, %v611_v6, 0.0  ;;  %v6907_v18 = vld [vmem:[#allocation4_spill] sm:$0xff]  ;;  %v6909_v23 = vld [vmem:[#allocation5_spill] sm:$0xff] }
 0x104   : > { %768 = vadd.xlane.f32.xlu1 %v767_v50  ;;  %771 = vadd.xlane.f32.xlu0 %v770_v42  ;;  %v399_v39 = vpop.xlane.xlu0 %398  ;;  %v402_v58 = vpop.xlane.xlu1 %401 }
 0x105   : > { %6904 = vst [vmem:[#allocation2_spill] sm:$0xff] %v4211_v51  ;;  %6906 = vst [vmem:[#allocation3_spill] sm:$0xff] %v4214_v1  ;;  %v486_v15 = vmul.f32 0.125, %v399_v39  ;;  %v487_v38 = vmul.f32 0.125, %v402_v58  ;;  %v612_v10 = vmul.f32 %v4211_v51, %v4211_v51  ;;  %v613_v26 = vmul.f32 %v4214_v1, %v4214_v1 }
 0x107   : > { %v4223_v59 = vsub.f32 %v6907_v18, %v486_v15  ;;  %v4226_v7 = vsub.f32 %v6909_v23, %v487_v38  ;;  %v776_v50 = vsel %vm240_vm0, %v612_v10, 0.0  ;;  %v779_v42 = vsel %vm240_vm0, %v613_v26, 0.0  ;;  %v6911_v18 = vld [vmem:[#allocation6_spill] sm:$0xff]  ;;  %v6913_v38 = vld [vmem:[#allocation7_spill] sm:$0xff] }
 0x108   : > { %774 = vadd.xlane.f32.xlu1 %v773_v34  ;;  %777 = vadd.xlane.f32.xlu0 %v776_v50  ;;  %v405_v30 = vpop.xlane.xlu0 %404  ;;  %v408_v6 = vpop.xlane.xlu1 %407 }
 0x109   : > { %6908 = vst [vmem:[#allocation4_spill] sm:$0xff] %v4223_v59  ;;  %6910 = vst [vmem:[#allocation5_spill] sm:$0xff] %v4226_v7  ;;  %v488_v39 = vmul.f32 0.125, %v405_v30  ;;  %v489_v58 = vmul.f32 0.125, %v408_v6  ;;  %v614_v51 = vmul.f32 %v4223_v59, %v4223_v59  ;;  %v615_v15 = vmul.f32 %v4226_v7, %v4226_v7 }
 0x10b   : > { %v4235_v1 = vsub.f32 %v6911_v18, %v488_v39  ;;  %v4238_v23 = vsub.f32 %v6913_v38, %v489_v58  ;;  %v782_v10 = vsel %vm240_vm0, %v614_v51, 0.0  ;;  %v785_v50 = vsel %vm240_vm0, %v615_v15, 0.0  ;;  %v6915_v18 = vld [vmem:[#allocation8_spill] sm:$0xff]  ;;  %v6917_v58 = vld [vmem:[#allocation9_spill] sm:$0xff] }
 0x10c   : > { %780 = vadd.xlane.f32.xlu1 %v779_v42  ;;  %783 = vadd.xlane.f32.xlu0 %v782_v10  ;;  %v411_v34 = vpop.xlane.xlu0 %410  ;;  %v414_v26 = vpop.xlane.xlu1 %413 }
 0x10d   : > { %6912 = vst [vmem:[#allocation6_spill] sm:$0xff] %v4235_v1  ;;  %6914 = vst [vmem:[#allocation7_spill] sm:$0xff] %v4238_v23  ;;  %v490_v30 = vmul.f32 0.125, %v411_v34  ;;  %v491_v6 = vmul.f32 0.125, %v414_v26  ;;  %v616_v59 = vmul.f32 %v4235_v1, %v4235_v1  ;;  %v617_v39 = vmul.f32 %v4238_v23, %v4238_v23 }
 0x10f   : > { %v4247_v7 = vsub.f32 %v6915_v18, %v490_v30  ;;  %v4250_v38 = vsub.f32 %v6917_v58, %v491_v6  ;;  %v788_v51 = vsel %vm240_vm0, %v616_v59, 0.0  ;;  %v791_v10 = vsel %vm240_vm0, %v617_v39, 0.0  ;;  %v6919_v18 = vld [vmem:[#allocation10_spill] sm:$0xff]  ;;  %v6921_v6 = vld [vmem:[#allocation11_spill] sm:$0xff] }
 0x110   : > { %786 = vadd.xlane.f32.xlu1 %v785_v50  ;;  %789 = vadd.xlane.f32.xlu0 %v788_v51  ;;  %v417_v42 = vpop.xlane.xlu0 %416  ;;  %v420_v15 = vpop.xlane.xlu1 %419 }
 0x111   : > { %6916 = vst [vmem:[#allocation8_spill] sm:$0xff] %v4247_v7  ;;  %6918 = vst [vmem:[#allocation9_spill] sm:$0xff] %v4250_v38  ;;  %v492_v34 = vmul.f32 0.125, %v417_v42  ;;  %v493_v26 = vmul.f32 0.125, %v420_v15  ;;  %v618_v1 = vmul.f32 %v4247_v7, %v4247_v7  ;;  %v619_v30 = vmul.f32 %v4250_v38, %v4250_v38 }
 0x113   : > { %v4259_v23 = vsub.f32 %v6919_v18, %v492_v34  ;;  %v4262_v58 = vsub.f32 %v6921_v6, %v493_v26  ;;  %v794_v59 = vsel %vm240_vm0, %v618_v1, 0.0  ;;  %v797_v51 = vsel %vm240_vm0, %v619_v30, 0.0  ;;  %v6923_v18 = vld [vmem:[#allocation12_spill] sm:$0xff]  ;;  %v6925_v26 = vld [vmem:[#allocation13_spill] sm:$0xff] }
 0x114   : > { %792 = vadd.xlane.f32.xlu1 %v791_v10  ;;  %795 = vadd.xlane.f32.xlu0 %v794_v59  ;;  %v423_v50 = vpop.xlane.xlu0 %422  ;;  %v426_v39 = vpop.xlane.xlu1 %425 }
 0x115   : > { %6920 = vst [vmem:[#allocation10_spill] sm:$0xff] %v4259_v23  ;;  %6922 = vst [vmem:[#allocation11_spill] sm:$0xff] %v4262_v58  ;;  %v494_v42 = vmul.f32 0.125, %v423_v50  ;;  %v495_v15 = vmul.f32 0.125, %v426_v39  ;;  %v620_v7 = vmul.f32 %v4259_v23, %v4259_v23  ;;  %v621_v34 = vmul.f32 %v4262_v58, %v4262_v58 }
 0x117   : > { %v4271_v38 = vsub.f32 %v6923_v18, %v494_v42  ;;  %v4274_v6 = vsub.f32 %v6925_v26, %v495_v15  ;;  %v800_v1 = vsel %vm240_vm0, %v620_v7, 0.0  ;;  %v803_v59 = vsel %vm240_vm0, %v621_v34, 0.0  ;;  %v6927_v18 = vld [vmem:[#allocation14_spill] sm:$0xff] }
 0x118   : > { %798 = vadd.xlane.f32.xlu1 %v797_v51  ;;  %801 = vadd.xlane.f32.xlu0 %v800_v1  ;;  %v429_v10 = vpop.xlane.xlu0 %428  ;;  %v432_v30 = vpop.xlane.xlu1 %431 }
 0x119   : > { %6924 = vst [vmem:[#allocation12_spill] sm:$0xff] %v4271_v38  ;;  %6926 = vst [vmem:[#allocation13_spill] sm:$0xff] %v4274_v6  ;;  %v496_v50 = vmul.f32 0.125, %v429_v10  ;;  %v497_v39 = vmul.f32 0.125, %v432_v30  ;;  %v622_v23 = vmul.f32 %v4271_v38, %v4271_v38  ;;  %v623_v42 = vmul.f32 %v4274_v6, %v4274_v6  ;;  %v3417_v38 = vld [vmem:[%s3590_s18 + $0x28] sm:$0xff] }
 0x11a   : > { %v4343_v3 = vmul.f32 %v3417_v38, %v3417_v38  ;;  %v3420_v38 = vld [vmem:[%s3590_s18 + $0x50] sm:$0xff] }
 0x11b   : > { %v4283_v58 = vsub.f32 %v6927_v18, %v496_v50  ;;  %v4286_v7 = vsub.f32 %v3906_v31, %v497_v39  ;;  %v806_v51 = vsel %vm240_vm0, %v622_v23, 0.0  ;;  %v809_v15 = vsel %vm240_vm0, %v623_v42, 0.0  ;;  %v3412_v39 = vld [vmem:[%s3590_s18] sm:$0xff] }
 0x11c   : > { %804 = vadd.xlane.f32.xlu1 %v803_v59  ;;  %807 = vadd.xlane.f32.xlu0 %v806_v51  ;;  %v3411_v59 = vld [vmem:[%s3590_s18 + $0x8] sm:$0xff]  ;;  %v4306_v42 = vmul.f32 %v3412_v39, %v3412_v39  ;;  %v3415_v39 = vld [vmem:[%s3590_s18 + $0x18] sm:$0xff]  ;;  %v4362_v27 = vmul.f32 %v3420_v38, %v3420_v38 }
 0x11d   : > { %6928 = vst [vmem:[#allocation14_spill] sm:$0xff] %v4283_v58  ;;  %6929 = vst [vmem:[#allocation65_spill] sm:$0xff] %v4286_v7  ;;  %v624_v34 = vmul.f32 %v4283_v58, %v4283_v58  ;;  %v625_v26 = vmul.f32 %v4286_v7, %v4286_v7  ;;  %v4303_v50 = vmul.f32 %v3411_v59, %v3411_v59 }
 0x11e   : > { %v4329_v7 = vmul.f32 %v3415_v39, %v3415_v39  ;;  %v3418_v39 = vld [vmem:[%s3590_s18 + $0x40] sm:$0xff] }
 0x11f   : > { %v812_v1 = vsel %vm240_vm0, %v624_v34, 0.0  ;;  %v815_v31 = vsel %vm240_vm0, %v625_v26, 0.0  ;;  %v3414_v26 = vld [vmem:[%s3590_s18 + $0x20] sm:$0xff]  ;;  %v4348_v43 = vmul.f32 %v3418_v39, %v3418_v39 }
 0x120   : > { %810 = vadd.xlane.f32.xlu1 %v809_v15  ;;  %813 = vadd.xlane.f32.xlu0 %v812_v1  ;;  %v3413_v15 = vld [vmem:[%s3590_s18 + $0x10] sm:$0xff]  ;;  %v4320_v1 = vmul.f32 %v3414_v26, %v3414_v26 }
 0x121   : > { %v4315_v34 = vmul.f32 %v3413_v15, %v3413_v15  ;;  %v3416_v15 = vld [vmem:[%s3590_s18 + $0x30] sm:$0xff] }
 0x122   : > { %v4334_v58 = vmul.f32 %v3416_v15, %v3416_v15 }
 0x124   : > { %816 = vadd.xlane.f32.xlu1 %v815_v31 }
 0x12d   : > { %v4296_v23 = vpop.xlane.xlu0 %627 }
 0x12e   : > { %6930 = vst [vmem:[#allocation66_spill] sm:$0xff] %v4296_v23 }
 0x131   : > { %v4298_v10 = vpop.xlane.xlu1 %630  ;;  %v4300_v30 = vpop.xlane.xlu0 %633 }
 0x132   : > { %6931 = vst [vmem:[#allocation67_spill] sm:$0xff] %v4298_v10  ;;  %6932 = vst [vmem:[#allocation68_spill] sm:$0xff] %v4300_v30 }
 0x135   : > { %1344 = vrot.lane.b32.xlu1 %v4303_v50, %s3552_s19  ;;  %v4310_v18 = vpop.xlane.xlu1 %636  ;;  %v4312_v51 = vpop.xlane.xlu0 %639 }
 0x136   : > { %6933 = vst [vmem:[#allocation69_spill] sm:$0xff] %v4310_v18  ;;  %6934 = vst [vmem:[#allocation70_spill] sm:$0xff] %v4312_v51  ;;  %1342 = vrot.lane.b32.xlu0 %v4306_v42, %s3552_s19 }
 0x139   : > { %1346 = vrot.lane.b32.xlu1 %v4315_v34, %s3552_s19  ;;  %v4324_v31 = vpop.xlane.xlu1 %642  ;;  %v4326_v59 = vpop.xlane.xlu0 %645 }
 0x13a   : > { %6935 = vst [vmem:[#allocation71_spill] sm:$0xff] %v4324_v31  ;;  %6936 = vst [vmem:[#allocation72_spill] sm:$0xff] %v4326_v59  ;;  %1350 = vrot.lane.b32.xlu0 %v4320_v1, %s3552_s19 }
 0x13d   : > { %1348 = vrot.lane.b32.xlu1 %v4329_v7, %s3552_s19  ;;  %v4338_v26 = vpop.xlane.xlu1 %648  ;;  %v4340_v6 = vpop.xlane.xlu0 %651 }
 0x13e   : > { %6937 = vst [vmem:[#allocation73_spill] sm:$0xff] %v4338_v26  ;;  %6938 = vst [vmem:[#allocation74_spill] sm:$0xff] %v4340_v6  ;;  %1354 = vrot.lane.b32.xlu0 %v4334_v58, %s3552_s19 }
 0x141   : > { %1352 = vrot.lane.b32.xlu1 %v4343_v3, %s3552_s19  ;;  %v4352_v15 = vpop.xlane.xlu1 %654  ;;  %v4354_v60 = vpop.xlane.xlu0 %657 }
 0x142   : > { %6939 = vst [vmem:[#allocation75_spill] sm:$0xff] %v4352_v15  ;;  %6940 = vst [vmem:[#allocation76_spill] sm:$0xff] %v4354_v60  ;;  %1358 = vrot.lane.b32.xlu0 %v4348_v43, %s3552_s19 }
 0x145   : > { %1356 = vrot.lane.b32.xlu1 %v4357_v56, %s3552_s19  ;;  %v4366_v39 = vpop.xlane.xlu1 %660  ;;  %v4368_v52 = vpop.xlane.xlu0 %663 }
 0x146   : > { %6941 = vst [vmem:[#allocation77_spill] sm:$0xff] %v4366_v39  ;;  %6942 = vst [vmem:[#allocation78_spill] sm:$0xff] %v4368_v52  ;;  %1362 = vrot.lane.b32.xlu0 %v4362_v27, %s3552_s19 }
 0x149   : > { %1360 = vrot.lane.b32.xlu1 %v4371_v48, %s3552_s19  ;;  %v4380_v38 = vpop.xlane.xlu1 %666  ;;  %v4382_v44 = vpop.xlane.xlu0 %669 }
 0x14a   : > { %6943 = vst [vmem:[#allocation79_spill] sm:$0xff] %v4380_v38  ;;  %6944 = vst [vmem:[#allocation80_spill] sm:$0xff] %v4382_v44  ;;  %1366 = vrot.lane.b32.xlu0 %v4376_v11, %s3552_s19 }
 0x14d   : > { %1364 = vrot.lane.b32.xlu1 %v4385_v40, %s3552_s19  ;;  %v4394_v35 = vpop.xlane.xlu1 %672  ;;  %v4396_v36 = vpop.xlane.xlu0 %675 }
 0x14e   : > { %6945 = vst [vmem:[#allocation81_spill] sm:$0xff] %v4394_v35  ;;  %6946 = vst [vmem:[#allocation82_spill] sm:$0xff] %v4396_v36  ;;  %1370 = vrot.lane.b32.xlu0 %v4390_v61, %s3552_s19 }
 0x151   : > { %1368 = vrot.lane.b32.xlu1 %v4399_v32, %s3552_s19  ;;  %v4408_v19 = vpop.xlane.xlu1 %678  ;;  %v4410_v28 = vpop.xlane.xlu0 %681 }
 0x152   : > { %6947 = vst [vmem:[#allocation83_spill] sm:$0xff] %v4408_v19  ;;  %6948 = vst [vmem:[#allocation84_spill] sm:$0xff] %v4410_v28  ;;  %1374 = vrot.lane.b32.xlu0 %v4404_v53, %s3552_s19 }
 0x155   : > { %1372 = vrot.lane.b32.xlu1 %v4413_v24, %s3552_s19  ;;  %v4422_v4 = vpop.xlane.xlu1 %684  ;;  %v4424_v20 = vpop.xlane.xlu0 %687 }
 0x156   : > { %6949 = vst [vmem:[#allocation85_spill] sm:$0xff] %v4422_v4  ;;  %6950 = vst [vmem:[#allocation86_spill] sm:$0xff] %v4424_v20  ;;  %1378 = vrot.lane.b32.xlu0 %v4418_v45, %s3552_s19 }
 0x159   : > { %1376 = vrot.lane.b32.xlu1 %v4427_v16, %s3552_s19  ;;  %v4436_v57 = vpop.xlane.xlu1 %690  ;;  %v4438_v12 = vpop.xlane.xlu0 %693 }
 0x15a   : > { %6951 = vst [vmem:[#allocation87_spill] sm:$0xff] %v4436_v57  ;;  %6952 = vst [vmem:[#allocation88_spill] sm:$0xff] %v4438_v12  ;;  %1382 = vrot.lane.b32.xlu0 %v4432_v37, %s3552_s19 }
 0x15d   : > { %1380 = vrot.lane.b32.xlu1 %v4441_v8, %s3552_s19  ;;  %v4450_v49 = vpop.xlane.xlu1 %696  ;;  %v4452_v14 = vpop.xlane.xlu0 %699 }
 0x15e   : > { %6953 = vst [vmem:[#allocation89_spill] sm:$0xff] %v4450_v49  ;;  %6954 = vst [vmem:[#allocation90_spill] sm:$0xff] %v4452_v14  ;;  %1386 = vrot.lane.b32.xlu0 %v4446_v29, %s3552_s19  ;;  %v4469_v14 = vmul.f32 %v3435_v17, %v3435_v17  ;;  %v3438_v17 = vld [vmem:[%s3590_s18 + $0xe0] sm:$0xff] }
 0x15f   : > { %v4488_v13 = vmul.f32 %v3438_v17, %v3438_v17 }
 0x161   : > { %1384 = vrot.lane.b32.xlu1 %v4455_v46, %s3552_s19  ;;  %v4464_v41 = vpop.xlane.xlu1 %702  ;;  %v4466_v63 = vpop.xlane.xlu0 %705 }
 0x162   : > { %6955 = vst [vmem:[#allocation91_spill] sm:$0xff] %v4464_v41  ;;  %6956 = vst [vmem:[#allocation92_spill] sm:$0xff] %v4466_v63  ;;  %1390 = vrot.lane.b32.xlu0 %v4460_v21, %s3552_s19  ;;  %v3437_v41 = vld [vmem:[%s3590_s18 + $0xc8] sm:$0xff] }
 0x163   : > { %v4483_v63 = vmul.f32 %v3437_v41, %v3437_v41  ;;  %v3440_v41 = vld [vmem:[%s3590_s18 + $0xf0] sm:$0xff] }
 0x164   : > { %v4502_v0 = vmul.f32 %v3440_v41, %v3440_v41 }
 0x165   : > { %1388 = vrot.lane.b32.xlu1 %v4469_v14, %s3552_s19  ;;  %v4478_v33 = vpop.xlane.xlu1 %708  ;;  %v4480_v49 = vpop.xlane.xlu0 %711 }
 0x166   : > { %6957 = vst [vmem:[#allocation93_spill] sm:$0xff] %v4478_v33  ;;  %6958 = vst [vmem:[#allocation94_spill] sm:$0xff] %v4480_v49  ;;  %1394 = vrot.lane.b32.xlu0 %v4474_v22, %s3552_s19  ;;  %v3439_v33 = vld [vmem:[%s3590_s18 + $0xd8] sm:$0xff] }
 0x167   : > { %v4497_v49 = vmul.f32 %v3439_v33, %v3439_v33  ;;  %v3442_v33 = vld [vmem:[%s3590_s18 + $0x100] sm:$0xff] }
 0x168   : > { %v4516_v57 = vmul.f32 %v3442_v33, %v3442_v33 }
 0x169   : > { %1392 = vrot.lane.b32.xlu1 %v4483_v63, %s3552_s19  ;;  %v4492_v25 = vpop.xlane.xlu1 %714  ;;  %v4494_v12 = vpop.xlane.xlu0 %717 }
 0x16a   : > { %6959 = vst [vmem:[#allocation95_spill] sm:$0xff] %v4492_v25  ;;  %6960 = vst [vmem:[#allocation96_spill] sm:$0xff] %v4494_v12  ;;  %1398 = vrot.lane.b32.xlu0 %v4488_v13, %s3552_s19  ;;  %v3441_v25 = vld [vmem:[%s3590_s18 + $0xe8] sm:$0xff] }
 0x16b   : > { %v4511_v12 = vmul.f32 %v3441_v25, %v3441_v25  ;;  %v3444_v25 = vld [vmem:[%s3590_s18 + $0x110] sm:$0xff] }
 0x16c   : > { %v4530_v5 = vmul.f32 %v3444_v25, %v3444_v25 }
 0x16d   : > { %1396 = vrot.lane.b32.xlu1 %v4497_v49, %s3552_s19  ;;  %v4506_v17 = vpop.xlane.xlu1 %720  ;;  %v4508_v9 = vpop.xlane.xlu0 %723 }
 0x16e   : > { %6961 = vst [vmem:[#allocation97_spill] sm:$0xff] %v4506_v17  ;;  %6962 = vst [vmem:[#allocation98_spill] sm:$0xff] %v4508_v9  ;;  %1402 = vrot.lane.b32.xlu0 %v4502_v0, %s3552_s19  ;;  %v3443_v17 = vld [vmem:[%s3590_s18 + $0xf8] sm:$0xff] }
 0x16f   : > { %v4525_v9 = vmul.f32 %v3443_v17, %v3443_v17  ;;  %v3446_v17 = vld [vmem:[%s3590_s18 + $0x120] sm:$0xff] }
 0x170   : > { %v4544_v55 = vmul.f32 %v3446_v17, %v3446_v17 }
 0x171   : > { %1400 = vrot.lane.b32.xlu1 %v4511_v12, %s3552_s19  ;;  %v4520_v41 = vpop.xlane.xlu1 %726  ;;  %v4522_v62 = vpop.xlane.xlu0 %729 }
 0x172   : > { %6963 = vst [vmem:[#allocation99_spill] sm:$0xff] %v4520_v41  ;;  %6964 = vst [vmem:[#allocation100_spill] sm:$0xff] %v4522_v62  ;;  %1406 = vrot.lane.b32.xlu0 %v4516_v57, %s3552_s19  ;;  %v3445_v41 = vld [vmem:[%s3590_s18 + $0x108] sm:$0xff] }
 0x173   : > { %v4539_v62 = vmul.f32 %v3445_v41, %v3445_v41  ;;  %v3448_v41 = vld [vmem:[%s3590_s18 + $0x130] sm:$0xff] }
 0x174   : > { %v4558_v4 = vmul.f32 %v3448_v41, %v3448_v41 }
 0x175   : > { %1404 = vrot.lane.b32.xlu1 %v4525_v9, %s3552_s19  ;;  %v4534_v33 = vpop.xlane.xlu1 %732  ;;  %v4536_v2 = vpop.xlane.xlu0 %735 }
 0x176   : > { %6965 = vst [vmem:[#allocation101_spill] sm:$0xff] %v4534_v33  ;;  %6966 = vst [vmem:[#allocation102_spill] sm:$0xff] %v4536_v2  ;;  %1410 = vrot.lane.b32.xlu0 %v4530_v5, %s3552_s19  ;;  %v3447_v33 = vld [vmem:[%s3590_s18 + $0x118] sm:$0xff] }
 0x177   : > { %v4553_v2 = vmul.f32 %v3447_v33, %v3447_v33  ;;  %6970 = vst [vmem:[#allocation106_spill] sm:$0xff] %v4558_v4  ;;  %v3450_v33 = vld [vmem:[%s3590_s18 + $0x140] sm:$0xff] }
 0x178   : > { %v4572_v19 = vmul.f32 %v3450_v33, %v3450_v33 }
 0x179   : > { %1408 = vrot.lane.b32.xlu1 %v4539_v62, %s3552_s19  ;;  %v4548_v25 = vpop.xlane.xlu1 %738  ;;  %v4550_v20 = vpop.xlane.xlu0 %741  ;;  %6969 = vst [vmem:[#allocation105_spill] sm:$0xff] %v4553_v2 }
 0x17a   : > { %6967 = vst [vmem:[#allocation103_spill] sm:$0xff] %v4548_v25  ;;  %6968 = vst [vmem:[#allocation104_spill] sm:$0xff] %v4550_v20  ;;  %1414 = vrot.lane.b32.xlu0 %v4544_v55, %s3552_s19  ;;  %v3449_v25 = vld [vmem:[%s3590_s18 + $0x128] sm:$0xff] }
 0x17b   : > { %v4567_v20 = vmul.f32 %v3449_v25, %v3449_v25  ;;  %6974 = vst [vmem:[#allocation110_spill] sm:$0xff] %v4572_v19  ;;  %v3452_v25 = vld [vmem:[%s3590_s18 + $0x150] sm:$0xff] }
 0x17c   : > { %v4586_v47 = vmul.f32 %v3452_v25, %v3452_v25 }
 0x17d   : > { %1412 = vrot.lane.b32.xlu1 %v4553_v2, %s3552_s19  ;;  %v4562_v17 = vpop.xlane.xlu1 %744  ;;  %v4564_v28 = vpop.xlane.xlu0 %747  ;;  %6973 = vst [vmem:[#allocation109_spill] sm:$0xff] %v4567_v20 }
 0x17e   : > { %6971 = vst [vmem:[#allocation107_spill] sm:$0xff] %v4562_v17  ;;  %6972 = vst [vmem:[#allocation108_spill] sm:$0xff] %v4564_v28  ;;  %1418 = vrot.lane.b32.xlu0 %v4558_v4, %s3552_s19  ;;  %v3451_v17 = vld [vmem:[%s3590_s18 + $0x138] sm:$0xff] }
 0x17f   : > { %v4581_v28 = vmul.f32 %v3451_v17, %v3451_v17  ;;  %6978 = vst [vmem:[#allocation114_spill] sm:$0xff] %v4586_v47  ;;  %v3454_v17 = vld [vmem:[%s3590_s18 + $0x160] sm:$0xff] }
 0x180   : > { %v4600_v54 = vmul.f32 %v3454_v17, %v3454_v17 }
 0x181   : > { %1416 = vrot.lane.b32.xlu1 %v4567_v20, %s3552_s19  ;;  %v4576_v41 = vpop.xlane.xlu1 %750  ;;  %v4578_v36 = vpop.xlane.xlu0 %753  ;;  %6977 = vst [vmem:[#allocation113_spill] sm:$0xff] %v4581_v28 }
 0x182   : > { %6975 = vst [vmem:[#allocation111_spill] sm:$0xff] %v4576_v41  ;;  %6976 = vst [vmem:[#allocation112_spill] sm:$0xff] %v4578_v36  ;;  %1422 = vrot.lane.b32.xlu0 %v4572_v19, %s3552_s19  ;;  %v3453_v41 = vld [vmem:[%s3590_s18 + $0x148] sm:$0xff] }
 0x183   : > { %v4595_v36 = vmul.f32 %v3453_v41, %v3453_v41  ;;  %6982 = vst [vmem:[#allocation118_spill] sm:$0xff] %v4600_v54  ;;  %v3456_v41 = vld [vmem:[%s3590_s18 + $0x170] sm:$0xff] }
 0x184   : > { %v4614_v38 = vmul.f32 %v3456_v41, %v3456_v41 }
 0x185   : > { %1420 = vrot.lane.b32.xlu1 %v4581_v28, %s3552_s19  ;;  %v4590_v33 = vpop.xlane.xlu1 %756  ;;  %v4592_v35 = vpop.xlane.xlu0 %759  ;;  %6981 = vst [vmem:[#allocation117_spill] sm:$0xff] %v4595_v36 }
 0x186   : > { %6979 = vst [vmem:[#allocation115_spill] sm:$0xff] %v4590_v33  ;;  %6980 = vst [vmem:[#allocation116_spill] sm:$0xff] %v4592_v35  ;;  %1426 = vrot.lane.b32.xlu0 %v4586_v47, %s3552_s19  ;;  %v3455_v33 = vld [vmem:[%s3590_s18 + $0x158] sm:$0xff] }
 0x187   : > { %v4609_v35 = vmul.f32 %v3455_v33, %v3455_v33  ;;  %6986 = vst [vmem:[#allocation122_spill] sm:$0xff] %v4614_v38  ;;  %v3458_v33 = vld [vmem:[%s3590_s18 + $0x180] sm:$0xff] }
 0x188   : > { %v4628_v39 = vmul.f32 %v3458_v33, %v3458_v33 }
 0x189   : > { %1424 = vrot.lane.b32.xlu1 %v4595_v36, %s3552_s19  ;;  %v4604_v25 = vpop.xlane.xlu1 %762  ;;  %v4606_v44 = vpop.xlane.xlu0 %765  ;;  %6985 = vst [vmem:[#allocation121_spill] sm:$0xff] %v4609_v35 }
 0x18a   : > { %6983 = vst [vmem:[#allocation119_spill] sm:$0xff] %v4604_v25  ;;  %6984 = vst [vmem:[#allocation120_spill] sm:$0xff] %v4606_v44  ;;  %1430 = vrot.lane.b32.xlu0 %v4600_v54, %s3552_s19  ;;  %v3457_v25 = vld [vmem:[%s3590_s18 + $0x168] sm:$0xff] }
 0x18b   : > { %v4623_v44 = vmul.f32 %v3457_v25, %v3457_v25  ;;  %6990 = vst [vmem:[#allocation126_spill] sm:$0xff] %v4628_v39  ;;  %v3460_v25 = vld [vmem:[%s3590_s18 + $0x190] sm:$0xff] }
 0x18c   : > { %v4642_v15 = vmul.f32 %v3460_v25, %v3460_v25 }
 0x18d   : > { %1428 = vrot.lane.b32.xlu1 %v4609_v35, %s3552_s19  ;;  %v4618_v17 = vpop.xlane.xlu1 %768  ;;  %v4620_v52 = vpop.xlane.xlu0 %771  ;;  %6989 = vst [vmem:[#allocation125_spill] sm:$0xff] %v4623_v44 }
 0x18e   : > { %6987 = vst [vmem:[#allocation123_spill] sm:$0xff] %v4618_v17  ;;  %6988 = vst [vmem:[#allocation124_spill] sm:$0xff] %v4620_v52  ;;  %1434 = vrot.lane.b32.xlu0 %v4614_v38, %s3552_s19  ;;  %v3459_v17 = vld [vmem:[%s3590_s18 + $0x178] sm:$0xff] }
 0x18f   : > { %v4637_v52 = vmul.f32 %v3459_v17, %v3459_v17  ;;  %6994 = vst [vmem:[#allocation130_spill] sm:$0xff] %v4642_v15  ;;  %v3462_v17 = vld [vmem:[%s3590_s18 + $0x1a0] sm:$0xff] }
 0x190   : > { %v4656_v26 = vmul.f32 %v3462_v17, %v3462_v17 }
 0x191   : > { %1432 = vrot.lane.b32.xlu1 %v4623_v44, %s3552_s19  ;;  %v4632_v41 = vpop.xlane.xlu1 %774  ;;  %v4634_v60 = vpop.xlane.xlu0 %777  ;;  %6993 = vst [vmem:[#allocation129_spill] sm:$0xff] %v4637_v52 }
 0x192   : > { %6991 = vst [vmem:[#allocation127_spill] sm:$0xff] %v4632_v41  ;;  %6992 = vst [vmem:[#allocation128_spill] sm:$0xff] %v4634_v60  ;;  %1438 = vrot.lane.b32.xlu0 %v4628_v39, %s3552_s19  ;;  %v3461_v41 = vld [vmem:[%s3590_s18 + $0x188] sm:$0xff] }
 0x193   : > { %v4651_v60 = vmul.f32 %v3461_v41, %v3461_v41  ;;  %6998 = vst [vmem:[#allocation134_spill] sm:$0xff] %v4656_v26  ;;  %v3464_v41 = vld [vmem:[%s3590_s18 + $0x1b0] sm:$0xff] }
 0x194   : > { %v4670_v31 = vmul.f32 %v3464_v41, %v3464_v41 }
 0x195   : > { %1436 = vrot.lane.b32.xlu1 %v4637_v52, %s3552_s19  ;;  %v4646_v33 = vpop.xlane.xlu1 %780  ;;  %v4648_v6 = vpop.xlane.xlu0 %783  ;;  %6997 = vst [vmem:[#allocation133_spill] sm:$0xff] %v4651_v60 }
 0x196   : > { %6995 = vst [vmem:[#allocation131_spill] sm:$0xff] %v4646_v33  ;;  %6996 = vst [vmem:[#allocation132_spill] sm:$0xff] %v4648_v6  ;;  %1442 = vrot.lane.b32.xlu0 %v4642_v15, %s3552_s19  ;;  %v3463_v33 = vld [vmem:[%s3590_s18 + $0x198] sm:$0xff] }
 0x197   : > { %v4665_v6 = vmul.f32 %v3463_v33, %v3463_v33  ;;  %7002 = vst [vmem:[#allocation138_spill] sm:$0xff] %v4670_v31  ;;  %v3466_v33 = vld [vmem:[%s3590_s18 + $0x1c0] sm:$0xff] }
 0x198   : > { %v4684_v18 = vmul.f32 %v3466_v33, %v3466_v33 }
 0x199   : > { %1440 = vrot.lane.b32.xlu1 %v4651_v60, %s3552_s19  ;;  %v4660_v25 = vpop.xlane.xlu1 %786  ;;  %v4662_v59 = vpop.xlane.xlu0 %789  ;;  %7001 = vst [vmem:[#allocation137_spill] sm:$0xff] %v4665_v6 }
 0x19a   : > { %6999 = vst [vmem:[#allocation135_spill] sm:$0xff] %v4660_v25  ;;  %7000 = vst [vmem:[#allocation136_spill] sm:$0xff] %v4662_v59  ;;  %1446 = vrot.lane.b32.xlu0 %v4656_v26, %s3552_s19  ;;  %v3465_v25 = vld [vmem:[%s3590_s18 + $0x1a8] sm:$0xff] }
 0x19b   : > { %v4679_v59 = vmul.f32 %v3465_v25, %v3465_v25  ;;  %7006 = vst [vmem:[#allocation142_spill] sm:$0xff] %v4684_v18  ;;  %v3468_v25 = vld [vmem:[%s3590_s18 + $0x1d0] sm:$0xff] }
 0x19c   : > { %v4698_v10 = vmul.f32 %v3468_v25, %v3468_v25 }
 0x19d   : > { %1444 = vrot.lane.b32.xlu1 %v4665_v6, %s3552_s19  ;;  %v4674_v17 = vpop.xlane.xlu1 %792  ;;  %v4676_v51 = vpop.xlane.xlu0 %795  ;;  %7005 = vst [vmem:[#allocation141_spill] sm:$0xff] %v4679_v59 }
 0x19e   : > { %7003 = vst [vmem:[#allocation139_spill] sm:$0xff] %v4674_v17  ;;  %7004 = vst [vmem:[#allocation140_spill] sm:$0xff] %v4676_v51  ;;  %1450 = vrot.lane.b32.xlu0 %v4670_v31, %s3552_s19  ;;  %v3467_v17 = vld [vmem:[%s3590_s18 + $0x1b8] sm:$0xff] }
 0x19f   : > { %v4693_v51 = vmul.f32 %v3467_v17, %v3467_v17  ;;  %7010 = vst [vmem:[#allocation146_spill] sm:$0xff] %v4698_v10  ;;  %v3470_v17 = vld [vmem:[%s3590_s18 + $0x1e0] sm:$0xff] }
 0x1a1   : > { %1448 = vrot.lane.b32.xlu1 %v4679_v59, %s3552_s19  ;;  %v4688_v41 = vpop.xlane.xlu1 %798  ;;  %v4690_v30 = vpop.xlane.xlu0 %801  ;;  %7009 = vst [vmem:[#allocation145_spill] sm:$0xff] %v4693_v51 }
 0x1a2   : > { %7007 = vst [vmem:[#allocation143_spill] sm:$0xff] %v4688_v41  ;;  %7008 = vst [vmem:[#allocation144_spill] sm:$0xff] %v4690_v30  ;;  %1454 = vrot.lane.b32.xlu0 %v4684_v18, %s3552_s19  ;;  %v3469_v41 = vld [vmem:[%s3590_s18 + $0x1c8] sm:$0xff]  ;;  %v4712_v18 = vmul.f32 %v3470_v17, %v3470_v17 }
 0x1a3   : > { %v4707_v30 = vmul.f32 %v3469_v41, %v3469_v41  ;;  %v3472_v41 = vld [vmem:[%s3590_s18 + $0x1f0] sm:$0xff] }
 0x1a4   : > { %7014 = vst [vmem:[#allocation150_spill] sm:$0xff] %v4712_v18  ;;  %v4726_v59 = vmul.f32 %v3472_v41, %v3472_v41 }
 0x1a5   : > { %1452 = vrot.lane.b32.xlu1 %v4693_v51, %s3552_s19  ;;  %v4702_v33 = vpop.xlane.xlu1 %804  ;;  %v4704_v23 = vpop.xlane.xlu0 %807  ;;  %7013 = vst [vmem:[#allocation149_spill] sm:$0xff] %v4707_v30 }
 0x1a6   : > { %7011 = vst [vmem:[#allocation147_spill] sm:$0xff] %v4702_v33  ;;  %7012 = vst [vmem:[#allocation148_spill] sm:$0xff] %v4704_v23  ;;  %1458 = vrot.lane.b32.xlu0 %v4698_v10, %s3552_s19  ;;  %v3471_v33 = vld [vmem:[%s3590_s18 + $0x1d8] sm:$0xff]  ;;  %v3473_v10 = vld [vmem:[%s3590_s18 + $0x1e8] sm:$0xff] }
 0x1a7   : > { %v4721_v23 = vmul.f32 %v3471_v33, %v3471_v33  ;;  %7018 = vst [vmem:[#allocation154_spill] sm:$0xff] %v4726_v59 }
 0x1a9   : > { %1456 = vrot.lane.b32.xlu1 %v4707_v30, %s3552_s19  ;;  %v4716_v25 = vpop.xlane.xlu1 %810  ;;  %v4718_v51 = vpop.xlane.xlu0 %813  ;;  %7017 = vst [vmem:[#allocation153_spill] sm:$0xff] %v4721_v23 }
 0x1aa   : > { %7015 = vst [vmem:[#allocation151_spill] sm:$0xff] %v4716_v25  ;;  %7016 = vst [vmem:[#allocation152_spill] sm:$0xff] %v4718_v51  ;;  %1462 = vrot.lane.b32.xlu0 %v4712_v18, %s3552_s19  ;;  %v4733_v25 = vmul.f32 %v3473_v10, %v3473_v10  ;;  %v3474_v18 = vld [vmem:[%s3590_s18 + $0x1f8] sm:$0xff] }
 0x1ab   : > { %v4740_v41 = vmul.f32 %v3474_v18, %v3474_v18 }
 0x1ac   : > { %7020 = vst [vmem:[#allocation156_spill] sm:$0xff] %v4733_v25 }
 0x1ad   : > { %1460 = vrot.lane.b32.xlu1 %v4721_v23, %s3552_s19  ;;  %v4730_v17 = vpop.xlane.xlu1 %816  ;;  %v1343_v30 = vpop.permute.xlu0 %1342  ;;  %7021 = vst [vmem:[#allocation157_spill] sm:$0xff] %v4740_v41 }
 0x1ae   : > { %7019 = vst [vmem:[#allocation155_spill] sm:$0xff] %v4730_v17  ;;  %1466 = vrot.lane.b32.xlu0 %v4726_v59, %s3552_s19  ;;  %v1535_v44 = vsel %vm1534_vm1, %v1343_v30, 0.0 }
 0x1b1   : > { %1464 = vrot.lane.b32.xlu1 %v4733_v25, %s3552_s19  ;;  %v1345_v33 = vpop.permute.xlu1 %1344  ;;  %v1351_v51 = vpop.permute.xlu0 %1350 }
 0x1b2   : > { %v1538_v19 = vsel %vm1534_vm1, %v1345_v33, 0.0  ;;  %v1547_v20 = vsel %vm1534_vm1, %v1351_v51, 0.0 }
 0x1b5   : > { %1468 = vrot.lane.b32.xlu1 %v4740_v41, %s3552_s19  ;;  %v1347_v23 = vpop.permute.xlu1 %1346  ;;  %v1355_v17 = vpop.permute.xlu0 %1354 }
 0x1b6   : > { %v1541_v41 = vsel %vm1534_vm1, %v1347_v23, 0.0  ;;  %v1553_v23 = vsel %vm1534_vm1, %v1355_v17, 0.0 }
 0x1b9   : > { %v1349_v31 = vpop.permute.xlu1 %1348  ;;  %v1359_v6 = vpop.permute.xlu0 %1358 }
 0x1ba   : > { %v1544_v36 = vsel %vm1534_vm1, %v1349_v31, 0.0 }
 0x1bd   : > { %v1353_v10 = vpop.permute.xlu1 %1352  ;;  %v1363_v26 = vpop.permute.xlu0 %1362 }
 0x1c1   : > { %v1357_v60 = vpop.permute.xlu1 %1356  ;;  %v1367_v15 = vpop.permute.xlu0 %1366 }
 0x1c2   : > { %v1556_v31 = vsel %vm1534_vm1, %v1357_v60, 0.0 }
 0x1c5   : > { %v1361_v59 = vpop.permute.xlu1 %1360  ;;  %v1371_v52 = vpop.permute.xlu0 %1370 }
 0x1c9   : > { %v1365_v39 = vpop.permute.xlu1 %1364  ;;  %v1375_v25 = vpop.permute.xlu0 %1374 }
 0x1ca   : > { %v1568_v17 = vsel %vm1534_vm1, %v1365_v39, 0.0 }
 0x1cd   : > { %v1369_v18 = vpop.permute.xlu1 %1368  ;;  %1536 = vadd.xlane.f32.xlu0 %v1535_v44  ;;  %v1379_v38 = vpop.permute.xlu0 %1378  ;;  %v1550_v44 = vsel %vm1534_vm1, %v1353_v10, 0.0 }
 0x1d1   : > { %v1373_v35 = vpop.permute.xlu1 %1372  ;;  %1542 = vadd.xlane.f32.xlu0 %v1541_v41  ;;  %v1383_v54 = vpop.permute.xlu0 %1382 }
 0x1d5   : > { %v1377_v47 = vpop.permute.xlu1 %1376  ;;  %1545 = vadd.xlane.f32.xlu0 %v1544_v36  ;;  %v1387_v28 = vpop.permute.xlu0 %1386  ;;  %v1559_v36 = vsel %vm1534_vm1, %v1359_v6, 0.0  ;;  %v1574_v6 = vsel %vm1534_vm1, %v1369_v18, 0.0 }
 0x1d9   : > { %1539 = vadd.xlane.f32.xlu1 %v1538_v19  ;;  %v1381_v4 = vpop.permute.xlu1 %1380  ;;  %1548 = vadd.xlane.f32.xlu0 %v1547_v20  ;;  %v1391_v30 = vpop.permute.xlu0 %1390  ;;  %v1562_v19 = vsel %vm1534_vm1, %v1361_v59, 0.0  ;;  %v1565_v20 = vsel %vm1534_vm1, %v1363_v26, 0.0  ;;  %v1580_v26 = vsel %vm1534_vm1, %v1373_v35, 0.0 }
 0x1dd   : > { %1551 = vadd.xlane.f32.xlu1 %v1550_v44  ;;  %v1385_v41 = vpop.permute.xlu1 %1384  ;;  %1554 = vadd.xlane.f32.xlu0 %v1553_v23  ;;  %v1395_v2 = vpop.permute.xlu0 %1394  ;;  %v1571_v44 = vsel %vm1534_vm1, %v1367_v15, 0.0  ;;  %v1586_v15 = vsel %vm1534_vm1, %v1377_v47, 0.0 }
 0x1e1   : > { %1557 = vadd.xlane.f32.xlu1 %v1556_v31  ;;  %v1389_v33 = vpop.permute.xlu1 %1388  ;;  %1560 = vadd.xlane.f32.xlu0 %v1559_v36  ;;  %v1399_v51 = vpop.permute.xlu0 %1398  ;;  %v1577_v31 = vsel %vm1534_vm1, %v1371_v52, 0.0  ;;  %v1592_v52 = vsel %vm1534_vm1, %v1381_v4, 0.0  ;;  %v1613_v4 = vsel %vm1534_vm1, %v1395_v2, 0.0 }
 0x1e5   : > { %1563 = vadd.xlane.f32.xlu1 %v1562_v19  ;;  %v1393_v10 = vpop.permute.xlu1 %1392  ;;  %1566 = vadd.xlane.f32.xlu0 %v1565_v20  ;;  %v1403_v23 = vpop.permute.xlu0 %1402  ;;  %v1583_v19 = vsel %vm1534_vm1, %v1375_v25, 0.0  ;;  %v1589_v20 = vsel %vm1534_vm1, %v1379_v38, 0.0  ;;  %v1598_v25 = vsel %vm1534_vm1, %v1385_v41, 0.0  ;;  %v1604_v38 = vsel %vm1534_vm1, %v1389_v33, 0.0 }
 0x1e9   : > { %1569 = vadd.xlane.f32.xlu1 %v1568_v17  ;;  %v1397_v60 = vpop.permute.xlu1 %1396  ;;  %1572 = vadd.xlane.f32.xlu0 %v1571_v44  ;;  %v1407_v59 = vpop.permute.xlu0 %1406  ;;  %v1595_v44 = vsel %vm1534_vm1, %v1383_v54, 0.0  ;;  %v1610_v54 = vsel %vm1534_vm1, %v1393_v10, 0.0 }
 0x1ea   : > { %v1631_v10 = vsel %vm1534_vm1, %v1407_v59, 0.0 }
 0x1ed   : > { %1575 = vadd.xlane.f32.xlu1 %v1574_v6  ;;  %v1401_v36 = vpop.permute.xlu1 %1400  ;;  %1578 = vadd.xlane.f32.xlu0 %v1577_v31  ;;  %v1411_v17 = vpop.permute.xlu0 %1410  ;;  %v1601_v31 = vsel %vm1534_vm1, %v1387_v28, 0.0  ;;  %v1616_v28 = vsel %vm1534_vm1, %v1397_v60, 0.0 }
 0x1f1   : > { %1581 = vadd.xlane.f32.xlu1 %v1580_v26  ;;  %v1405_v39 = vpop.permute.xlu1 %1404  ;;  %1584 = vadd.xlane.f32.xlu0 %v1583_v19  ;;  %v1415_v35 = vpop.permute.xlu0 %1414  ;;  %v1607_v26 = vsel %vm1534_vm1, %v1391_v30, 0.0  ;;  %v1622_v30 = vsel %vm1534_vm1, %v1401_v36, 0.0 }
 0x1f2   : > { %v1628_v2 = vsel %vm1534_vm1, %v1405_v39, 0.0 }
 0x1f5   : > { %1587 = vadd.xlane.f32.xlu1 %v1586_v15  ;;  %v1409_v18 = vpop.permute.xlu1 %1408  ;;  %1590 = vadd.xlane.f32.xlu0 %v1589_v20  ;;  %v1419_v19 = vpop.permute.xlu0 %1418  ;;  %v1619_v20 = vsel %vm1534_vm1, %v1399_v51, 0.0 }
 0x1f6   : > { %v1634_v51 = vsel %vm1534_vm1, %v1409_v18, 0.0  ;;  %v1649_v39 = vsel %vm1534_vm1, %v1419_v19, 0.0 }
 0x1f9   : > { %1593 = vadd.xlane.f32.xlu1 %v1592_v52  ;;  %v1413_v6 = vpop.permute.xlu1 %1412  ;;  %1596 = vadd.xlane.f32.xlu0 %v1595_v44  ;;  %v1423_v41 = vpop.permute.xlu0 %1422  ;;  %v1625_v52 = vsel %vm1534_vm1, %v1403_v23, 0.0 }
 0x1fa   : > { %v1640_v23 = vsel %vm1534_vm1, %v1413_v6, 0.0 }
 0x1fd   : > { %1599 = vadd.xlane.f32.xlu1 %v1598_v25  ;;  %1602 = vadd.xlane.f32.xlu0 %v1601_v31  ;;  %v1417_v47 = vpop.permute.xlu1 %1416  ;;  %v1427_v44 = vpop.permute.xlu0 %1426  ;;  %v1637_v31 = vsel %vm1534_vm1, %v1411_v17, 0.0 }
 0x1fe   : > { %v1646_v59 = vsel %vm1534_vm1, %v1417_v47, 0.0 }
 0x201   : > { %1605 = vadd.xlane.f32.xlu1 %v1604_v38  ;;  %1608 = vadd.xlane.f32.xlu0 %v1607_v26  ;;  %v1421_v15 = vpop.permute.xlu1 %1420  ;;  %v1431_v60 = vpop.permute.xlu0 %1430  ;;  %v1643_v38 = vsel %vm1534_vm1, %v1415_v35, 0.0 }
 0x202   : > { %v1652_v17 = vsel %vm1534_vm1, %v1421_v15, 0.0  ;;  %v1667_v19 = vsel %vm1534_vm1, %v1431_v60, 0.0 }
 0x205   : > { %1611 = vadd.xlane.f32.xlu1 %v1610_v54  ;;  %1614 = vadd.xlane.f32.xlu0 %v1613_v4  ;;  %v1425_v33 = vpop.permute.xlu1 %1424  ;;  %v1435_v26 = vpop.permute.xlu0 %1434  ;;  %v1655_v4 = vsel %vm1534_vm1, %v1423_v41, 0.0 }
 0x206   : > { %v1658_v35 = vsel %vm1534_vm1, %v1425_v33, 0.0 }
 0x209   : > { %1617 = vadd.xlane.f32.xlu1 %v1616_v28  ;;  %1620 = vadd.xlane.f32.xlu0 %v1619_v20  ;;  %v1429_v25 = vpop.permute.xlu1 %1428  ;;  %v1439_v18 = vpop.permute.xlu0 %1438  ;;  %v1661_v28 = vsel %vm1534_vm1, %v1427_v44, 0.0 }
 0x20a   : > { %v1664_v47 = vsel %vm1534_vm1, %v1429_v25, 0.0 }
 0x20d   : > { %1623 = vadd.xlane.f32.xlu1 %v1622_v30  ;;  %1626 = vadd.xlane.f32.xlu0 %v1625_v52  ;;  %v1433_v36 = vpop.permute.xlu1 %1432  ;;  %v1443_v20 = vpop.permute.xlu0 %1442  ;;  %v1673_v52 = vsel %vm1534_vm1, %v1435_v26, 0.0 }
 0x20e   : > { %v1670_v41 = vsel %vm1534_vm1, %v1433_v36, 0.0  ;;  %v1685_v60 = vsel %vm1534_vm1, %v1443_v20, 0.0 }
 0x211   : > { %1629 = vadd.xlane.f32.xlu1 %v1628_v2  ;;  %1632 = vadd.xlane.f32.xlu0 %v1631_v10  ;;  %v1437_v54 = vpop.permute.xlu1 %1436  ;;  %v1447_v15 = vpop.permute.xlu0 %1446  ;;  %v1679_v2 = vsel %vm1534_vm1, %v1439_v18, 0.0 }
 0x212   : > { %v1676_v44 = vsel %vm1534_vm1, %v1437_v54, 0.0 }
 0x215   : > { %1635 = vadd.xlane.f32.xlu1 %v1634_v51  ;;  %1638 = vadd.xlane.f32.xlu0 %v1637_v31  ;;  %v1441_v6 = vpop.permute.xlu1 %1440  ;;  %v1451_v10 = vpop.permute.xlu0 %1450 }
 0x216   : > { %v1682_v25 = vsel %vm1534_vm1, %v1441_v6, 0.0 }
 0x219   : > { %1641 = vadd.xlane.f32.xlu1 %v1640_v23  ;;  %1644 = vadd.xlane.f32.xlu0 %v1643_v38  ;;  %v1445_v30 = vpop.permute.xlu1 %1444  ;;  %v1455_v31 = vpop.permute.xlu0 %1454  ;;  %v1691_v23 = vsel %vm1534_vm1, %v1447_v15, 0.0 }
 0x21a   : > { %v1688_v36 = vsel %vm1534_vm1, %v1445_v30, 0.0  ;;  %v1703_v18 = vsel %vm1534_vm1, %v1455_v31, 0.0 }
 0x21d   : > { %1647 = vadd.xlane.f32.xlu1 %v1646_v59  ;;  %1650 = vadd.xlane.f32.xlu0 %v1649_v39  ;;  %v1449_v33 = vpop.permute.xlu1 %1448  ;;  %v1697_v59 = vsel %vm1534_vm1, %v1451_v10, 0.0  ;;  %v1459_v39 = vpop.permute.xlu0 %1458 }
 0x21e   : > { %v1694_v26 = vsel %vm1534_vm1, %v1449_v33, 0.0 }
 0x221   : > { %1653 = vadd.xlane.f32.xlu1 %v1652_v17  ;;  %1656 = vadd.xlane.f32.xlu0 %v1655_v4  ;;  %v1453_v51 = vpop.permute.xlu1 %1452  ;;  %v1463_v4 = vpop.permute.xlu0 %1462 }
 0x222   : > { %v1700_v54 = vsel %vm1534_vm1, %v1453_v51, 0.0 }
 0x225   : > { %1659 = vadd.xlane.f32.xlu1 %v1658_v35  ;;  %1662 = vadd.xlane.f32.xlu0 %v1661_v28  ;;  %v1457_v38 = vpop.permute.xlu1 %1456  ;;  %v1709_v35 = vsel %vm1534_vm1, %v1459_v39, 0.0 }
 0x226   : > { %v1706_v6 = vsel %vm1534_vm1, %v1457_v38, 0.0 }
 0x229   : > { %1665 = vadd.xlane.f32.xlu1 %v1664_v47  ;;  %1668 = vadd.xlane.f32.xlu0 %v1667_v19  ;;  %v1461_v17 = vpop.permute.xlu1 %1460  ;;  %v1715_v47 = vsel %vm1534_vm1, %v1463_v4, 0.0  ;;  %v1467_v19 = vpop.permute.xlu0 %1466 }
 0x22a   : > { %v1712_v20 = vsel %vm1534_vm1, %v1461_v17, 0.0  ;;  %v1721_v15 = vsel %vm1534_vm1, %v1467_v19, 0.0  ;;  %v7064_v19 = vld [vmem:[#allocation125_spill] sm:$0xff] }
 0x22d   : > { %1671 = vadd.xlane.f32.xlu1 %v1670_v41  ;;  %1674 = vadd.xlane.f32.xlu0 %v1673_v52  ;;  %v1465_v28 = vpop.permute.xlu1 %1464 }
 0x22e   : > { %v1718_v30 = vsel %vm1534_vm1, %v1465_v28, 0.0 }
 0x231   : > { %1677 = vadd.xlane.f32.xlu1 %v1676_v44  ;;  %1680 = vadd.xlane.f32.xlu0 %v1679_v2  ;;  %v1469_v41 = vpop.permute.xlu1 %1468 }
 0x232   : > { %v1724_v52 = vsel %vm1534_vm1, %v1469_v41, 0.0  ;;  %v7067_v41 = vld [vmem:[#allocation126_spill] sm:$0xff] }
 0x235   : > { %1683 = vadd.xlane.f32.xlu1 %v1682_v25  ;;  %1686 = vadd.xlane.f32.xlu0 %v1685_v60 }
 0x239   : > { %1689 = vadd.xlane.f32.xlu1 %v1688_v36  ;;  %1692 = vadd.xlane.f32.xlu0 %v1691_v23  ;;  %v7047_v23 = vld [vmem:[#allocation106_spill] sm:$0xff] }
 0x23d   : > { %1695 = vadd.xlane.f32.xlu1 %v1694_v26  ;;  %1698 = vadd.xlane.f32.xlu0 %v1697_v59  ;;  %v7051_v26 = vld [vmem:[#allocation110_spill] sm:$0xff] }
 0x241   : > { %1701 = vadd.xlane.f32.xlu1 %v1700_v54  ;;  %1704 = vadd.xlane.f32.xlu0 %v1703_v18  ;;  %v7055_v54 = vld [vmem:[#allocation114_spill] sm:$0xff]  ;;  %v7056_v18 = vld [vmem:[#allocation117_spill] sm:$0xff] }
 0x245   : > { %1707 = vadd.xlane.f32.xlu1 %v1706_v6  ;;  %1710 = vadd.xlane.f32.xlu0 %v1709_v35  ;;  %v7059_v6 = vld [vmem:[#allocation118_spill] sm:$0xff]  ;;  %v7060_v35 = vld [vmem:[#allocation121_spill] sm:$0xff] }
 0x249   : > { %1713 = vadd.xlane.f32.xlu1 %v1712_v20  ;;  %1716 = vadd.xlane.f32.xlu0 %v1715_v47  ;;  %v7063_v47 = vld [vmem:[#allocation122_spill] sm:$0xff] }
 0x24d   : > { %1719 = vadd.xlane.f32.xlu1 %v1718_v30  ;;  %1722 = vadd.xlane.f32.xlu0 %v1721_v15 }
 0x251   : > { %1725 = vadd.xlane.f32.xlu1 %v1724_v52  ;;  %v7068_v52 = vld [vmem:[#allocation129_spill] sm:$0xff] }
 0x256   : > { %v4808_v33 = vpop.xlane.xlu0 %1536 }
 0x25a   : > { %v4810_v44 = vpop.xlane.xlu0 %1542 }
 0x25e   : > { %v4812_v2 = vpop.xlane.xlu0 %1545 }
 0x262   : > { %2050 = vrot.lane.b32.xlu1 %v4303_v50, %s3553_s20  ;;  %v4816_v10 = vpop.xlane.xlu1 %1539  ;;  %v4818_v25 = vpop.xlane.xlu0 %1548 }
 0x263   : > { %2048 = vrot.lane.b32.xlu0 %v4306_v42, %s3553_s20 }
 0x266   : > { %2052 = vrot.lane.b32.xlu1 %v4315_v34, %s3553_s20  ;;  %v4824_v60 = vpop.xlane.xlu1 %1551  ;;  %v4826_v51 = vpop.xlane.xlu0 %1554 }
 0x267   : > { %2056 = vrot.lane.b32.xlu0 %v4320_v1, %s3553_s20 }
 0x26a   : > { %2054 = vrot.lane.b32.xlu1 %v4329_v7, %s3553_s20  ;;  %v4832_v50 = vpop.xlane.xlu1 %1557  ;;  %v4834_v31 = vpop.xlane.xlu0 %1560 }
 0x26b   : > { %2060 = vrot.lane.b32.xlu0 %v4334_v58, %s3553_s20 }
 0x26e   : > { %2058 = vrot.lane.b32.xlu1 %v4343_v3, %s3553_s20  ;;  %v4840_v42 = vpop.xlane.xlu1 %1563  ;;  %v4842_v34 = vpop.xlane.xlu0 %1566 }
 0x26f   : > { %2064 = vrot.lane.b32.xlu0 %v4348_v43, %s3553_s20 }
 0x272   : > { %2062 = vrot.lane.b32.xlu1 %v4357_v56, %s3553_s20  ;;  %v4848_v7 = vpop.xlane.xlu1 %1569  ;;  %v4850_v1 = vpop.xlane.xlu0 %1572 }
 0x273   : > { %2068 = vrot.lane.b32.xlu0 %v4362_v27, %s3553_s20 }
 0x276   : > { %2066 = vrot.lane.b32.xlu1 %v4371_v48, %s3553_s20  ;;  %v4856_v3 = vpop.xlane.xlu1 %1575  ;;  %v4858_v58 = vpop.xlane.xlu0 %1578 }
 0x277   : > { %2072 = vrot.lane.b32.xlu0 %v4376_v11, %s3553_s20 }
 0x27a   : > { %2070 = vrot.lane.b32.xlu1 %v4385_v40, %s3553_s20  ;;  %v4864_v56 = vpop.xlane.xlu1 %1581  ;;  %v4866_v43 = vpop.xlane.xlu0 %1584 }
 0x27b   : > { %2076 = vrot.lane.b32.xlu0 %v4390_v61, %s3553_s20 }
 0x27e   : > { %2074 = vrot.lane.b32.xlu1 %v4399_v32, %s3553_s20  ;;  %v4872_v48 = vpop.xlane.xlu1 %1587  ;;  %v4874_v27 = vpop.xlane.xlu0 %1590 }
 0x27f   : > { %7022 = vst [vmem:[#allocation158_spill] sm:$0xff] %v4872_v48  ;;  %7023 = vst [vmem:[#allocation159_spill] sm:$0xff] %v4874_v27  ;;  %2080 = vrot.lane.b32.xlu0 %v4404_v53, %s3553_s20 }
 0x282   : > { %2078 = vrot.lane.b32.xlu1 %v4413_v24, %s3553_s20  ;;  %v4880_v40 = vpop.xlane.xlu1 %1593  ;;  %v4882_v11 = vpop.xlane.xlu0 %1596 }
 0x283   : > { %7024 = vst [vmem:[#allocation160_spill] sm:$0xff] %v4880_v40  ;;  %7025 = vst [vmem:[#allocation161_spill] sm:$0xff] %v4882_v11  ;;  %2084 = vrot.lane.b32.xlu0 %v4418_v45, %s3553_s20  ;;  %v7127_v40 = vld [vmem:[#allocation22_spill] sm:$0xff] }
 0x286   : > { %2082 = vrot.lane.b32.xlu1 %v4427_v16, %s3553_s20  ;;  %v4888_v32 = vpop.xlane.xlu1 %1599  ;;  %v4890_v61 = vpop.xlane.xlu0 %1602 }
 0x287   : > { %7026 = vst [vmem:[#allocation162_spill] sm:$0xff] %v4888_v32  ;;  %7027 = vst [vmem:[#allocation163_spill] sm:$0xff] %v4890_v61  ;;  %2088 = vrot.lane.b32.xlu0 %v4432_v37, %s3553_s20 }
 0x28a   : > { %2086 = vrot.lane.b32.xlu1 %v4441_v8, %s3553_s20  ;;  %v4896_v24 = vpop.xlane.xlu1 %1605  ;;  %v4898_v53 = vpop.xlane.xlu0 %1608 }
 0x28b   : > { %7028 = vst [vmem:[#allocation164_spill] sm:$0xff] %v4896_v24  ;;  %7029 = vst [vmem:[#allocation165_spill] sm:$0xff] %v4898_v53  ;;  %2092 = vrot.lane.b32.xlu0 %v4446_v29, %s3553_s20  ;;  %v7122_v24 = vld [vmem:[#allocation19_spill] sm:$0xff] }
 0x28e   : > { %2090 = vrot.lane.b32.xlu1 %v4455_v46, %s3553_s20  ;;  %v4904_v16 = vpop.xlane.xlu1 %1611  ;;  %v4906_v45 = vpop.xlane.xlu0 %1614 }
 0x28f   : > { %7030 = vst [vmem:[#allocation166_spill] sm:$0xff] %v4904_v16  ;;  %7031 = vst [vmem:[#allocation167_spill] sm:$0xff] %v4906_v45  ;;  %2096 = vrot.lane.b32.xlu0 %v4460_v21, %s3553_s20  ;;  %v7121_v16 = vld [vmem:[#allocation18_spill] sm:$0xff] }
 0x292   : > { %2094 = vrot.lane.b32.xlu1 %v4469_v14, %s3553_s20  ;;  %v4912_v8 = vpop.xlane.xlu1 %1617  ;;  %v4914_v37 = vpop.xlane.xlu0 %1620 }
 0x293   : > { %7032 = vst [vmem:[#allocation168_spill] sm:$0xff] %v4912_v8  ;;  %7033 = vst [vmem:[#allocation169_spill] sm:$0xff] %v4914_v37  ;;  %2100 = vrot.lane.b32.xlu0 %v4474_v22, %s3553_s20 }
 0x296   : > { %2098 = vrot.lane.b32.xlu1 %v4483_v63, %s3553_s20  ;;  %v4920_v46 = vpop.xlane.xlu1 %1623  ;;  %v4922_v29 = vpop.xlane.xlu0 %1626 }
 0x297   : > { %7034 = vst [vmem:[#allocation170_spill] sm:$0xff] %v4920_v46  ;;  %7035 = vst [vmem:[#allocation171_spill] sm:$0xff] %v4922_v29  ;;  %2104 = vrot.lane.b32.xlu0 %v4488_v13, %s3553_s20 }
 0x29a   : > { %2102 = vrot.lane.b32.xlu1 %v4497_v49, %s3553_s20  ;;  %v4928_v21 = vpop.xlane.xlu1 %1629  ;;  %v4930_v14 = vpop.xlane.xlu0 %1632 }
 0x29b   : > { %7036 = vst [vmem:[#allocation172_spill] sm:$0xff] %v4928_v21  ;;  %7037 = vst [vmem:[#allocation173_spill] sm:$0xff] %v4930_v14  ;;  %2108 = vrot.lane.b32.xlu0 %v4502_v0, %s3553_s20  ;;  %v7116_v14 = vld [vmem:[#allocation83_spill] sm:$0xff] }
 0x29c   : > { %v835_v21 = vmul.f32 0.125, %v7116_v14  ;;  %v7119_v14 = vld [vmem:[#allocation85_spill] sm:$0xff] }
 0x29e   : > { %2106 = vrot.lane.b32.xlu1 %v4511_v12, %s3553_s20  ;;  %v4936_v22 = vpop.xlane.xlu1 %1635  ;;  %v4938_v63 = vpop.xlane.xlu0 %1638  ;;  %v899_v32 = vadd.f32 1e-05, %v835_v21 }
 0x29f   : > { %7038 = vst [vmem:[#allocation174_spill] sm:$0xff] %v4936_v22  ;;  %7039 = vst [vmem:[#allocation175_spill] sm:$0xff] %v4938_v63  ;;  %2112 = vrot.lane.b32.xlu0 %v4516_v57, %s3553_s20  ;;  %v7044_v57 = vld [vmem:[#allocation105_spill] sm:$0xff] }
 0x2a2   : > { %2110 = vrot.lane.b32.xlu1 %v4525_v9, %s3553_s20  ;;  %v4944_v13 = vpop.xlane.xlu1 %1641  ;;  %v4946_v49 = vpop.xlane.xlu0 %1644 }
 0x2a3   : > { %7040 = vst [vmem:[#allocation176_spill] sm:$0xff] %v4944_v13  ;;  %7041 = vst [vmem:[#allocation177_spill] sm:$0xff] %v4946_v49  ;;  %2116 = vrot.lane.b32.xlu0 %v4530_v5, %s3553_s20  ;;  %v7048_v5 = vld [vmem:[#allocation109_spill] sm:$0xff] }
 0x2a6   : > { %2114 = vrot.lane.b32.xlu1 %v4539_v62, %s3553_s20  ;;  %v4952_v0 = vpop.xlane.xlu1 %1647  ;;  %v4954_v12 = vpop.xlane.xlu0 %1650 }
 0x2a7   : > { %7042 = vst [vmem:[#allocation178_spill] sm:$0xff] %v4952_v0  ;;  %7043 = vst [vmem:[#allocation179_spill] sm:$0xff] %v4954_v12  ;;  %2120 = vrot.lane.b32.xlu0 %v4544_v55, %s3553_s20  ;;  %v7052_v55 = vld [vmem:[#allocation113_spill] sm:$0xff]  ;;  %v7109_v12 = vld [vmem:[#allocation78_spill] sm:$0xff] }
 0x2a8   : > { %v830_v0 = vmul.f32 0.125, %v7109_v12  ;;  %v5105_v12 = vld [vmem:[%s6711_s1] ss:$0 sm:$0xff] }
 0x2aa   : > { %2118 = vrot.lane.b32.xlu1 %v7044_v57, %s3553_s20  ;;  %v4960_v9 = vpop.xlane.xlu1 %1653  ;;  %v4962_v36 = vpop.xlane.xlu0 %1656 }
 0x2ab   : > { %7045 = vst [vmem:[#allocation105_spill] sm:$0xff] %v4960_v9  ;;  %7046 = vst [vmem:[#allocation180_spill] sm:$0xff] %v4962_v36  ;;  %2124 = vrot.lane.b32.xlu0 %v7047_v23, %s3553_s20  ;;  %v7106_v9 = vld [vmem:[#allocation75_spill] sm:$0xff] }
 0x2ae   : > { %2122 = vrot.lane.b32.xlu1 %v7048_v5, %s3553_s20  ;;  %v4968_v62 = vpop.xlane.xlu1 %1659  ;;  %v4970_v38 = vpop.xlane.xlu0 %1662  ;;  %v7071_v5 = vld [vmem:[#allocation130_spill] sm:$0xff] }
 0x2af   : > { %7049 = vst [vmem:[#allocation106_spill] sm:$0xff] %v4968_v62  ;;  %7050 = vst [vmem:[#allocation109_spill] sm:$0xff] %v4970_v38  ;;  %2128 = vrot.lane.b32.xlu0 %v7051_v26, %s3553_s20  ;;  %v7072_v26 = vld [vmem:[#allocation133_spill] sm:$0xff]  ;;  %v7105_v38 = vld [vmem:[#allocation74_spill] sm:$0xff] }
 0x2b2   : > { %2126 = vrot.lane.b32.xlu1 %v7052_v55, %s3553_s20  ;;  %v4976_v59 = vpop.xlane.xlu1 %1665  ;;  %v4978_v39 = vpop.xlane.xlu0 %1668 }
 0x2b3   : > { %7053 = vst [vmem:[#allocation110_spill] sm:$0xff] %v4976_v59  ;;  %7054 = vst [vmem:[#allocation113_spill] sm:$0xff] %v4978_v39  ;;  %2132 = vrot.lane.b32.xlu0 %v7055_v54, %s3553_s20 }
 0x2b6   : > { %2130 = vrot.lane.b32.xlu1 %v7056_v18, %s3553_s20  ;;  %v4984_v17 = vpop.xlane.xlu1 %1671  ;;  %v4986_v4 = vpop.xlane.xlu0 %1674  ;;  %v7075_v18 = vld [vmem:[#allocation134_spill] sm:$0xff] }
 0x2b7   : > { %7057 = vst [vmem:[#allocation114_spill] sm:$0xff] %v4984_v17  ;;  %7058 = vst [vmem:[#allocation117_spill] sm:$0xff] %v4986_v4  ;;  %2136 = vrot.lane.b32.xlu0 %v7059_v6, %s3553_s20  ;;  %v7076_v6 = vld [vmem:[#allocation137_spill] sm:$0xff]  ;;  %v7103_v17 = vld [vmem:[#allocation72_spill] sm:$0xff] }
 0x2b8   : > { %v824_v39 = vmul.f32 0.125, %v7103_v17  ;;  %v7107_v17 = vld [vmem:[#allocation76_spill] sm:$0xff] }
 0x2ba   : > { %2134 = vrot.lane.b32.xlu1 %v7060_v35, %s3553_s20  ;;  %v4992_v28 = vpop.xlane.xlu1 %1677  ;;  %v4994_v20 = vpop.xlane.xlu0 %1680 }
 0x2bb   : > { %7061 = vst [vmem:[#allocation118_spill] sm:$0xff] %v4992_v28  ;;  %7062 = vst [vmem:[#allocation121_spill] sm:$0xff] %v4994_v20  ;;  %2140 = vrot.lane.b32.xlu0 %v7063_v47, %s3553_s20  ;;  %v7101_v28 = vld [vmem:[#allocation71_spill] sm:$0xff] }
 0x2be   : > { %2138 = vrot.lane.b32.xlu1 %v7064_v19, %s3553_s20  ;;  %v5000_v30 = vpop.xlane.xlu1 %1683  ;;  %v5002_v15 = vpop.xlane.xlu0 %1686  ;;  %v7079_v19 = vld [vmem:[#allocation138_spill] sm:$0xff] }
 0x2bf   : > { %7065 = vst [vmem:[#allocation122_spill] sm:$0xff] %v5000_v30  ;;  %7066 = vst [vmem:[#allocation125_spill] sm:$0xff] %v5002_v15  ;;  %2144 = vrot.lane.b32.xlu0 %v7067_v41, %s3553_s20  ;;  %v7080_v41 = vld [vmem:[#allocation141_spill] sm:$0xff]  ;;  %v7100_v30 = vld [vmem:[#allocation70_spill] sm:$0xff] }
 0x2c0   : > { %v7099_v15 = vld [vmem:[#allocation69_spill] sm:$0xff]  ;;  %v822_v20 = vmul.f32 0.125, %v7100_v30  ;;  %v826_v30 = vmul.f32 0.125, %v7105_v38 }
 0x2c2   : > { %2142 = vrot.lane.b32.xlu1 %v7068_v52, %s3553_s20  ;;  %v5008_v57 = vpop.xlane.xlu1 %1689  ;;  %v5010_v23 = vpop.xlane.xlu0 %1692 }
 0x2c3   : > { %7069 = vst [vmem:[#allocation126_spill] sm:$0xff] %v5008_v57  ;;  %7070 = vst [vmem:[#allocation129_spill] sm:$0xff] %v5010_v23  ;;  %2148 = vrot.lane.b32.xlu0 %v7071_v5, %s3553_s20 }
 0x2c6   : > { %2146 = vrot.lane.b32.xlu1 %v7072_v26, %s3553_s20  ;;  %v5016_v55 = vpop.xlane.xlu1 %1695  ;;  %v5018_v54 = vpop.xlane.xlu0 %1698  ;;  %v7083_v26 = vld [vmem:[#allocation142_spill] sm:$0xff] }
 0x2c7   : > { %7073 = vst [vmem:[#allocation130_spill] sm:$0xff] %v5016_v55  ;;  %7074 = vst [vmem:[#allocation133_spill] sm:$0xff] %v5018_v54  ;;  %2152 = vrot.lane.b32.xlu0 %v7075_v18, %s3553_s20  ;;  %v7084_v18 = vld [vmem:[#allocation145_spill] sm:$0xff] }
 0x2ca   : > { %2150 = vrot.lane.b32.xlu1 %v7076_v6, %s3553_s20  ;;  %v5024_v35 = vpop.xlane.xlu1 %1701  ;;  %v5026_v47 = vpop.xlane.xlu0 %1704 }
 0x2cb   : > { %7077 = vst [vmem:[#allocation134_spill] sm:$0xff] %v5024_v35  ;;  %7078 = vst [vmem:[#allocation137_spill] sm:$0xff] %v5026_v47  ;;  %2156 = vrot.lane.b32.xlu0 %v7079_v19, %s3553_s20  ;;  %v7087_v47 = vld [vmem:[#allocation146_spill] sm:$0xff]  ;;  %v7088_v19 = vld [vmem:[#allocation149_spill] sm:$0xff] }
 0x2ce   : > { %2154 = vrot.lane.b32.xlu1 %v7080_v41, %s3553_s20  ;;  %v5032_v52 = vpop.xlane.xlu1 %1707  ;;  %v5034_v5 = vpop.xlane.xlu0 %1710 }
 0x2cf   : > { %7081 = vst [vmem:[#allocation138_spill] sm:$0xff] %v5032_v52  ;;  %7082 = vst [vmem:[#allocation141_spill] sm:$0xff] %v5034_v5  ;;  %2160 = vrot.lane.b32.xlu0 %v7083_v26, %s3553_s20  ;;  %v7091_v5 = vld [vmem:[#allocation150_spill] sm:$0xff] }
 0x2d0   : > { %v7092_v26 = vld [vmem:[#allocation66_spill] sm:$0xff] }
 0x2d1   : > { %v818_v54 = vmul.f32 0.125, %v7092_v26  ;;  %v7098_v26 = vld [vmem:[#allocation68_spill] sm:$0xff] }
 0x2d2   : > { %2158 = vrot.lane.b32.xlu1 %v7084_v18, %s3553_s20  ;;  %v5040_v6 = vpop.xlane.xlu1 %1713  ;;  %v5042_v35 = vpop.xlane.xlu0 %1716  ;;  %v7093_v18 = vld [vmem:[#allocation153_spill] sm:$0xff]  ;;  %v820_v57 = vmul.f32 0.125, %v7098_v26 }
 0x2d3   : > { %7085 = vst [vmem:[#allocation142_spill] sm:$0xff] %v5040_v6  ;;  %7086 = vst [vmem:[#allocation145_spill] sm:$0xff] %v5042_v35  ;;  %2164 = vrot.lane.b32.xlu0 %v7087_v47, %s3553_s20  ;;  %v7095_v47 = vld [vmem:[#allocation154_spill] sm:$0xff] }
 0x2d4   : > { %v884_v4 = vadd.f32 1e-05, %v820_v57  ;;  %v827_v57 = vmul.f32 0.125, %v7106_v9 }
 0x2d6   : > { %2162 = vrot.lane.b32.xlu1 %v7088_v19, %s3553_s20  ;;  %v5048_v41 = vpop.xlane.xlu1 %1719  ;;  %v5050_v52 = vpop.xlane.xlu0 %1722  ;;  %v7096_v19 = vld [vmem:[#allocation67_spill] sm:$0xff] }
 0x2d7   : > { %7089 = vst [vmem:[#allocation146_spill] sm:$0xff] %v5048_v41  ;;  %7090 = vst [vmem:[#allocation149_spill] sm:$0xff] %v5050_v52  ;;  %2168 = vrot.lane.b32.xlu0 %v7091_v5, %s3553_s20  ;;  %v819_v55 = vmul.f32 0.125, %v7096_v19  ;;  %v882_v41 = vadd.f32 1e-05, %v818_v54  ;;  %v7097_v52 = vld [vmem:[#allocation156_spill] sm:$0xff] }
 0x2d8   : > { %v7102_v19 = vld [vmem:[#allocation157_spill] sm:$0xff] }
 0x2d9   : > { %3027 = vrsqrt.f32 %v882_v41 }
 0x2da   : > { %2166 = vrot.lane.b32.xlu1 %v7093_v18, %s3553_s20  ;;  %v5057_v6 = vpop.xlane.xlu1 %1725  ;;  %v5059_v35 = vpop.permute.xlu0 %2048  ;;  %v883_v18 = vadd.f32 1e-05, %v819_v55  ;;  %v7104_v55 = vld [vmem:[#allocation73_spill] sm:$0xff] }
 0x2db   : > { %7094 = vst [vmem:[#allocation150_spill] sm:$0xff] %v5057_v6  ;;  %2172 = vrot.lane.b32.xlu0 %v7095_v47, %s3553_s20  ;;  %v821_v6 = vmul.f32 0.125, %v7099_v15  ;;  %v823_v47 = vmul.f32 0.125, %v7101_v28  ;;  %v825_v59 = vmul.f32 0.125, %v7104_v55  ;;  %v886_v15 = vadd.f32 1e-05, %v822_v20 }
 0x2dc   : > { %3029 = vrsqrt.f32 %v883_v18  ;;  %v828_v18 = vmul.f32 0.125, %v7107_v17  ;;  %v7108_v55 = vld [vmem:[#allocation77_spill] sm:$0xff]  ;;  %v2241_v11 = vsel %vm2240_vm2, %v5059_v35, 0.0 }
 0x2dd   : > { %v885_v26 = vadd.f32 1e-05, %v821_v6  ;;  %v887_v41 = vadd.f32 1e-05, %v823_v47  ;;  %3031 = vrsqrt.f32 %v884_v4  ;;  %v889_v36 = vadd.f32 1e-05, %v825_v59 }
 0x2de   : > { %2170 = vrot.lane.b32.xlu1 %v7097_v52, %s3553_s20  ;;  %v5066_v23 = vpop.permute.xlu1 %2050  ;;  %v5068_v5 = vpop.permute.xlu0 %2056  ;;  %v890_v6 = vadd.f32 1e-05, %v826_v30  ;;  %v829_v20 = vmul.f32 0.125, %v7108_v55  ;;  %v892_v4 = vadd.f32 1e-05, %v828_v18  ;;  %v7111_v55 = vld [vmem:[#allocation80_spill] sm:$0xff] }
 0x2df   : > { %3033 = vrsqrt.f32 %v885_v26  ;;  %v7110_v26 = vld [vmem:[#allocation79_spill] sm:$0xff]  ;;  %v894_v30 = vadd.f32 1e-05, %v830_v0  ;;  %v832_v49 = vmul.f32 0.125, %v7111_v55 }
 0x2e0   : > { %3035 = vrsqrt.f32 %v886_v15  ;;  %v893_v9 = vadd.f32 1e-05, %v829_v20  ;;  %v831_v15 = vmul.f32 0.125, %v7110_v26  ;;  %v7114_v26 = vld [vmem:[#allocation17_spill] sm:$0xff] }
 0x2e1   : > { %3037 = vrsqrt.f32 %v887_v41  ;;  %v896_v0 = vadd.f32 1e-05, %v832_v49 }
 0x2e2   : > { %2174 = vrot.lane.b32.xlu1 %v7102_v19, %s3553_s20  ;;  %v5076_v54 = vpop.permute.xlu1 %2052  ;;  %v5078_v52 = vpop.permute.xlu0 %2060  ;;  %v888_v19 = vadd.f32 1e-05, %v824_v39  ;;  %v891_v39 = vadd.f32 1e-05, %v827_v57  ;;  %v7113_v57 = vld [vmem:[#allocation81_spill] sm:$0xff] }
 0x2e3   : > { %v833_v18 = vmul.f32 0.125, %v7113_v57  ;;  %v7117_v57 = vld [vmem:[#allocation84_spill] sm:$0xff] }
 0x2e4   : > { %3039 = vrsqrt.f32 %v888_v19  ;;  %v7112_v19 = vld [vmem:[#allocation15_spill] sm:$0xff]  ;;  %v836_v29 = vmul.f32 0.125, %v7117_v57  ;;  %v7120_v57 = vld [vmem:[#allocation86_spill] sm:$0xff] }
 0x2e5   : > { %3041 = vrsqrt.f32 %v889_v36  ;;  %v895_v36 = vadd.f32 1e-05, %v831_v15  ;;  %v897_v15 = vadd.f32 1e-05, %v833_v18  ;;  %v838_v8 = vmul.f32 0.125, %v7120_v57 }
 0x2e6   : > { %v5083_v62 = vpop.permute.xlu1 %2054  ;;  %v5085_v28 = vpop.permute.xlu0 %2064  ;;  %3043 = vrsqrt.f32 %v890_v6 }
 0x2e7   : > { %v3028_v59 = vpop.eup %3027  ;;  %3045 = vrsqrt.f32 %v891_v39 }
 0x2e8   : > { %v1010_v63 = vmul.f32 %v3028_v59, %v7112_v19  ;;  %3047 = vrsqrt.f32 %v892_v4  ;;  %v7115_v59 = vld [vmem:[#allocation82_spill] sm:$0xff] }
 0x2e9   : > { %v3030_v13 = vpop.eup %3029  ;;  %3049 = vrsqrt.f32 %v893_v9  ;;  %v834_v4 = vmul.f32 0.125, %v7115_v59 }
 0x2ea   : > { %v5090_v47 = vpop.permute.xlu1 %2058  ;;  %v5092_v38 = vpop.permute.xlu0 %2068  ;;  %3051 = vrsqrt.f32 %v894_v30  ;;  %v1011_v55 = vmul.f32 %v3030_v13, %v7114_v26  ;;  %v1080_v22 = vmul.f32 %v5105_v12, %v1010_v63  ;;  %v5124_v13 = vld [vmem:[%s6712_s2] ss:$0 sm:$0xff]  ;;  %v7118_v30 = vld [vmem:[#allocation16_spill] sm:$0xff]  ;;  %v837_v26 = vmul.f32 0.125, %v7119_v14 }
 0x2eb   : > { %v3032_v39 = vpop.eup %3031  ;;  %3053 = vrsqrt.f32 %v895_v36  ;;  %v898_v59 = vadd.f32 1e-05, %v834_v4  ;;  %v900_v14 = vadd.f32 1e-05, %v836_v29  ;;  %v902_v29 = vadd.f32 1e-05, %v838_v8 }
 0x2ec   : > { %v3034_v19 = vpop.eup %3033  ;;  %v1012_v63 = vmul.f32 %v3032_v39, %v7118_v30  ;;  %3055 = vrsqrt.f32 %v896_v0  ;;  %v1081_v18 = vmul.f32 %v5105_v12, %v1011_v55  ;;  %v5135_v39 = vadd.f32 %v5124_v13, %v1080_v22  ;;  %v7123_v0 = vld [vmem:[#allocation20_spill] sm:$0xff] }
 0x2ed   : > { %v3036_v9 = vpop.eup %3035  ;;  %v1013_v53 = vmul.f32 %v3034_v19, %v7121_v16  ;;  %3057 = vrsqrt.f32 %v897_v15  ;;  %v901_v19 = vadd.f32 1e-05, %v837_v26 }
 0x2ee   : > { %v5096_v17 = vpop.permute.xlu1 %2062  ;;  %v5098_v41 = vpop.permute.xlu0 %2072  ;;  %v1014_v61 = vmul.f32 %v3036_v9, %v7122_v24  ;;  %v1082_v16 = vmul.f32 %v5105_v12, %v1012_v63  ;;  %v7124_v24 = vld [vmem:[#allocation21_spill] sm:$0xff]  ;;  %v7125_v9 = vld [vmem:[#allocation87_spill] sm:$0xff]  ;;  %v5146_v22 = vadd.f32 %v5124_v13, %v1081_v18  ;;  %3059 = vrsqrt.f32 %v898_v59  ;;  %v7129_v18 = vld [vmem:[#allocation88_spill] sm:$0xff] }
 0x2ef   : > { %v3038_v49 = vpop.eup %3037  ;;  %v839_v35 = vmul.f32 0.125, %v7125_v9  ;;  %3061 = vrsqrt.f32 %v899_v32  ;;  %v2247_v63 = vsel %vm2240_vm2, %v5076_v54, 0.0  ;;  %v2262_v48 = vsel %vm2240_vm2, %v5096_v17, 0.0 }
 0x2f0   : > { %v1015_v30 = vmul.f32 %v3038_v49, %v7123_v0  ;;  %7126 = vst [vmem:[#allocation66_spill] sm:$0xff] %v5146_v22  ;;  %v1084_v0 = vmul.f32 %v5105_v12, %v1014_v61  ;;  %3063 = vrsqrt.f32 %v900_v14  ;;  %v840_v22 = vmul.f32 0.125, %v7129_v18 }
 0x2f1   : > { %v3040_v36 = vpop.eup %3039  ;;  %v5161_v61 = vadd.f32 %v5124_v13, %v1082_v16  ;;  %3065 = vrsqrt.f32 %v901_v19  ;;  %v903_v8 = vadd.f32 1e-05, %v839_v35  ;;  %v7135_v16 = vld [vmem:[#allocation25_spill] sm:$0xff] }
 0x2f2   : > { %v5108_v6 = vpop.permute.xlu1 %2066  ;;  %v5110_v20 = vpop.permute.xlu0 %2076  ;;  %v1016_v21 = vmul.f32 %v3040_v36, %v7124_v24  ;;  %v1085_v26 = vmul.f32 %v5105_v12, %v1015_v30  ;;  %v7128_v24 = vld [vmem:[#allocation23_spill] sm:$0xff]  ;;  %v7131_v30 = vld [vmem:[#allocation24_spill] sm:$0xff]  ;;  %3067 = vrsqrt.f32 %v902_v29  ;;  %v5171_v18 = vadd.f32 %v5124_v13, %v1084_v0 }
 0x2f3   : > { %v3042_v45 = vpop.eup %3041  ;;  %7130 = vst [vmem:[#allocation153_spill] sm:$0xff] %v5161_v61  ;;  %3069 = vrsqrt.f32 %v903_v8  ;;  %v2253_v8 = vsel %vm2240_vm2, %v5068_v5, 0.0 }
 0x2f4   : > { %v3044_v57 = vpop.eup %3043  ;;  %v1017_v49 = vmul.f32 %v3042_v45, %v7127_v40  ;;  %v1086_v32 = vmul.f32 %v5105_v12, %v1016_v21  ;;  %7134 = vst [vmem:[#allocation67_spill] sm:$0xff] %v5171_v18  ;;  %v2250_v21 = vsel %vm2240_vm2, %v5083_v62, 0.0  ;;  %v5177_v19 = vadd.f32 %v5124_v13, %v1085_v26  ;;  %v7140_v62 = vld [vmem:[#allocation90_spill] sm:$0xff] }
 0x2f5   : > { %v3046_v15 = vpop.eup %3045  ;;  %v1018_v9 = vmul.f32 %v3044_v57, %v7128_v24  ;;  %v7132_v57 = vld [vmem:[#allocation89_spill] sm:$0xff]  ;;  %v842_v26 = vmul.f32 0.125, %v7140_v62 }
 0x2f6   : > { %v5117_v46 = vpop.permute.xlu1 %2070  ;;  %v5119_v37 = vpop.permute.xlu0 %2080  ;;  %v1087_v59 = vmul.f32 %v5105_v12, %v1017_v49  ;;  %v1019_v14 = vmul.f32 %v3046_v15, %v7131_v30  ;;  %v841_v24 = vmul.f32 0.125, %v7132_v57  ;;  %7136 = vst [vmem:[#allocation156_spill] sm:$0xff] %v5177_v19  ;;  %v7137_v49 = vld [vmem:[#allocation26_spill] sm:$0xff]  ;;  %v904_v15 = vadd.f32 1e-05, %v840_v22  ;;  %v7146_v62 = vld [vmem:[#allocation29_spill] sm:$0xff] }
 0x2f7   : > { %v3048_v36 = vpop.eup %3047  ;;  %v1088_v35 = vmul.f32 %v5105_v12, %v1018_v9  ;;  %v5186_v57 = vadd.f32 %v5124_v13, %v1086_v32  ;;  %v2244_v32 = vsel %vm2240_vm2, %v5066_v23, 0.0  ;;  %v906_v5 = vadd.f32 1e-05, %v842_v26 }
 0x2f8   : > { %v1020_v27 = vmul.f32 %v3048_v36, %v7135_v16  ;;  %v7139_v36 = vld [vmem:[#allocation27_spill] sm:$0xff]  ;;  %v5191_v9 = vadd.f32 %v5124_v13, %v1087_v59  ;;  %v1089_v22 = vmul.f32 %v5105_v12, %v1019_v14  ;;  %3071 = vrsqrt.f32 %v904_v15  ;;  %v7149_v15 = vld [vmem:[#allocation94_spill] sm:$0xff] }
 0x2f9   : > { %7138 = vst [vmem:[#allocation68_spill] sm:$0xff] %v5186_v57  ;;  %v7156_v57 = vld [vmem:[#allocation32_spill] sm:$0xff] }
 0x2fa   : > { %v5138_v55 = vpop.permute.xlu1 %2074  ;;  %2242 = vadd.xlane.f32.xlu0 %v2241_v11  ;;  %v5140_v4 = vpop.permute.xlu0 %2084  ;;  %v1083_v11 = vmul.f32 %v5105_v12, %v1013_v53  ;;  %7141 = vst [vmem:[#allocation69_spill] sm:$0xff] %v5191_v9  ;;  %v1090_v18 = vmul.f32 %v5105_v12, %v1020_v27  ;;  %v7147_v9 = vld [vmem:[#allocation93_spill] sm:$0xff] }
 0x2fb   : > { %v3050_v53 = vpop.eup %3049 }
 0x2fc   : > { %v3052_v54 = vpop.eup %3051  ;;  %v1021_v29 = vmul.f32 %v3050_v53, %v7137_v49  ;;  %v905_v53 = vadd.f32 1e-05, %v841_v24  ;;  %v7142_v49 = vld [vmem:[#allocation91_spill] sm:$0xff] }
 0x2fd   : > { %v3054_v0 = vpop.eup %3053  ;;  %v1022_v16 = vmul.f32 %v3052_v54, %v7139_v36  ;;  %v5202_v54 = vadd.f32 %v5124_v13, %v1088_v35  ;;  %v7145_v36 = vld [vmem:[#allocation28_spill] sm:$0xff]  ;;  %v845_v35 = vmul.f32 0.125, %v7147_v9 }
 0x2fe   : > { %v5156_v40 = vpop.permute.xlu1 %2078  ;;  %2248 = vadd.xlane.f32.xlu0 %v2247_v63  ;;  %v5158_v45 = vpop.permute.xlu0 %2088  ;;  %v5168_v63 = vadd.f32 %v5124_v13, %v1083_v11  ;;  %v1091_v59 = vmul.f32 %v5105_v12, %v1021_v29  ;;  %v1023_v14 = vmul.f32 %v3054_v0, %v7145_v36  ;;  %3073 = vrsqrt.f32 %v905_v53  ;;  %v7152_v53 = vld [vmem:[#allocation30_spill] sm:$0xff] }
 0x2ff   : > { %v3056_v19 = vpop.eup %3055  ;;  %7144 = vst [vmem:[#allocation70_spill] sm:$0xff] %v5202_v54  ;;  %v1092_v23 = vmul.f32 %v5105_v12, %v1022_v16  ;;  %v5214_v54 = vadd.f32 %v5124_v13, %v1089_v22  ;;  %v846_v0 = vmul.f32 0.125, %v7149_v15  ;;  %v2256_v16 = vsel %vm2240_vm2, %v5090_v47, 0.0 }
 0x300   : > { %7133 = vst [vmem:[#allocation154_spill] sm:$0xff] %v5168_v63  ;;  %v7143_v63 = vld [vmem:[#allocation92_spill] sm:$0xff]  ;;  %v5225_v9 = vadd.f32 %v5124_v13, %v1091_v59  ;;  %v1093_v22 = vmul.f32 %v5105_v12, %v1023_v14  ;;  %3075 = vrsqrt.f32 %v906_v5  ;;  %v909_v59 = vadd.f32 1e-05, %v845_v35  ;;  %v7154_v14 = vld [vmem:[#allocation31_spill] sm:$0xff]  ;;  %v7158_v35 = vld [vmem:[#allocation33_spill] sm:$0xff] }
 0x301   : > { %v844_v61 = vmul.f32 0.125, %v7143_v63  ;;  %v3058_v63 = vpop.eup %3057  ;;  %7148 = vst [vmem:[#allocation71_spill] sm:$0xff] %v5214_v54 }
 0x302   : > { %v5181_v30 = vpop.permute.xlu1 %2082  ;;  %2251 = vadd.xlane.f32.xlu0 %v2250_v21  ;;  %v5183_v11 = vpop.permute.xlu0 %2092  ;;  %v843_v21 = vmul.f32 0.125, %v7142_v49  ;;  %v1024_v49 = vmul.f32 %v3056_v19, %v7146_v62  ;;  %v2259_v19 = vsel %vm2240_vm2, %v5078_v52, 0.0  ;;  %7151 = vst [vmem:[#allocation72_spill] sm:$0xff] %v5225_v9  ;;  %v7153_v62 = vld [vmem:[#allocation95_spill] sm:$0xff] }
 0x303   : > { %v908_v36 = vadd.f32 1e-05, %v844_v61  ;;  %v847_v15 = vmul.f32 0.125, %v7153_v62 }
 0x304   : > { %v907_v29 = vadd.f32 1e-05, %v843_v21  ;;  %v1025_v21 = vmul.f32 %v3058_v63, %v7152_v53  ;;  %v1094_v52 = vmul.f32 %v5105_v12, %v1024_v49  ;;  %v910_v63 = vadd.f32 1e-05, %v846_v0  ;;  %v7155_v53 = vld [vmem:[#allocation96_spill] sm:$0xff] }
 0x305   : > { %v5246_v49 = vadd.f32 %v5124_v13, %v1093_v22  ;;  %v911_v0 = vadd.f32 1e-05, %v847_v15 }
 0x306   : > { %2245 = vadd.xlane.f32.xlu1 %v2244_v32  ;;  %v5206_v24 = vpop.permute.xlu1 %2086  ;;  %2254 = vadd.xlane.f32.xlu0 %v2253_v8  ;;  %v5208_v27 = vpop.permute.xlu0 %2096  ;;  %v5218_v8 = vadd.f32 %v5124_v13, %v1090_v18  ;;  %3077 = vrsqrt.f32 %v907_v29  ;;  %v1095_v5 = vmul.f32 %v5105_v12, %v1025_v21 }
 0x307   : > { %v3060_v32 = vpop.eup %3059  ;;  %3079 = vrsqrt.f32 %v908_v36  ;;  %7157 = vst [vmem:[#allocation73_spill] sm:$0xff] %v5246_v49  ;;  %v7160_v36 = vld [vmem:[#allocation34_spill] sm:$0xff] }
 0x308   : > { %7150 = vst [vmem:[#allocation157_spill] sm:$0xff] %v5218_v8  ;;  %v3062_v26 = vpop.eup %3061  ;;  %v5235_v8 = vadd.f32 %v5124_v13, %v1092_v23  ;;  %v1026_v54 = vmul.f32 %v3060_v32, %v7154_v14  ;;  %v2265_v23 = vsel %vm2240_vm2, %v5085_v28, 0.0  ;;  %3081 = vrsqrt.f32 %v909_v59 }
 0x309   : > { %v3064_v47 = vpop.eup %3063  ;;  %3083 = vrsqrt.f32 %v910_v63  ;;  %v5268_v59 = vadd.f32 %v5124_v13, %v1095_v5  ;;  %v7165_v63 = vld [vmem:[#allocation99_spill] sm:$0xff] }
 0x30a   : > { %2257 = vadd.xlane.f32.xlu1 %v2256_v16  ;;  %v5230_v18 = vpop.permute.xlu1 %2090  ;;  %2260 = vadd.xlane.f32.xlu0 %v2259_v19  ;;  %v5232_v61 = vpop.permute.xlu0 %2100  ;;  %v848_v16 = vmul.f32 0.125, %v7155_v53  ;;  %v1027_v19 = vmul.f32 %v3062_v26, %v7156_v57  ;;  %v1028_v29 = vmul.f32 %v3064_v47, %v7158_v35  ;;  %v5253_v57 = vadd.f32 %v5124_v13, %v1094_v52  ;;  %v7161_v26 = vld [vmem:[#allocation97_spill] sm:$0xff]  ;;  %v7162_v53 = vld [vmem:[#allocation35_spill] sm:$0xff] }
 0x30b   : > { %v3066_v9 = vpop.eup %3065  ;;  %v849_v28 = vmul.f32 0.125, %v7161_v26  ;;  %v1096_v22 = vmul.f32 %v5105_v12, %v1026_v54  ;;  %v2268_v52 = vsel %vm2240_vm2, %v5108_v6, 0.0  ;;  %7164 = vst [vmem:[#allocation75_spill] sm:$0xff] %v5268_v59  ;;  %3085 = vrsqrt.f32 %v911_v0  ;;  %v7166_v26 = vld [vmem:[#allocation36_spill] sm:$0xff]  ;;  %v7169_v0 = vld [vmem:[#allocation101_spill] sm:$0xff] }
 0x30c   : > { %v3068_v62 = vpop.eup %3067  ;;  %7159 = vst [vmem:[#allocation74_spill] sm:$0xff] %v5253_v57  ;;  %v1029_v17 = vmul.f32 %v3066_v9, %v7160_v36  ;;  %v912_v47 = vadd.f32 1e-05, %v848_v16  ;;  %v2271_v9 = vsel %vm2240_vm2, %v5092_v38, 0.0  ;;  %v1098_v54 = vmul.f32 %v5105_v12, %v1028_v29  ;;  %v7183_v57 = vld [vmem:[#allocation41_spill] sm:$0xff] }
 0x30d   : > { %v3070_v14 = vpop.eup %3069  ;;  %v1030_v21 = vmul.f32 %v3068_v62, %v7162_v53  ;;  %v851_v16 = vmul.f32 0.125, %v7165_v63  ;;  %v913_v53 = vadd.f32 1e-05, %v849_v28  ;;  %v5278_v5 = vadd.f32 %v5124_v13, %v1096_v22  ;;  %v7172_v22 = vld [vmem:[#allocation37_spill] sm:$0xff] }
 0x30e   : > { %2263 = vadd.xlane.f32.xlu1 %v2262_v48  ;;  %v5250_v32 = vpop.permute.xlu1 %2094  ;;  %2266 = vadd.xlane.f32.xlu0 %v2265_v23  ;;  %v5259_v15 = vpop.permute.xlu0 %2104  ;;  %v1097_v48 = vmul.f32 %v5105_v12, %v1027_v19  ;;  %v7163_v23 = vld [vmem:[#allocation98_spill] sm:$0xff]  ;;  %v1099_v36 = vmul.f32 %v5105_v12, %v1029_v17  ;;  %v1031_v6 = vmul.f32 %v3070_v14, %v7166_v26  ;;  %3087 = vrsqrt.f32 %v912_v47 }
 0x30f   : > { %v850_v35 = vmul.f32 0.125, %v7163_v23  ;;  %v3072_v19 = vpop.eup %3071  ;;  %v7167_v23 = vld [vmem:[#allocation100_spill] sm:$0xff]  ;;  %7168 = vst [vmem:[#allocation76_spill] sm:$0xff] %v5278_v5  ;;  %v1100_v29 = vmul.f32 %v5105_v12, %v1030_v21  ;;  %v853_v63 = vmul.f32 0.125, %v7169_v0  ;;  %v2274_v17 = vsel %vm2240_vm2, %v5117_v46, 0.0  ;;  %v7173_v47 = vld [vmem:[#allocation102_spill] sm:$0xff] }
 0x310   : > { %v852_v38 = vmul.f32 0.125, %v7167_v23  ;;  %v5283_v59 = vadd.f32 %v5124_v13, %v1097_v48  ;;  %v2277_v28 = vsel %vm2240_vm2, %v5098_v41, 0.0  ;;  %v5290_v14 = vadd.f32 %v5124_v13, %v1098_v54  ;;  %v7178_v5 = vld [vmem:[#allocation104_spill] sm:$0xff] }
 0x311   : > { %v1032_v26 = vmul.f32 %v3072_v19, %v7172_v22  ;;  %v915_v21 = vadd.f32 1e-05, %v851_v16  ;;  %v854_v23 = vmul.f32 0.125, %v7173_v47  ;;  %v1101_v46 = vmul.f32 %v5105_v12, %v1031_v6  ;;  %v7176_v16 = vld [vmem:[#allocation38_spill] sm:$0xff]  ;;  %v7177_v47 = vld [vmem:[#allocation103_spill] sm:$0xff] }
 0x312   : > { %2269 = vadd.xlane.f32.xlu1 %v2268_v52  ;;  %v5272_v62 = vpop.permute.xlu1 %2098  ;;  %2272 = vadd.xlane.f32.xlu0 %v2271_v9  ;;  %v3074_v52 = vpop.eup %3073  ;;  %7170 = vst [vmem:[#allocation77_spill] sm:$0xff] %v5283_v59  ;;  %v914_v9 = vadd.f32 1e-05, %v850_v35  ;;  %7171 = vst [vmem:[#allocation78_spill] sm:$0xff] %v5290_v14  ;;  %v5299_v35 = vadd.f32 %v5124_v13, %v1099_v36  ;;  %3089 = vrsqrt.f32 %v913_v53  ;;  %v916_v41 = vadd.f32 1e-05, %v852_v38 }
 0x313   : > { %v5294_v0 = vpop.permute.xlu0 %2108  ;;  %v3076_v54 = vpop.eup %3075  ;;  %v5303_v14 = vadd.f32 %v5124_v13, %v1100_v29  ;;  %v1033_v19 = vmul.f32 %v3074_v52, %v7176_v16  ;;  %v917_v22 = vadd.f32 1e-05, %v853_v63  ;;  %v855_v59 = vmul.f32 0.125, %v7177_v47 }
 0x314   : > { %7174 = vst [vmem:[#allocation79_spill] sm:$0xff] %v5299_v35  ;;  %3091 = vrsqrt.f32 %v914_v9  ;;  %v2280_v36 = vsel %vm2240_vm2, %v5138_v55, 0.0  ;;  %v2283_v6 = vsel %vm2240_vm2, %v5110_v20, 0.0  ;;  %v1102_v38 = vmul.f32 %v5105_v12, %v1032_v26  ;;  %v7181_v55 = vld [vmem:[#allocation108_spill] sm:$0xff] }
 0x315   : > { %7175 = vst [vmem:[#allocation80_spill] sm:$0xff] %v5303_v14  ;;  %3093 = vrsqrt.f32 %v915_v21  ;;  %v918_v29 = vadd.f32 1e-05, %v854_v23  ;;  %v7179_v14 = vld [vmem:[#allocation107_spill] sm:$0xff]  ;;  %v5317_v9 = vadd.f32 %v5124_v13, %v1101_v46  ;;  %v858_v47 = vmul.f32 0.125, %v7181_v55  ;;  %v7182_v26 = vld [vmem:[#allocation40_spill] sm:$0xff] }
 0x316   : > { %2275 = vadd.xlane.f32.xlu1 %v2274_v17  ;;  %v5296_v48 = vpop.permute.xlu1 %2102  ;;  %2278 = vadd.xlane.f32.xlu0 %v2277_v28  ;;  %v3078_v17 = vpop.eup %3077  ;;  %v856_v28 = vmul.f32 0.125, %v7178_v5  ;;  %v857_v52 = vmul.f32 0.125, %v7179_v14  ;;  %v7180_v5 = vld [vmem:[#allocation39_spill] sm:$0xff]  ;;  %3095 = vrsqrt.f32 %v916_v41  ;;  %v1103_v35 = vmul.f32 %v5105_v12, %v1033_v19  ;;  %v7187_v55 = vld [vmem:[#allocation112_spill] sm:$0xff] }
 0x317   : > { %v3080_v53 = vpop.eup %3079  ;;  %v1034_v16 = vmul.f32 %v3076_v54, %v7180_v5  ;;  %v1035_v21 = vmul.f32 %v3078_v17, %v7182_v26  ;;  %3097 = vrsqrt.f32 %v917_v22  ;;  %v919_v23 = vadd.f32 1e-05, %v855_v59  ;;  %v5323_v14 = vpop.permute.xlu0 %2112  ;;  %v7185_v17 = vld [vmem:[#allocation111_spill] sm:$0xff] }
 0x318   : > { %v3082_v20 = vpop.eup %3081  ;;  %v920_v49 = vadd.f32 1e-05, %v856_v28  ;;  %v2286_v46 = vsel %vm2240_vm2, %v5156_v40, 0.0  ;;  %v2289_v41 = vsel %vm2240_vm2, %v5119_v37, 0.0  ;;  %v5331_v54 = vadd.f32 %v5124_v13, %v1102_v38  ;;  %v7186_v28 = vld [vmem:[#allocation42_spill] sm:$0xff] }
 0x319   : > { %3099 = vrsqrt.f32 %v918_v29  ;;  %v921_v19 = vadd.f32 1e-05, %v857_v52  ;;  %v859_v22 = vmul.f32 0.125, %v7185_v17  ;;  %v922_v40 = vadd.f32 1e-05, %v858_v47  ;;  %v7189_v29 = vld [vmem:[#allocation43_spill] sm:$0xff] }
 0x31a   : > { %2281 = vadd.xlane.f32.xlu1 %v2280_v36  ;;  %v5314_v63 = vpop.permute.xlu1 %2106  ;;  %2284 = vadd.xlane.f32.xlu0 %v2283_v6  ;;  %v3084_v36 = vpop.eup %3083  ;;  %v1036_v6 = vmul.f32 %v3080_v53, %v7183_v57  ;;  %7184 = vst [vmem:[#allocation15_spill] sm:$0xff] %v5331_v54  ;;  %v1104_v57 = vmul.f32 %v5105_v12, %v1034_v16  ;;  %v860_v26 = vmul.f32 0.125, %v7187_v55  ;;  %3101 = vrsqrt.f32 %v919_v23 }
 0x31b   : > { %v3086_v5 = vpop.eup %3085  ;;  %v1037_v53 = vmul.f32 %v3082_v20, %v7186_v28  ;;  %v5340_v37 = vadd.f32 %v5124_v13, %v1103_v35  ;;  %v1105_v38 = vmul.f32 %v5105_v12, %v1035_v21  ;;  %v1038_v52 = vmul.f32 %v3084_v36, %v7189_v29  ;;  %v7190_v20 = vld [vmem:[#allocation44_spill] sm:$0xff]  ;;  %v7191_v28 = vld [vmem:[#allocation115_spill] sm:$0xff]  ;;  %v5351_v21 = vpop.permute.xlu0 %2116 }
 0x31c   : > { %v1106_v17 = vmul.f32 %v5105_v12, %v1036_v6  ;;  %3103 = vrsqrt.f32 %v920_v49  ;;  %v2292_v16 = vsel %vm2240_vm2, %v5181_v30, 0.0  ;;  %v2295_v47 = vsel %vm2240_vm2, %v5140_v4, 0.0  ;;  %v7195_v29 = vld [vmem:[#allocation116_spill] sm:$0xff] }
 0x31d   : > { %7188 = vst [vmem:[#allocation81_spill] sm:$0xff] %v5340_v37  ;;  %3105 = vrsqrt.f32 %v921_v19  ;;  %v923_v35 = vadd.f32 1e-05, %v859_v22  ;;  %v861_v55 = vmul.f32 0.125, %v7191_v28  ;;  %v5356_v49 = vadd.f32 %v5124_v13, %v1104_v57  ;;  %v7194_v22 = vld [vmem:[#allocation45_spill] sm:$0xff]  ;;  %v7198_v28 = vld [vmem:[#allocation120_spill] sm:$0xff] }
 0x31e   : > { %2287 = vadd.xlane.f32.xlu1 %v2286_v46  ;;  %v5334_v59 = vpop.permute.xlu1 %2110  ;;  %2290 = vadd.xlane.f32.xlu0 %v2289_v41  ;;  %v3088_v46 = vpop.eup %3087  ;;  %v1039_v41 = vmul.f32 %v3086_v5, %v7190_v20  ;;  %v1107_v30 = vmul.f32 %v5105_v12, %v1037_v53  ;;  %3107 = vrsqrt.f32 %v922_v40  ;;  %v924_v36 = vadd.f32 1e-05, %v860_v26  ;;  %v7204_v37 = vld [vmem:[#allocation47_spill] sm:$0xff] }
 0x31f   : > { %7192 = vst [vmem:[#allocation17_spill] sm:$0xff] %v5356_v49  ;;  %v3090_v4 = vpop.eup %3089  ;;  %v5360_v6 = vadd.f32 %v5124_v13, %v1105_v38  ;;  %v1108_v19 = vmul.f32 %v5105_v12, %v1038_v52  ;;  %v1040_v5 = vmul.f32 %v3088_v46, %v7194_v22  ;;  %v5366_v20 = vadd.f32 %v5124_v13, %v1106_v17  ;;  %v5387_v49 = vpop.permute.xlu0 %2120 }
 0x320   : > { %v2298_v53 = vsel %vm2240_vm2, %v5206_v24, 0.0  ;;  %v2301_v40 = vsel %vm2240_vm2, %v5158_v45, 0.0  ;;  %v1109_v38 = vmul.f32 %v5105_v12, %v1039_v41  ;;  %3109 = vrsqrt.f32 %v923_v35 }
 0x321   : > { %7193 = vst [vmem:[#allocation82_spill] sm:$0xff] %v5360_v6  ;;  %7196 = vst [vmem:[#allocation83_spill] sm:$0xff] %v5366_v20  ;;  %v3092_v26 = vpop.eup %3091  ;;  %v925_v52 = vadd.f32 1e-05, %v861_v55  ;;  %v864_v46 = vmul.f32 0.125, %v7198_v28  ;;  %3111 = vrsqrt.f32 %v924_v36  ;;  %v7201_v20 = vld [vmem:[#allocation123_spill] sm:$0xff]  ;;  %v5383_v41 = vadd.f32 %v5124_v13, %v1108_v19 }
 0x322   : > { %2293 = vadd.xlane.f32.xlu1 %v2292_v16  ;;  %v5353_v23 = vpop.permute.xlu1 %2114  ;;  %2296 = vadd.xlane.f32.xlu0 %v2295_v47  ;;  %v862_v16 = vmul.f32 0.125, %v7195_v29  ;;  %v7197_v47 = vld [vmem:[#allocation119_spill] sm:$0xff]  ;;  %v3094_v17 = vpop.eup %3093  ;;  %v5378_v29 = vadd.f32 %v5124_v13, %v1107_v30  ;;  %v865_v45 = vmul.f32 0.125, %v7201_v20  ;;  %v1110_v35 = vmul.f32 %v5105_v12, %v1040_v5  ;;  %v7206_v20 = vld [vmem:[#allocation48_spill] sm:$0xff] }
 0x323   : > { %v863_v57 = vmul.f32 0.125, %v7197_v47  ;;  %v7200_v47 = vld [vmem:[#allocation46_spill] sm:$0xff]  ;;  %v3096_v6 = vpop.eup %3095  ;;  %7202 = vst [vmem:[#allocation16_spill] sm:$0xff] %v5383_v41  ;;  %v1042_v30 = vmul.f32 %v3092_v26, %v7204_v37  ;;  %v2304_v36 = vsel %vm2240_vm2, %v5230_v18, 0.0  ;;  %v5395_v19 = vadd.f32 %v5124_v13, %v1109_v38  ;;  %v7207_v37 = vld [vmem:[#allocation49_spill] sm:$0xff]  ;;  %v7208_v41 = vld [vmem:[#allocation127_spill] sm:$0xff] }
 0x324   : > { %7199 = vst [vmem:[#allocation84_spill] sm:$0xff] %v5378_v29  ;;  %v1041_v24 = vmul.f32 %v3090_v4, %v7200_v47  ;;  %v926_v55 = vadd.f32 1e-05, %v862_v16  ;;  %v2307_v4 = vsel %vm2240_vm2, %v5183_v11, 0.0  ;;  %v1043_v5 = vmul.f32 %v3094_v17, %v7206_v20  ;;  %v7209_v11 = vld [vmem:[#allocation50_spill] sm:$0xff] }
 0x325   : > { %v927_v29 = vadd.f32 1e-05, %v863_v57  ;;  %7205 = vst [vmem:[#allocation85_spill] sm:$0xff] %v5395_v19  ;;  %3113 = vrsqrt.f32 %v925_v52  ;;  %v928_v16 = vadd.f32 1e-05, %v864_v46  ;;  %v1044_v57 = vmul.f32 %v3096_v6, %v7207_v37 }
 0x326   : > { %2299 = vadd.xlane.f32.xlu1 %v2298_v53  ;;  %v5375_v22 = vpop.permute.xlu1 %2118  ;;  %2302 = vadd.xlane.f32.xlu0 %v2301_v40  ;;  %v7203_v53 = vld [vmem:[#allocation124_spill] sm:$0xff]  ;;  %v3098_v40 = vpop.eup %3097  ;;  %v929_v26 = vadd.f32 1e-05, %v865_v45  ;;  %v867_v18 = vmul.f32 0.125, %v7208_v41  ;;  %v5402_v54 = vadd.f32 %v5124_v13, %v1110_v35  ;;  %3115 = vrsqrt.f32 %v926_v55  ;;  %v7210_v35 = vld [vmem:[#allocation51_spill] sm:$0xff] }
 0x327   : > { %v866_v28 = vmul.f32 0.125, %v7203_v53  ;;  %v3100_v47 = vpop.eup %3099  ;;  %v1111_v53 = vmul.f32 %v5105_v12, %v1041_v24  ;;  %v1045_v38 = vmul.f32 %v3098_v40, %v7209_v11  ;;  %v1112_v46 = vmul.f32 %v5105_v12, %v1042_v30  ;;  %v7211_v55 = vld [vmem:[#allocation128_spill] sm:$0xff]  ;;  %v5415_v40 = vpop.permute.xlu0 %2124 }
 0x328   : > { %v3102_v52 = vpop.eup %3101  ;;  %3117 = vrsqrt.f32 %v927_v29  ;;  %v2310_v24 = vsel %vm2240_vm2, %v5250_v32, 0.0  ;;  %v2313_v6 = vsel %vm2240_vm2, %v5208_v27, 0.0  ;;  %v1113_v41 = vmul.f32 %v5105_v12, %v1043_v5  ;;  %v7212_v5 = vld [vmem:[#allocation52_spill] sm:$0xff] }
 0x329   : > { %v930_v19 = vadd.f32 1e-05, %v866_v28  ;;  %v3104_v45 = vpop.eup %3103  ;;  %3119 = vrsqrt.f32 %v928_v16  ;;  %v868_v28 = vmul.f32 0.125, %v7211_v55  ;;  %v5418_v29 = vadd.f32 %v5124_v13, %v1111_v53  ;;  %v7213_v16 = vld [vmem:[#allocation131_spill] sm:$0xff] }
 0x32a   : > { %2305 = vadd.xlane.f32.xlu1 %v2304_v36  ;;  %2308 = vadd.xlane.f32.xlu0 %v2307_v4  ;;  %v5405_v17 = vpop.permute.xlu1 %2122  ;;  %v1046_v36 = vmul.f32 %v3100_v47, %v7210_v35  ;;  %v3106_v30 = vpop.eup %3105  ;;  %v1114_v32 = vmul.f32 %v5105_v12, %v1044_v57  ;;  %3121 = vrsqrt.f32 %v929_v26  ;;  %v931_v27 = vadd.f32 1e-05, %v867_v18 }
 0x32b   : > { %v3108_v4 = vpop.eup %3107  ;;  %v1115_v20 = vmul.f32 %v5105_v12, %v1045_v38  ;;  %v1047_v47 = vmul.f32 %v3102_v52, %v7212_v5  ;;  %3123 = vrsqrt.f32 %v930_v19  ;;  %v869_v37 = vmul.f32 0.125, %v7213_v16  ;;  %v7216_v38 = vld [vmem:[#allocation54_spill] sm:$0xff] }
 0x32c   : > { %v5425_v11 = vadd.f32 %v5124_v13, %v1112_v46  ;;  %v2316_v53 = vsel %vm2240_vm2, %v5272_v62, 0.0  ;;  %v2319_v57 = vsel %vm2240_vm2, %v5232_v61, 0.0  ;;  %v5433_v26 = vadd.f32 %v5124_v13, %v1113_v41  ;;  %v7218_v62 = vld [vmem:[#allocation55_spill] sm:$0xff]  ;;  %v7219_v61 = vld [vmem:[#allocation132_spill] sm:$0xff] }
 0x32d   : > { %v1116_v18 = vmul.f32 %v5105_v12, %v1046_v36  ;;  %v1049_v19 = vmul.f32 %v3106_v30, %v7216_v38  ;;  %v932_v52 = vadd.f32 1e-05, %v868_v28  ;;  %v3110_v46 = vpop.eup %3109  ;;  %v1050_v55 = vmul.f32 %v3108_v4, %v7218_v62  ;;  %v7221_v30 = vld [vmem:[#allocation135_spill] sm:$0xff] }
 0x32e   : > { %2311 = vadd.xlane.f32.xlu1 %v2310_v24  ;;  %2314 = vadd.xlane.f32.xlu0 %v2313_v6  ;;  %v7214_v24 = vld [vmem:[#allocation53_spill] sm:$0xff]  ;;  %7215 = vst [vmem:[#allocation86_spill] sm:$0xff] %v5433_v26  ;;  %v5437_v35 = vpop.permute.xlu1 %2126  ;;  %3125 = vrsqrt.f32 %v931_v27  ;;  %v870_v5 = vmul.f32 0.125, %v7219_v61  ;;  %v3112_v41 = vpop.eup %3111  ;;  %v5445_v16 = vadd.f32 %v5124_v13, %v1115_v20  ;;  %v1117_v36 = vmul.f32 %v5105_v12, %v1047_v47 }
 0x32f   : > { %v1048_v6 = vmul.f32 %v3104_v45, %v7214_v24  ;;  %v5440_v45 = vadd.f32 %v5124_v13, %v1114_v32  ;;  %v933_v28 = vadd.f32 1e-05, %v869_v37  ;;  %v871_v24 = vmul.f32 0.125, %v7221_v30  ;;  %v7222_v32 = vld [vmem:[#allocation136_spill] sm:$0xff]  ;;  %v7225_v30 = vld [vmem:[#allocation57_spill] sm:$0xff] }
 0x330   : > { %7220 = vst [vmem:[#allocation19_spill] sm:$0xff] %v5445_v16  ;;  %v872_v38 = vmul.f32 0.125, %v7222_v32  ;;  %v2322_v27 = vsel %vm2240_vm2, %v5296_v48, 0.0  ;;  %v2325_v4 = vsel %vm2240_vm2, %v5259_v15, 0.0  ;;  %v5458_v20 = vadd.f32 %v5124_v13, %v1116_v18  ;;  %v7224_v37 = vld [vmem:[#allocation56_spill] sm:$0xff]  ;;  %v7226_v48 = vld [vmem:[#allocation139_spill] sm:$0xff] }
 0x331   : > { %7217 = vst [vmem:[#allocation18_spill] sm:$0xff] %v5440_v45  ;;  %v1119_v47 = vmul.f32 %v5105_v12, %v1049_v19  ;;  %v1051_v62 = vmul.f32 %v3110_v46, %v7224_v37  ;;  %3127 = vrsqrt.f32 %v932_v52  ;;  %v1052_v32 = vmul.f32 %v3112_v41, %v7225_v30 }
 0x332   : > { %2317 = vadd.xlane.f32.xlu1 %v2316_v53  ;;  %2320 = vadd.xlane.f32.xlu0 %v2319_v57  ;;  %v5449_v53 = vpop.permute.xlu0 %2128  ;;  %v1118_v57 = vmul.f32 %v5105_v12, %v1048_v6  ;;  %7223 = vst [vmem:[#allocation20_spill] sm:$0xff] %v5458_v20  ;;  %v3114_v61 = vpop.eup %3113  ;;  %v1120_v6 = vmul.f32 %v5105_v12, %v1050_v55  ;;  %v934_v16 = vadd.f32 1e-05, %v870_v5  ;;  %v873_v45 = vmul.f32 0.125, %v7226_v48  ;;  %v7228_v20 = vld [vmem:[#allocation140_spill] sm:$0xff]  ;;  %v7233_v48 = vld [vmem:[#allocation59_spill] sm:$0xff] }
 0x333   : > { %v5466_v15 = vadd.f32 %v5124_v13, %v1117_v36  ;;  %3129 = vrsqrt.f32 %v933_v28  ;;  %v935_v18 = vadd.f32 1e-05, %v871_v24  ;;  %v874_v19 = vmul.f32 0.125, %v7228_v20  ;;  %v5469_v26 = vpop.permute.xlu1 %2130  ;;  %v3116_v52 = vpop.eup %3115  ;;  %v7231_v24 = vld [vmem:[#allocation58_spill] sm:$0xff]  ;;  %v7232_v20 = vld [vmem:[#allocation143_spill] sm:$0xff] }
 0x334   : > { %v5472_v46 = vadd.f32 %v5124_v13, %v1118_v57  ;;  %v2328_v55 = vsel %vm2240_vm2, %v5314_v63, 0.0  ;;  %v2331_v5 = vsel %vm2240_vm2, %v5294_v0, 0.0  ;;  %v5479_v36 = vadd.f32 %v5124_v13, %v1119_v47 }
 0x335   : > { %7227 = vst [vmem:[#allocation21_spill] sm:$0xff] %v5466_v15  ;;  %v3118_v41 = vpop.eup %3117  ;;  %v1121_v28 = vmul.f32 %v5105_v12, %v1051_v62  ;;  %v875_v37 = vmul.f32 0.125, %v7232_v20  ;;  %v5487_v63 = vadd.f32 %v5124_v13, %v1120_v6  ;;  %v1122_v0 = vmul.f32 %v5105_v12, %v1052_v32  ;;  %v7237_v32 = vld [vmem:[#allocation61_spill] sm:$0xff] }
 0x336   : > { %2323 = vadd.xlane.f32.xlu1 %v2322_v27  ;;  %2326 = vadd.xlane.f32.xlu0 %v2325_v4  ;;  %7229 = vst [vmem:[#allocation87_spill] sm:$0xff] %v5472_v46  ;;  %v936_v27 = vadd.f32 1e-05, %v872_v38  ;;  %7230 = vst [vmem:[#allocation22_spill] sm:$0xff] %v5479_v36  ;;  %v1053_v4 = vmul.f32 %v3114_v61, %v7231_v24  ;;  %v5484_v30 = vpop.permute.xlu0 %2132  ;;  %v3120_v57 = vpop.eup %3119  ;;  %3131 = vrsqrt.f32 %v934_v16  ;;  %v937_v38 = vadd.f32 1e-05, %v873_v45 }
 0x337   : > { %v3122_v47 = vpop.eup %3121  ;;  %v1054_v36 = vmul.f32 %v3116_v52, %v7233_v48  ;;  %3133 = vrsqrt.f32 %v935_v18  ;;  %v938_v62 = vadd.f32 1e-05, %v874_v19  ;;  %v7234_v61 = vld [vmem:[#allocation144_spill] sm:$0xff]  ;;  %v2334_v6 = vsel %vm2240_vm2, %v5334_v59, 0.0  ;;  %v5502_v52 = vpop.permute.xlu1 %2134 }
 0x338   : > { %v876_v24 = vmul.f32 0.125, %v7234_v61  ;;  %v3124_v20 = vpop.eup %3123  ;;  %v7235_v46 = vld [vmem:[#allocation60_spill] sm:$0xff]  ;;  %3135 = vrsqrt.f32 %v936_v27  ;;  %v5498_v16 = vadd.f32 %v5124_v13, %v1121_v28  ;;  %v1123_v45 = vmul.f32 %v5105_v12, %v1053_v4  ;;  %v7239_v27 = vld [vmem:[#allocation62_spill] sm:$0xff]  ;;  %v7240_v28 = vld [vmem:[#allocation63_spill] sm:$0xff] }
 0x339   : > { %v1055_v15 = vmul.f32 %v3118_v41, %v7235_v46  ;;  %v1056_v18 = vmul.f32 %v3120_v57, %v7237_v32  ;;  %v939_v19 = vadd.f32 1e-05, %v875_v37  ;;  %v5505_v46 = vadd.f32 %v5124_v13, %v1122_v0 }
 0x33a   : > { %2329 = vadd.xlane.f32.xlu1 %v2328_v55  ;;  %2332 = vadd.xlane.f32.xlu0 %v2331_v5  ;;  %v2337_v55 = vsel %vm2240_vm2, %v5323_v14, 0.0  ;;  %7236 = vst [vmem:[#allocation23_spill] sm:$0xff] %v5498_v16  ;;  %v1057_v14 = vmul.f32 %v3122_v47, %v7239_v27  ;;  %3137 = vrsqrt.f32 %v937_v38  ;;  %v1728_v59 = vmul.f32 0.083333336, %v4808_v33  ;;  %v5511_v37 = vpop.permute.xlu0 %2136  ;;  %v5877_v16 = vld [vmem:[%s3590_s18 + $0xb0] sm:$0xff] }
 0x33b   : > { %7238 = vst [vmem:[#allocation88_spill] sm:$0xff] %v5505_v46  ;;  %v3126_v5 = vpop.eup %3125  ;;  %v1124_v41 = vmul.f32 %v5105_v12, %v1054_v36  ;;  %v1058_v4 = vmul.f32 %v3124_v20, %v7240_v28  ;;  %3139 = vrsqrt.f32 %v938_v62  ;;  %v940_v57 = vadd.f32 1e-05, %v876_v24  ;;  %v7243_v20 = vld [vmem:[#allocation147_spill] sm:$0xff]  ;;  %v5532_v32 = vpop.permute.xlu1 %2138  ;;  %v5860_v46 = vld [vmem:[%s3590_s18 + $0x98] sm:$0xff]  ;;  %7315 = vst [vmem:[#allocation102_spill] sm:$0xff] %v5877_v16 }
 0x33c   : > { %v1125_v48 = vmul.f32 %v5105_v12, %v1055_v15  ;;  %v1730_v61 = vmul.f32 0.083333336, %v4810_v44  ;;  %v2343_v0 = vsel %vm2240_vm2, %v5351_v21, 0.0  ;;  %v2340_v38 = vsel %vm2240_vm2, %v5353_v23, 0.0  ;;  %v7242_v44 = vld [vmem:[#allocation64_spill] sm:$0xff]  ;;  %7311 = vst [vmem:[#allocation100_spill] sm:$0xff] %v5860_v46 }
 0x33d   : > { %v5520_v33 = vadd.f32 %v5124_v13, %v1123_v45  ;;  %v1126_v36 = vmul.f32 %v5105_v12, %v1056_v18  ;;  %3141 = vrsqrt.f32 %v939_v19  ;;  %v1731_v47 = vmul.f32 0.083333336, %v4812_v2 }
 0x33e   : > { %2335 = vadd.xlane.f32.xlu1 %v2334_v6  ;;  %2338 = vadd.xlane.f32.xlu0 %v2337_v55  ;;  %v3128_v62 = vpop.eup %3127  ;;  %v1127_v15 = vmul.f32 %v5105_v12, %v1057_v14  ;;  %v1059_v24 = vmul.f32 %v3126_v5, %v7242_v44  ;;  %v877_v21 = vmul.f32 0.125, %v7243_v20  ;;  %v1792_v55 = vadd.f32 1e-05, %v1728_v59  ;;  %v7247_v5 = vld [vmem:[#allocation2_spill] sm:$0xff]  ;;  %v7252_v44 = vld [vmem:[#allocation151_spill] sm:$0xff] }
 0x33f   : > { %7241 = vst [vmem:[#allocation24_spill] sm:$0xff] %v5520_v33  ;;  %v5528_v23 = vadd.f32 %v5124_v13, %v1124_v41  ;;  %v1128_v6 = vmul.f32 %v5105_v12, %v1058_v4  ;;  %3143 = vrsqrt.f32 %v940_v57  ;;  %v1729_v45 = vmul.f32 0.083333336, %v4816_v10  ;;  %v5546_v4 = vpop.permute.xlu0 %2140 }
 0x340   : > { %v3130_v2 = vpop.eup %3129  ;;  %v5535_v18 = vadd.f32 %v5124_v13, %v1125_v48  ;;  %v1794_v19 = vadd.f32 1e-05, %v1730_v61  ;;  %v2349_v27 = vsel %vm2240_vm2, %v5387_v49, 0.0  ;;  %v2346_v14 = vsel %vm2240_vm2, %v5375_v22, 0.0 }
 0x341   : > { %7244 = vst [vmem:[#allocation89_spill] sm:$0xff] %v5528_v23  ;;  %v5542_v59 = vadd.f32 %v5124_v13, %v1126_v36  ;;  %v1060_v41 = vmul.f32 %v3128_v62, %v7247_v5  ;;  %v1795_v28 = vadd.f32 1e-05, %v1731_v47  ;;  %v1732_v10 = vmul.f32 0.083333336, %v4818_v25  ;;  %v7251_v36 = vld [vmem:[#allocation148_spill] sm:$0xff] }
 0x342   : > { %2341 = vadd.xlane.f32.xlu1 %v2340_v38  ;;  %2344 = vadd.xlane.f32.xlu0 %v2343_v0  ;;  %7245 = vst [vmem:[#allocation25_spill] sm:$0xff] %v5535_v18  ;;  %v5549_v57 = vadd.f32 %v5124_v13, %v1127_v15  ;;  %v1129_v49 = vmul.f32 %v5105_v12, %v1059_v24  ;;  %v941_v48 = vadd.f32 1e-05, %v877_v21  ;;  %3145 = vrsqrt.f32 %v1792_v55  ;;  %v7250_v0 = vld [vmem:[#allocation3_spill] sm:$0xff] }
 0x343   : > { %7246 = vst [vmem:[#allocation26_spill] sm:$0xff] %v5542_v59  ;;  %v3132_v22 = vpop.eup %3131  ;;  %v5553_v61 = vadd.f32 %v5124_v13, %v1128_v6  ;;  %v1061_v38 = vmul.f32 %v3130_v2, %v7250_v0  ;;  %v878_v47 = vmul.f32 0.125, %v7251_v36  ;;  %v1793_v25 = vadd.f32 1e-05, %v1729_v45  ;;  %v7253_v6 = vld [vmem:[#allocation152_spill] sm:$0xff]  ;;  %v7307_v18 = vld [vmem:[#allocation175_spill] sm:$0xff] }
 0x344   : > { %7248 = vst [vmem:[#allocation27_spill] sm:$0xff] %v5549_v57  ;;  %v3134_v62 = vpop.eup %3133  ;;  %v879_v20 = vmul.f32 0.125, %v7252_v44  ;;  %3147 = vrsqrt.f32 %v1794_v19  ;;  %v2355_v15 = vsel %vm2240_vm2, %v5415_v40, 0.0  ;;  %v2352_v24 = vsel %vm2240_vm2, %v5405_v17, 0.0  ;;  %v7255_v19 = vld [vmem:[#allocation4_spill] sm:$0xff] }
 0x345   : > { %7249 = vst [vmem:[#allocation90_spill] sm:$0xff] %v5553_v61  ;;  %v3136_v21 = vpop.eup %3135  ;;  %v1130_v55 = vmul.f32 %v5105_v12, %v1060_v41  ;;  %3149 = vrsqrt.f32 %v1795_v28  ;;  %v1796_v2 = vadd.f32 1e-05, %v1732_v10  ;;  %v5567_v45 = vadd.f32 %v5124_v13, %v1129_v49  ;;  %v7256_v41 = vld [vmem:[#allocation5_spill] sm:$0xff]  ;;  %v5573_v28 = vpop.permute.xlu0 %2144  ;;  %v7302_v61 = vld [vmem:[#allocation71_spill] sm:$0xff] }
 0x346   : > { %2347 = vadd.xlane.f32.xlu1 %v2346_v14  ;;  %2350 = vadd.xlane.f32.xlu0 %v2349_v27  ;;  %v880_v27 = vmul.f32 0.125, %v7253_v6  ;;  %v5564_v14 = vpop.permute.xlu1 %2142  ;;  %v1062_v5 = vmul.f32 %v3132_v22, %v7255_v19  ;;  %3151 = vrsqrt.f32 %v941_v48  ;;  %v1733_v40 = vmul.f32 0.083333336, %v4824_v60 }
 0x347   : > { %7254 = vst [vmem:[#allocation91_spill] sm:$0xff] %v5567_v45  ;;  %v3138_v17 = vpop.eup %3137  ;;  %v1131_v0 = vmul.f32 %v5105_v12, %v1061_v38  ;;  %v1063_v36 = vmul.f32 %v3134_v62, %v7256_v41  ;;  %v942_v44 = vadd.f32 1e-05, %v878_v47  ;;  %3153 = vrsqrt.f32 %v1793_v25  ;;  %v7259_v62 = vld [vmem:[#allocation7_spill] sm:$0xff] }
 0x348   : > { %v3140_v10 = vpop.eup %3139  ;;  %v943_v6 = vadd.f32 1e-05, %v879_v20  ;;  %v2361_v49 = vsel %vm2240_vm2, %v5449_v53, 0.0  ;;  %v2358_v48 = vsel %vm2240_vm2, %v5437_v35, 0.0  ;;  %v5581_v60 = vadd.f32 %v5124_v13, %v1130_v55  ;;  %v7262_v55 = vld [vmem:[#allocation8_spill] sm:$0xff] }
 0x349   : > { %v944_v22 = vadd.f32 1e-05, %v880_v27  ;;  %3155 = vrsqrt.f32 %v1796_v2  ;;  %v1734_v38 = vmul.f32 0.083333336, %v4826_v51  ;;  %v1132_v25 = vmul.f32 %v5105_v12, %v1062_v5 }
 0x34a   : > { %2353 = vadd.xlane.f32.xlu1 %v2352_v24  ;;  %2356 = vadd.xlane.f32.xlu0 %v2355_v15  ;;  %v7257_v24 = vld [vmem:[#allocation6_spill] sm:$0xff]  ;;  %7258 = vst [vmem:[#allocation92_spill] sm:$0xff] %v5581_v60  ;;  %v3142_v47 = vpop.eup %3141  ;;  %v1065_v20 = vmul.f32 %v3138_v17, %v7259_v62  ;;  %v1797_v53 = vadd.f32 1e-05, %v1733_v40  ;;  %v5588_v41 = vadd.f32 %v5124_v13, %v1131_v0  ;;  %3157 = vrsqrt.f32 %v942_v44  ;;  %v5592_v2 = vpop.permute.xlu1 %2146  ;;  %v7263_v17 = vld [vmem:[#allocation9_spill] sm:$0xff] }
 0x34b   : > { %v1064_v15 = vmul.f32 %v3136_v21, %v7257_v24  ;;  %v7260_v21 = vld [vmem:[#allocation155_spill] sm:$0xff]  ;;  %v1133_v35 = vmul.f32 %v5105_v12, %v1063_v36  ;;  %v1066_v27 = vmul.f32 %v3140_v10, %v7262_v55  ;;  %3159 = vrsqrt.f32 %v943_v6  ;;  %v5601_v10 = vpop.permute.xlu0 %2148  ;;  %v7300_v60 = vld [vmem:[#allocation70_spill] sm:$0xff] }
 0x34c   : > { %v881_v19 = vmul.f32 0.125, %v7260_v21  ;;  %7261 = vst [vmem:[#allocation28_spill] sm:$0xff] %v5588_v41  ;;  %v3144_v51 = vpop.eup %3143  ;;  %v2367_v5 = vsel %vm2240_vm2, %v5484_v30, 0.0  ;;  %v2364_v40 = vsel %vm2240_vm2, %v5469_v26, 0.0  ;;  %v1067_v0 = vmul.f32 %v3142_v47, %v7263_v17 }
 0x34d   : > { %v1134_v24 = vmul.f32 %v5105_v12, %v1064_v15  ;;  %3161 = vrsqrt.f32 %v944_v22  ;;  %v1735_v36 = vmul.f32 0.083333336, %v4832_v50  ;;  %v5604_v44 = vadd.f32 %v5124_v13, %v1132_v25  ;;  %v5609_v12 = vld [vmem:[%s6711_s1] ss:$0 sm:$0xff] }
 0x34e   : > { %2359 = vadd.xlane.f32.xlu1 %v2358_v48  ;;  %2362 = vadd.xlane.f32.xlu0 %v2361_v49  ;;  %v1798_v49 = vadd.f32 1e-05, %v1734_v38  ;;  %v1135_v26 = vmul.f32 %v5609_v12, %v1065_v20  ;;  %v945_v30 = vadd.f32 1e-05, %v881_v19  ;;  %3163 = vrsqrt.f32 %v1797_v53  ;;  %v7266_v48 = vld [vmem:[#allocation10_spill] sm:$0xff] }
 0x34f   : > { %7264 = vst [vmem:[#allocation29_spill] sm:$0xff] %v5604_v44  ;;  %v3146_v15 = vpop.eup %3145  ;;  %v5613_v6 = vadd.f32 %v5124_v13, %v1133_v35  ;;  %v1136_v50 = vmul.f32 %v5609_v12, %v1066_v27  ;;  %v1068_v22 = vmul.f32 %v3144_v51, %v7266_v48  ;;  %v1736_v38 = vmul.f32 0.083333336, %v4834_v31  ;;  %v5628_v31 = vpop.permute.xlu1 %2150 }
 0x350   : > { %v5619_v47 = vadd.f32 %v5124_v13, %v1134_v24  ;;  %v1737_v25 = vmul.f32 0.083333336, %v4840_v42  ;;  %v2373_v62 = vsel %vm2240_vm2, %v5511_v37, 0.0  ;;  %v2370_v20 = vsel %vm2240_vm2, %v5502_v52, 0.0  ;;  %v3476_v42 = vld [vmem:[%s6712_s2] ss:$0 sm:$0xff]  ;;  %v5646_v17 = vpop.permute.xlu0 %2152 }
 0x351   : > { %7265 = vst [vmem:[#allocation93_spill] sm:$0xff] %v5613_v6  ;;  %v3148_v21 = vpop.eup %3147  ;;  %v1137_v19 = vmul.f32 %v5609_v12, %v1067_v0  ;;  %3165 = vrsqrt.f32 %v1798_v49  ;;  %v1799_v53 = vadd.f32 1e-05, %v1735_v36  ;;  %v1738_v35 = vmul.f32 0.083333336, %v4842_v34  ;;  %v5636_v52 = vld [vmem:[%s3590_s18] sm:$0xff] }
 0x352   : > { %2365 = vadd.xlane.f32.xlu1 %v2364_v40  ;;  %2368 = vadd.xlane.f32.xlu0 %v2367_v5  ;;  %7267 = vst [vmem:[#allocation94_spill] sm:$0xff] %v5619_v47  ;;  %v3150_v13 = vpop.eup %3149  ;;  %v5633_v37 = vadd.f32 %v3476_v42, %v1135_v26  ;;  %3167 = vrsqrt.f32 %v945_v30  ;;  %v1920_v55 = vmul.f32 %v5636_v52, %v3146_v15  ;;  %v1739_v34 = vmul.f32 0.083333336, %v4848_v7  ;;  %v5649_v49 = vld [vmem:[%s3590_s18 + $0x10] sm:$0xff]  ;;  %v5785_v47 = vld [vmem:[%s3590_s18 + $0x60] sm:$0xff] }
 0x353   : > { %v3152_v27 = vpop.eup %3151  ;;  %v5640_v51 = vadd.f32 %v3476_v42, %v1136_v50  ;;  %v5643_v24 = vmul.f32 %v5609_v12, %v1068_v22  ;;  %v1800_v5 = vadd.f32 1e-05, %v1736_v38  ;;  %v1740_v40 = vmul.f32 0.083333336, %v4850_v1  ;;  %v5659_v50 = vld [vmem:[%s3590_s18 + $0x18] sm:$0xff]  ;;  %v7272_v38 = vld [vmem:[#allocation11_spill] sm:$0xff] }
 0x354   : > { %7268 = vst [vmem:[#allocation30_spill] sm:$0xff] %v5633_v37  ;;  %v3154_v0 = vpop.eup %3153  ;;  %v1922_v36 = vmul.f32 %v5649_v49, %v3148_v21  ;;  %v1801_v26 = vadd.f32 1e-05, %v1737_v25  ;;  %v2379_v7 = vsel %vm2240_vm2, %v5546_v4, 0.0  ;;  %v2376_v30 = vsel %vm2240_vm2, %v5532_v32, 0.0 }
 0x355   : > { %7269 = vst [vmem:[#allocation95_spill] sm:$0xff] %v5640_v51  ;;  %7270 = vst [vmem:[#allocation31_spill] sm:$0xff] %v5643_v24  ;;  %v5656_v15 = vadd.f32 %v3476_v42, %v1137_v19  ;;  %v1923_v1 = vmul.f32 %v5659_v50, %v3150_v13  ;;  %3169 = vrsqrt.f32 %v1799_v53  ;;  %v1802_v48 = vadd.f32 1e-05, %v1738_v35  ;;  %v5672_v35 = vpop.permute.xlu1 %2154 }
 0x356   : > { %2371 = vadd.xlane.f32.xlu1 %v2370_v20  ;;  %2374 = vadd.xlane.f32.xlu0 %v2373_v62  ;;  %v3156_v22 = vpop.eup %3155  ;;  %v5663_v62 = vmul.f32 %v3152_v27, %v7272_v38  ;;  %v1984_v25 = vmul.f32 %v5609_v12, %v1920_v55  ;;  %v1803_v4 = vadd.f32 1e-05, %v1739_v34  ;;  %v1741_v32 = vmul.f32 0.083333336, %v4856_v3  ;;  %v5668_v20 = vld [vmem:[%s3590_s18 + $0x8] sm:$0xff] }
 0x357   : > { %7271 = vst [vmem:[#allocation96_spill] sm:$0xff] %v5656_v15  ;;  %v1921_v21 = vmul.f32 %v5668_v20, %v3154_v0  ;;  %3171 = vrsqrt.f32 %v1800_v5  ;;  %v1804_v19 = vadd.f32 1e-05, %v1740_v40  ;;  %v1742_v53 = vmul.f32 0.083333336, %v4858_v58  ;;  %v5674_v13 = vpop.eup %3157  ;;  %v5685_v5 = vld [vmem:[%s3590_s18 + $0x20] sm:$0xff]  ;;  %v2157_v0 = vpop.permute.xlu0 %2156 }
 0x358   : > { %7273 = vst [vmem:[#allocation32_spill] sm:$0xff] %v5663_v62  ;;  %7274 = vst [vmem:[#allocation33_spill] sm:$0xff] %v5674_v13  ;;  %v1986_v42 = vmul.f32 %v5609_v12, %v1922_v36  ;;  %3173 = vrsqrt.f32 %v1801_v26  ;;  %v2385_v55 = vsel %vm2240_vm2, %v5573_v28, 0.0  ;;  %v2382_v3 = vsel %vm2240_vm2, %v5564_v14, 0.0  ;;  %v5681_v34 = vpop.eup %3159  ;;  %v5758_v62 = vld [vmem:[%s3590_s18 + $0x40] sm:$0xff]  ;;  %v5768_v13 = vld [vmem:[%s3590_s18 + $0x48] sm:$0xff] }
 0x359   : > { %7275 = vst [vmem:[#allocation34_spill] sm:$0xff] %v5681_v34  ;;  %v1987_v27 = vmul.f32 %v5609_v12, %v1923_v1  ;;  %v1924_v58 = vmul.f32 %v5685_v5, %v3156_v22  ;;  %3175 = vrsqrt.f32 %v1802_v48  ;;  %v1743_v40 = vmul.f32 0.083333336, %v4864_v56  ;;  %v7277_v56 = vld [vmem:[#allocation158_spill] sm:$0xff]  ;;  %v7278_v22 = vld [vmem:[#allocation153_spill] sm:$0xff]  ;;  %v7286_v34 = vld [vmem:[#allocation163_spill] sm:$0xff] }
 0x35a   : > { %2377 = vadd.xlane.f32.xlu1 %v2376_v30  ;;  %2380 = vadd.xlane.f32.xlu0 %v2379_v7  ;;  %v5689_v36 = vpop.eup %3161  ;;  %v5693_v28 = vsel %vm240_vm0, %v5135_v39, %v1984_v25  ;;  %3177 = vrsqrt.f32 %v1803_v4  ;;  %v1805_v14 = vadd.f32 1e-05, %v1741_v32  ;;  %v1744_v26 = vmul.f32 0.083333336, %v4866_v43  ;;  %v7280_v25 = vld [vmem:[#allocation154_spill] sm:$0xff] }
 0x35b   : > { %7276 = vst [vmem:[#allocation97_spill] sm:$0xff] %v5689_v36  ;;  %v3164_v7 = vpop.eup %3163  ;;  %v1985_v30 = vmul.f32 %v5609_v12, %v1921_v21  ;;  %3179 = vrsqrt.f32 %v1804_v19  ;;  %v1806_v1 = vadd.f32 1e-05, %v1742_v53  ;;  %v1745_v48 = vmul.f32 0.083333336, %v7277_v56  ;;  %v7281_v19 = vld [vmem:[#allocation160_spill] sm:$0xff]  ;;  %v5713_v56 = vpop.permute.xlu1 %2158 }
 0x35c   : > { %v5700_v38 = vsel %vm240_vm0, %v7278_v22, %v1986_v42  ;;  %v2391_v39 = vsel %vm2240_vm2, %v5601_v10, 0.0  ;;  %v2388_v43 = vsel %vm2240_vm2, %v5592_v2, 0.0  ;;  %v5709_v4 = vsel %vm240_vm0, %v7280_v25, %v1987_v27  ;;  %v5716_v22 = vld [vmem:[%s3590_s18 + $0x28] sm:$0xff]  ;;  %v2161_v15 = vpop.permute.xlu0 %2160 }
 0x35d   : > { %v1988_v32 = vmul.f32 %v5609_v12, %v1924_v58  ;;  %v1807_v21 = vadd.f32 1e-05, %v1743_v40  ;;  %v1747_v53 = vmul.f32 0.083333336, %v7281_v19  ;;  %v1925_v10 = vmul.f32 %v5716_v22, %v3164_v7  ;;  %v7284_v58 = vld [vmem:[#allocation66_spill] sm:$0xff]  ;;  %v5733_v7 = vld [vmem:[%s3590_s18 + $0x30] sm:$0xff] }
 0x35e   : > { %2383 = vadd.xlane.f32.xlu1 %v2382_v3  ;;  %2386 = vadd.xlane.f32.xlu0 %v2385_v55  ;;  %v7279_v55 = vld [vmem:[#allocation159_spill] sm:$0xff]  ;;  %v3166_v42 = vpop.eup %3165  ;;  %3181 = vrsqrt.f32 %v1805_v14  ;;  %v1808_v2 = vadd.f32 1e-05, %v1744_v26  ;;  %v5724_v40 = vsel %vm240_vm0, %v7284_v58, %v1985_v30  ;;  %v1809_v19 = vadd.f32 1e-05, %v1745_v48 }
 0x35f   : > { %v1746_v3 = vmul.f32 0.083333336, %v7279_v55  ;;  %v7282_v55 = vld [vmem:[#allocation161_spill] sm:$0xff]  ;;  %v5720_v25 = vpop.eup %3167  ;;  %3183 = vrsqrt.f32 %v1806_v1  ;;  %v1750_v51 = vmul.f32 0.083333336, %v7286_v34  ;;  %v2397_v14 = vsel %vm2240_vm2, %v5646_v17, 0.0  ;;  %v2163_v37 = vpop.permute.xlu1 %2162 }
 0x360   : > { %v1748_v27 = vmul.f32 0.083333336, %v7282_v55  ;;  %7283 = vst [vmem:[#allocation35_spill] sm:$0xff] %v5720_v25  ;;  %v2394_v26 = vsel %vm2240_vm2, %v5628_v31, 0.0  ;;  %v1926_v55 = vmul.f32 %v5733_v7, %v3166_v42  ;;  %3185 = vrsqrt.f32 %v1807_v21  ;;  %v7287_v1 = vld [vmem:[#allocation164_spill] sm:$0xff]  ;;  %v7288_v17 = vld [vmem:[#allocation165_spill] sm:$0xff] }
 0x361   : > { %v1810_v36 = vadd.f32 1e-05, %v1746_v3  ;;  %v1811_v30 = vadd.f32 1e-05, %v1747_v53  ;;  %v1751_v48 = vmul.f32 0.083333336, %v7287_v1  ;;  %v1989_v3 = vmul.f32 %v5609_v12, %v1925_v10 }
 0x362   : > { %2389 = vadd.xlane.f32.xlu1 %v2388_v43  ;;  %2392 = vadd.xlane.f32.xlu0 %v2391_v39  ;;  %v7285_v43 = vld [vmem:[#allocation162_spill] sm:$0xff]  ;;  %v3170_v58 = vpop.eup %3169  ;;  %3187 = vrsqrt.f32 %v1808_v2  ;;  %v1812_v34 = vadd.f32 1e-05, %v1748_v27  ;;  %v7289_v25 = vld [vmem:[#allocation67_spill] sm:$0xff]  ;;  %v2400_v10 = vsel %vm2240_vm2, %v5672_v35, 0.0  ;;  %v1990_v27 = vmul.f32 %v5609_v12, %v1926_v55 }
 0x363   : > { %v1749_v39 = vmul.f32 0.083333336, %v7285_v43  ;;  %v1752_v43 = vmul.f32 0.083333336, %v7288_v17  ;;  %v5741_v31 = vsel %vm240_vm0, %v7289_v25, %v1988_v32  ;;  %3189 = vrsqrt.f32 %v1809_v19  ;;  %v7290_v21 = vld [vmem:[#allocation166_spill] sm:$0xff]  ;;  %v5749_v17 = vld [vmem:[%s3590_s18 + $0x38] sm:$0xff]  ;;  %v2165_v19 = vpop.permute.xlu0 %2164 }
 0x364   : > { %v1753_v53 = vmul.f32 0.083333336, %v7290_v21  ;;  %v3172_v1 = vpop.eup %3171  ;;  %3191 = vrsqrt.f32 %v1810_v36  ;;  %v1927_v32 = vmul.f32 %v5749_v17, %v3170_v58  ;;  %v1815_v25 = vadd.f32 1e-05, %v1751_v48  ;;  %v7293_v58 = vld [vmem:[#allocation168_spill] sm:$0xff] }
 0x365   : > { %v1813_v42 = vadd.f32 1e-05, %v1749_v39  ;;  %v3174_v2 = vpop.eup %3173  ;;  %3193 = vrsqrt.f32 %v1811_v30  ;;  %v1816_v35 = vadd.f32 1e-05, %v1752_v43  ;;  %v7292_v39 = vld [vmem:[#allocation167_spill] sm:$0xff]  ;;  %v1928_v30 = vmul.f32 %v5758_v62, %v3172_v1 }
 0x366   : > { %2395 = vadd.xlane.f32.xlu1 %v2394_v26  ;;  %2398 = vadd.xlane.f32.xlu0 %v2397_v14  ;;  %v1814_v14 = vadd.f32 1e-05, %v1750_v51  ;;  %v2403_v26 = vsel %vm2240_vm2, %v2157_v0, 0.0  ;;  %v3176_v36 = vpop.eup %3175  ;;  %v7291_v51 = vld [vmem:[#allocation156_spill] sm:$0xff]  ;;  %3195 = vrsqrt.f32 %v1812_v34  ;;  %v1754_v55 = vmul.f32 0.083333336, %v7292_v39 }
 0x367   : > { %v5754_v0 = vsel %vm240_vm0, %v7291_v51, %v1989_v3  ;;  %v3178_v21 = vpop.eup %3177  ;;  %3197 = vrsqrt.f32 %v1813_v42  ;;  %v1817_v48 = vadd.f32 1e-05, %v1753_v53  ;;  %v7294_v3 = vld [vmem:[#allocation169_spill] sm:$0xff]  ;;  %v2409_v34 = vsel %vm2240_vm2, %v2161_v15, 0.0  ;;  %v5772_v53 = vld [vmem:[%s3590_s18 + $0x50] sm:$0xff] }
 0x368   : > { %3199 = vrsqrt.f32 %v1814_v14  ;;  %v1756_v51 = vmul.f32 0.083333336, %v7294_v3  ;;  %v2406_v43 = vsel %vm2240_vm2, %v5713_v56, 0.0  ;;  %v1991_v39 = vmul.f32 %v5609_v12, %v1927_v32  ;;  %v2167_v14 = vpop.permute.xlu1 %2166  ;;  %v5780_v56 = vld [vmem:[%s3590_s18 + $0x58] sm:$0xff] }
 0x369   : > { %v1929_v42 = vmul.f32 %v5768_v13, %v3174_v2  ;;  %v1930_v1 = vmul.f32 %v5772_v53, %v3176_v36  ;;  %3201 = vrsqrt.f32 %v1815_v25  ;;  %v1931_v32 = vmul.f32 %v5780_v56, %v3178_v21 }
 0x36a   : > { %2401 = vadd.xlane.f32.xlu1 %v2400_v10  ;;  %2404 = vadd.xlane.f32.xlu0 %v2403_v26  ;;  %v1755_v26 = vmul.f32 0.083333336, %v7293_v58  ;;  %v3180_v10 = vpop.eup %3179  ;;  %v7295_v58 = vld [vmem:[#allocation68_spill] sm:$0xff]  ;;  %3203 = vrsqrt.f32 %v1816_v35  ;;  %v1818_v3 = vadd.f32 1e-05, %v1754_v55  ;;  %v1992_v2 = vmul.f32 %v5609_v12, %v1928_v30  ;;  %v7297_v55 = vld [vmem:[#allocation69_spill] sm:$0xff] }
 0x36b   : > { %v5777_v15 = vsel %vm240_vm0, %v7295_v58, %v1990_v27  ;;  %v3182_v24 = vpop.eup %3181  ;;  %v1932_v25 = vmul.f32 %v5785_v47, %v3180_v10  ;;  %3205 = vrsqrt.f32 %v1817_v48  ;;  %v1820_v27 = vadd.f32 1e-05, %v1756_v51  ;;  %v7296_v58 = vld [vmem:[#allocation170_spill] sm:$0xff]  ;;  %v7298_v48 = vld [vmem:[#allocation171_spill] sm:$0xff] }
 0x36c   : > { %v1819_v36 = vadd.f32 1e-05, %v1755_v26  ;;  %v1757_v6 = vmul.f32 0.083333336, %v7296_v58  ;;  %v2415_v44 = vsel %vm2240_vm2, %v2165_v19, 0.0  ;;  %v2412_v35 = vsel %vm2240_vm2, %v2163_v37, 0.0 }
 0x36d   : > { %v5793_v21 = vsel %vm240_vm0, %v7297_v55, %v1991_v39  ;;  %v1993_v30 = vmul.f32 %v5609_v12, %v1929_v42  ;;  %v1994_v10 = vmul.f32 %v5609_v12, %v1930_v1  ;;  %v1758_v41 = vmul.f32 0.083333336, %v7298_v48  ;;  %v5800_v58 = vld [vmem:[%s3590_s18 + $0x68] sm:$0xff]  ;;  %v7299_v37 = vld [vmem:[#allocation172_spill] sm:$0xff]  ;;  %v2171_v48 = vpop.permute.xlu1 %2170 }
 0x36e   : > { %2407 = vadd.xlane.f32.xlu1 %v2406_v43  ;;  %2410 = vadd.xlane.f32.xlu0 %v2409_v34  ;;  %v2169_v34 = vpop.permute.xlu0 %2168  ;;  %v3184_v43 = vpop.eup %3183  ;;  %v1995_v51 = vmul.f32 %v5609_v12, %v1931_v32  ;;  %v1933_v19 = vmul.f32 %v5800_v58, %v3182_v24  ;;  %3207 = vrsqrt.f32 %v1818_v3  ;;  %v1759_v39 = vmul.f32 0.083333336, %v7299_v37 }
 0x36f   : > { %v3186_v26 = vpop.eup %3185  ;;  %v5806_v42 = vsel %vm240_vm0, %v7300_v60, %v1992_v2  ;;  %v1996_v1 = vmul.f32 %v5609_v12, %v1932_v25  ;;  %3209 = vrsqrt.f32 %v1819_v36  ;;  %v1821_v45 = vadd.f32 1e-05, %v1757_v6  ;;  %v7303_v60 = vld [vmem:[#allocation157_spill] sm:$0xff]  ;;  %v5821_v25 = vld [vmem:[%s3590_s18 + $0x70] sm:$0xff] }
 0x370   : > { %v3188_v55 = vpop.eup %3187  ;;  %3211 = vrsqrt.f32 %v1820_v27  ;;  %v2421_v24 = vsel %vm2240_vm2, %v2169_v34, 0.0  ;;  %v2418_v3 = vsel %vm2240_vm2, %v2167_v14, 0.0  ;;  %v5814_v57 = vsel %vm240_vm0, %v7302_v61, %v1993_v30  ;;  %v7304_v14 = vld [vmem:[#allocation72_spill] sm:$0xff]  ;;  %v5830_v30 = vld [vmem:[%s3590_s18 + $0x78] sm:$0xff] }
 0x371   : > { %v3190_v32 = vpop.eup %3189  ;;  %v5818_v2 = vsel %vm240_vm0, %v7303_v60, %v1994_v10  ;;  %v1934_v36 = vmul.f32 %v5821_v25, %v3184_v43  ;;  %v1822_v27 = vadd.f32 1e-05, %v1758_v41  ;;  %v1997_v61 = vmul.f32 %v5609_v12, %v1933_v19  ;;  %v5838_v43 = vld [vmem:[%s3590_s18 + $0x80] sm:$0xff] }
 0x372   : > { %2413 = vadd.xlane.f32.xlu1 %v2412_v35  ;;  %2416 = vadd.xlane.f32.xlu0 %v2415_v44  ;;  %v7301_v44 = vld [vmem:[#allocation173_spill] sm:$0xff]  ;;  %v3192_v37 = vpop.eup %3191  ;;  %v2173_v6 = vpop.permute.xlu0 %2172  ;;  %v1935_v10 = vmul.f32 %v5830_v30, %v3186_v26  ;;  %v1823_v60 = vadd.f32 1e-05, %v1759_v39  ;;  %v5835_v41 = vsel %vm240_vm0, %v5235_v8, %v1996_v1  ;;  %7305 = vst [vmem:[#allocation98_spill] sm:$0xff] %v5838_v43  ;;  %3213 = vrsqrt.f32 %v1821_v45  ;;  %v5847_v1 = vld [vmem:[%s3590_s18 + $0x88] sm:$0xff] }
 0x373   : > { %v1760_v35 = vmul.f32 0.083333336, %v7301_v44  ;;  %v3194_v34 = vpop.eup %3193  ;;  %v5826_v44 = vsel %vm240_vm0, %v7304_v14, %v1995_v51  ;;  %v1762_v23 = vmul.f32 0.083333336, %v7307_v18  ;;  %v2427_v26 = vsel %vm2240_vm2, %v2173_v6, 0.0  ;;  %7308 = vst [vmem:[#allocation99_spill] sm:$0xff] %v5847_v1  ;;  %v2175_v45 = vpop.permute.xlu1 %2174 }
 0x374   : > { %v3196_v59 = vpop.eup %3195  ;;  %v2424_v39 = vsel %vm2240_vm2, %v2171_v48, 0.0  ;;  %v1998_v8 = vmul.f32 %v5609_v12, %v1934_v36  ;;  %3215 = vrsqrt.f32 %v1822_v27  ;;  %v7310_v6 = vld [vmem:[#allocation73_spill] sm:$0xff]  ;;  %v1999_v36 = vmul.f32 %v5609_v12, %v1935_v10  ;;  %v5865_v27 = vld [vmem:[%s3590_s18 + $0xa0] sm:$0xff] }
 0x375   : > { %v1824_v51 = vadd.f32 1e-05, %v1760_v35  ;;  %v3198_v19 = vpop.eup %3197  ;;  %v5851_v35 = vld [vmem:[%s3590_s18 + $0x90] sm:$0xff]  ;;  %v5856_v48 = vsel %vm240_vm0, %v7310_v6, %v1997_v61  ;;  %3217 = vrsqrt.f32 %v1823_v60  ;;  %7312 = vst [vmem:[#allocation101_spill] sm:$0xff] %v5865_v27  ;;  %v5869_v6 = vld [vmem:[%s3590_s18 + $0xa8] sm:$0xff]  ;;  %v2430_v60 = vsel %vm2240_vm2, %v2175_v45, 0.0 }
 0x376   : > { %2419 = vadd.xlane.f32.xlu1 %v2418_v3  ;;  %2422 = vadd.xlane.f32.xlu0 %v2421_v24  ;;  %v1936_v24 = vmul.f32 %v5838_v43, %v3188_v55  ;;  %v7306_v3 = vld [vmem:[#allocation174_spill] sm:$0xff]  ;;  %v3200_v33 = vpop.eup %3199  ;;  %v1937_v55 = vmul.f32 %v5847_v1, %v3190_v32  ;;  %7309 = vst [vmem:[#allocation36_spill] sm:$0xff] %v5851_v35  ;;  %7313 = vst [vmem:[#allocation37_spill] sm:$0xff] %v5869_v6 }
 0x377   : > { %v1761_v14 = vmul.f32 0.083333336, %v7306_v3  ;;  %v1938_v3 = vmul.f32 %v5851_v35, %v3192_v37  ;;  %v3202_v18 = vpop.eup %3201  ;;  %v1939_v32 = vmul.f32 %v5860_v46, %v3194_v34  ;;  %3219 = vrsqrt.f32 %v1824_v51  ;;  %v7314_v34 = vld [vmem:[#allocation176_spill] sm:$0xff]  ;;  %v5881_v51 = vld [vmem:[%s3590_s18 + $0xb8] sm:$0xff] }
 0x378   : > { %v3204_v1 = vpop.eup %3203  ;;  %v2000_v37 = vmul.f32 %v5609_v12, %v1936_v24  ;;  %v1941_v10 = vmul.f32 %v5869_v6, %v3198_v19  ;;  %v1826_v35 = vadd.f32 1e-05, %v1762_v23  ;;  %v1763_v46 = vmul.f32 0.083333336, %v7314_v34  ;;  %7316 = vst [vmem:[#allocation38_spill] sm:$0xff] %v5881_v51  ;;  %v7317_v19 = vld [vmem:[#allocation74_spill] sm:$0xff] }
 0x379   : > { %v3206_v61 = vpop.eup %3205  ;;  %v2001_v24 = vmul.f32 %v5609_v12, %v1937_v55  ;;  %v2002_v43 = vmul.f32 %v5609_v12, %v1938_v3  ;;  %v5886_v23 = vsel %vm240_vm0, %v7317_v19, %v1998_v8  ;;  %v7318_v34 = vld [vmem:[#allocation75_spill] sm:$0xff]  ;;  %v2003_v55 = vmul.f32 %v5609_v12, %v1939_v32  ;;  %v5894_v3 = vld [vmem:[%s3590_s18 + $0xc0] sm:$0xff] }
 0x37a   : > { %2425 = vadd.xlane.f32.xlu1 %v2424_v39  ;;  %2428 = vadd.xlane.f32.xlu0 %v2427_v26  ;;  %v1940_v26 = vmul.f32 %v5865_v27, %v3196_v59  ;;  %v1825_v39 = vadd.f32 1e-05, %v1761_v14  ;;  %v1942_v59 = vmul.f32 %v5877_v16, %v3200_v33  ;;  %v1943_v14 = vmul.f32 %v5881_v51, %v3202_v18  ;;  %v7320_v16 = vld [vmem:[#allocation76_spill] sm:$0xff]  ;;  %v5903_v8 = vld [vmem:[%s3590_s18 + $0xc8] sm:$0xff]  ;;  %v7324_v51 = vld [vmem:[#allocation77_spill] sm:$0xff] }
 0x37b   : > { %v5890_v45 = vsel %vm240_vm0, %v7318_v34, %v1999_v36  ;;  %7319 = vst [vmem:[#allocation103_spill] sm:$0xff] %v5894_v3  ;;  %v1944_v6 = vmul.f32 %v5894_v3, %v3204_v1  ;;  %v3208_v33 = vpop.eup %3207  ;;  %v5899_v27 = vsel %vm240_vm0, %v7320_v16, %v2000_v37  ;;  %7322 = vst [vmem:[#allocation107_spill] sm:$0xff] %v5903_v8  ;;  %v1827_v19 = vadd.f32 1e-05, %v1763_v46  ;;  %v7323_v1 = vld [vmem:[#allocation177_spill] sm:$0xff]  ;;  %v7326_v37 = vld [vmem:[#allocation78_spill] sm:$0xff] }
 0x37c   : > { %7321 = vst [vmem:[#allocation104_spill] sm:$0xff] %v5899_v27  ;;  %v2004_v18 = vmul.f32 %v5609_v12, %v1940_v26  ;;  %3221 = vrsqrt.f32 %v1825_v39  ;;  %v3210_v36 = vpop.eup %3209  ;;  %v2005_v32 = vmul.f32 %v5609_v12, %v1941_v10  ;;  %v1764_v34 = vmul.f32 0.083333336, %v7323_v1  ;;  %v7328_v10 = vld [vmem:[#allocation79_spill] sm:$0xff]  ;;  %v5924_v1 = vld [vmem:[%s3590_s18 + $0xd0] sm:$0xff] }
 0x37d   : > { %3223 = vrsqrt.f32 %v1826_v35  ;;  %v3212_v3 = vpop.eup %3211  ;;  %v5910_v16 = vsel %vm240_vm0, %v7324_v51, %v2001_v24  ;;  %v5914_v26 = vsel %vm240_vm0, %v7326_v37, %v2002_v43  ;;  %v2006_v39 = vmul.f32 %v5609_v12, %v1942_v59  ;;  %7330 = vst [vmem:[#allocation41_spill] sm:$0xff] %v5924_v1  ;;  %v7331_v51 = vld [vmem:[#allocation178_spill] sm:$0xff]  ;;  %v7332_v27 = vld [vmem:[#allocation80_spill] sm:$0xff] }
 0x37e   : > { %2431 = vadd.xlane.f32.xlu1 %v2430_v60  ;;  %v1945_v60 = vmul.f32 %v5903_v8, %v3206_v61  ;;  %7325 = vst [vmem:[#allocation39_spill] sm:$0xff] %v5910_v16  ;;  %7327 = vst [vmem:[#allocation108_spill] sm:$0xff] %v5914_v26  ;;  %v2007_v61 = vmul.f32 %v5609_v12, %v1943_v14  ;;  %v5920_v35 = vsel %vm240_vm0, %v7328_v10, %v2003_v55  ;;  %v5934_v14 = vld [vmem:[%s3590_s18 + $0xd8] sm:$0xff]  ;;  %v5942_v10 = vld [vmem:[%s3590_s18 + $0xe0] sm:$0xff] }
 0x37f   : > { %7329 = vst [vmem:[#allocation40_spill] sm:$0xff] %v5920_v35  ;;  %v2008_v46 = vmul.f32 %v5609_v12, %v1944_v6  ;;  %v1946_v24 = vmul.f32 %v5924_v1, %v3208_v33  ;;  %v1765_v8 = vmul.f32 0.083333336, %v7331_v51  ;;  %v5930_v43 = vsel %vm240_vm0, %v7332_v27, %v2004_v18  ;;  %7334 = vst [vmem:[#allocation42_spill] sm:$0xff] %v5934_v14  ;;  %v3214_v1 = vpop.eup %3213  ;;  %v7337_v27 = vld [vmem:[#allocation15_spill] sm:$0xff]  ;;  %v7352_v35 = vld [vmem:[#allocation109_spill] sm:$0xff] }
 0x380   : > { %7333 = vst [vmem:[#allocation111_spill] sm:$0xff] %v5930_v43  ;;  %v2009_v59 = vmul.f32 %v5609_v12, %v1945_v60  ;;  %v1947_v55 = vmul.f32 %v5934_v14, %v3210_v36  ;;  %v5939_v6 = vsel %vm240_vm0, %v5317_v9, %v2005_v32  ;;  %7336 = vst [vmem:[#allocation43_spill] sm:$0xff] %v5942_v10  ;;  %3225 = vrsqrt.f32 %v1827_v19  ;;  %v7339_v60 = vld [vmem:[#allocation81_spill] sm:$0xff]  ;;  %v7341_v36 = vld [vmem:[#allocation179_spill] sm:$0xff] }
 0x381   : > { %7335 = vst [vmem:[#allocation112_spill] sm:$0xff] %v5939_v6  ;;  %v1948_v33 = vmul.f32 %v5942_v10, %v3212_v3  ;;  %v1828_v51 = vadd.f32 1e-05, %v1764_v34  ;;  %v5947_v18 = vsel %vm240_vm0, %v7337_v27, %v2006_v39  ;;  %v5951_v43 = vsel %vm240_vm0, %v7339_v60, %v2007_v61  ;;  %v3216_v32 = vpop.eup %3215  ;;  %v7342_v14 = vld [vmem:[#allocation17_spill] sm:$0xff] }
 0x382   : > { %7338 = vst [vmem:[#allocation44_spill] sm:$0xff] %v5947_v18  ;;  %7340 = vst [vmem:[#allocation115_spill] sm:$0xff] %v5951_v43  ;;  %v5956_v6 = vsel %vm240_vm0, %v7342_v14, %v2008_v46  ;;  %v2010_v3 = vmul.f32 %v5609_v12, %v1946_v24  ;;  %v1829_v19 = vadd.f32 1e-05, %v1765_v8  ;;  %v7344_v34 = vld [vmem:[#allocation105_spill] sm:$0xff]  ;;  %v3218_v10 = vpop.eup %3217  ;;  %v7345_v18 = vld [vmem:[#allocation82_spill] sm:$0xff] }
 0x383   : > { %v2243_v16 = vpop.xlane.xlu0 %2242  ;;  %7343 = vst [vmem:[#allocation45_spill] sm:$0xff] %v5956_v6  ;;  %v1767_v39 = vmul.f32 0.083333336, %v7344_v34  ;;  %v5962_v61 = vsel %vm240_vm0, %v7345_v18, %v2009_v59  ;;  %v2012_v46 = vmul.f32 %v5609_v12, %v1948_v33  ;;  %v5967_v14 = vld [vmem:[%s3590_s18 + $0xe8] sm:$0xff]  ;;  %v7348_v24 = vld [vmem:[#allocation180_spill] sm:$0xff] }
 0x384   : > { %v2434_v37 = vmul.f32 0.1, %v2243_v16  ;;  %v1766_v16 = vmul.f32 0.083333336, %v7341_v36  ;;  %7346 = vst [vmem:[#allocation116_spill] sm:$0xff] %v5962_v61  ;;  %v3220_v36 = vpop.eup %3219  ;;  %7347 = vst [vmem:[#allocation119_spill] sm:$0xff] %v5967_v14  ;;  %v1949_v8 = vmul.f32 %v5967_v14, %v3214_v1 }
 0x385   : > { %v1768_v34 = vmul.f32 0.083333336, %v7348_v24  ;;  %v5972_v6 = vld [vmem:[%s3590_s18 + $0xf0] sm:$0xff]  ;;  %v7350_v61 = vld [vmem:[#allocation106_spill] sm:$0xff]  ;;  %v1831_v43 = vadd.f32 1e-05, %v1767_v39 }
 0x386   : > { %v2498_v9 = vadd.f32 1e-05, %v2434_v37  ;;  %v2011_v37 = vmul.f32 %v5609_v12, %v1947_v55  ;;  %7349 = vst [vmem:[#allocation120_spill] sm:$0xff] %v5972_v6  ;;  %v1950_v59 = vmul.f32 %v5972_v6, %v3216_v32  ;;  %v1830_v18 = vadd.f32 1e-05, %v1766_v16  ;;  %v5986_v14 = vld [vmem:[%s3590_s18 + $0x100] sm:$0xff] }
 0x387   : > { %v2249_v27 = vpop.xlane.xlu0 %2248  ;;  %v1769_v55 = vmul.f32 0.083333336, %v7350_v61  ;;  %v1770_v26 = vmul.f32 0.083333336, %v7352_v35  ;;  %7354 = vst [vmem:[#allocation123_spill] sm:$0xff] %v5986_v14  ;;  %v1952_v16 = vmul.f32 %v5986_v14, %v3220_v36  ;;  %v2013_v35 = vmul.f32 %v5609_v12, %v1949_v8 }
 0x388   : > { %3227 = vrsqrt.f32 %v2498_v9  ;;  %v2436_v60 = vmul.f32 0.1, %v2249_v27  ;;  %v5977_v27 = vld [vmem:[%s3590_s18 + $0xf8] sm:$0xff]  ;;  %v1832_v39 = vadd.f32 1e-05, %v1768_v34 }
 0x389   : > { %3229 = vrsqrt.f32 %v1828_v51  ;;  %7351 = vst [vmem:[#allocation46_spill] sm:$0xff] %v5977_v27  ;;  %v1951_v33 = vmul.f32 %v5977_v27, %v3218_v10  ;;  %v7353_v51 = vld [vmem:[#allocation83_spill] sm:$0xff]  ;;  %v3222_v61 = vpop.eup %3221  ;;  %v7356_v10 = vld [vmem:[#allocation16_spill] sm:$0xff]  ;;  %v1833_v36 = vadd.f32 1e-05, %v1769_v55 }
 0x38a   : > { %v2500_v9 = vadd.f32 1e-05, %v2436_v60  ;;  %3231 = vrsqrt.f32 %v1829_v19  ;;  %v5983_v24 = vsel %vm240_vm0, %v7353_v51, %v2010_v3  ;;  %v7355_v60 = vld [vmem:[#allocation84_spill] sm:$0xff]  ;;  %v5995_v19 = vsel %vm240_vm0, %v7356_v10, %v2012_v46  ;;  %v3224_v3 = vpop.eup %3223 }
 0x38b   : > { %v2252_v1 = vpop.xlane.xlu0 %2251  ;;  %v5991_v6 = vsel %vm240_vm0, %v7355_v60, %v2011_v37  ;;  %7357 = vst [vmem:[#allocation124_spill] sm:$0xff] %v5995_v19  ;;  %v2014_v51 = vmul.f32 %v5609_v12, %v1950_v59  ;;  %v1834_v37 = vadd.f32 1e-05, %v1770_v26  ;;  %v7358_v60 = vld [vmem:[#allocation110_spill] sm:$0xff]  ;;  %v2016_v10 = vmul.f32 %v5609_v12, %v1952_v16  ;;  %v7359_v19 = vld [vmem:[#allocation85_spill] sm:$0xff] }
 0x38c   : > { %3233 = vrsqrt.f32 %v2500_v9  ;;  %v2437_v32 = vmul.f32 0.1, %v2252_v1  ;;  %v2015_v1 = vmul.f32 %v5609_v12, %v1951_v33  ;;  %v1771_v14 = vmul.f32 0.083333336, %v7358_v60  ;;  %v6011_v33 = vld [vmem:[%s3590_s18 + $0x110] sm:$0xff] }
 0x38d   : > { %3235 = vrsqrt.f32 %v1830_v18  ;;  %v6004_v59 = vsel %vm240_vm0, %v7359_v19, %v2013_v35  ;;  %v6007_v18 = vld [vmem:[%s3590_s18 + $0x108] sm:$0xff]  ;;  %v1954_v26 = vmul.f32 %v6011_v33, %v3224_v3  ;;  %v6017_v19 = vsel %vm240_vm0, %v5402_v54, %v2014_v51  ;;  %v6030_v51 = vld [vmem:[%s3590_s18 + $0x118] sm:$0xff] }
 0x38e   : > { %v2501_v9 = vadd.f32 1e-05, %v2437_v32  ;;  %3237 = vrsqrt.f32 %v1831_v43  ;;  %v1953_v55 = vmul.f32 %v6007_v18, %v3222_v61  ;;  %v3226_v43 = vpop.eup %3225  ;;  %v7360_v32 = vld [vmem:[#allocation113_spill] sm:$0xff]  ;;  %v6021_v35 = vsel %vm240_vm0, %v5418_v29, %v2015_v1  ;;  %7361 = vst [vmem:[#allocation47_spill] sm:$0xff] %v6030_v51 }
 0x38f   : > { %v2246_v27 = vpop.xlane.xlu1 %2245  ;;  %v2255_v46 = vpop.xlane.xlu0 %2254  ;;  %v1772_v16 = vmul.f32 0.083333336, %v7360_v32  ;;  %v1835_v61 = vadd.f32 1e-05, %v1771_v14  ;;  %v2018_v54 = vmul.f32 %v5609_v12, %v1954_v26  ;;  %v1955_v29 = vmul.f32 %v6030_v51, %v3226_v43  ;;  %v7362_v32 = vld [vmem:[#allocation114_spill] sm:$0xff]  ;;  %v6056_v51 = vld [vmem:[%s3590_s18 + $0x128] sm:$0xff] }
 0x390   : > { %3239 = vrsqrt.f32 %v2501_v9  ;;  %v2435_v8 = vmul.f32 0.1, %v2246_v27  ;;  %v2438_v34 = vmul.f32 0.1, %v2255_v46  ;;  %7366 = vst [vmem:[#allocation127_spill] sm:$0xff] %v6056_v51 }
 0x391   : > { %3241 = vrsqrt.f32 %v1832_v39  ;;  %v6025_v39 = vsel %vm240_vm0, %v5425_v11, %v2016_v10  ;;  %v1836_v1 = vadd.f32 1e-05, %v1772_v16 }
 0x392   : > { %3243 = vrsqrt.f32 %v1833_v36  ;;  %v2499_v27 = vadd.f32 1e-05, %v2435_v8  ;;  %v2502_v9 = vadd.f32 1e-05, %v2438_v34  ;;  %v2017_v34 = vmul.f32 %v5609_v12, %v1953_v55 }
 0x393   : > { %3245 = vrsqrt.f32 %v1834_v37  ;;  %v2258_v60 = vpop.xlane.xlu1 %2257  ;;  %v2261_v3 = vpop.xlane.xlu0 %2260 }
 0x394   : > { %3247 = vrsqrt.f32 %v2499_v27  ;;  %v2439_v36 = vmul.f32 0.1, %v2258_v60  ;;  %v2440_v46 = vmul.f32 0.1, %v2261_v3  ;;  %v1773_v27 = vmul.f32 0.083333336, %v7362_v32 }
 0x395   : > { %v3228_v8 = vpop.eup %3227  ;;  %3249 = vrsqrt.f32 %v2502_v9 }
 0x396   : > { %v3230_v14 = vpop.eup %3229  ;;  %v2626_v37 = vmul.f32 %v5636_v52, %v3228_v8  ;;  %v2503_v11 = vadd.f32 1e-05, %v2439_v36  ;;  %v2504_v10 = vadd.f32 1e-05, %v2440_v46  ;;  %3251 = vrsqrt.f32 %v1835_v61  ;;  %v7363_v61 = vld [vmem:[#allocation86_spill] sm:$0xff] }
 0x397   : > { %v2264_v55 = vpop.xlane.xlu1 %2263  ;;  %v2267_v26 = vpop.xlane.xlu0 %2266  ;;  %v6045_v3 = vsel %vm240_vm0, %v7363_v61, %v2017_v34  ;;  %v2019_v36 = vmul.f32 %v5609_v12, %v1955_v29  ;;  %v6049_v46 = vld [vmem:[%s3590_s18 + $0x120] sm:$0xff]  ;;  %v1837_v61 = vadd.f32 1e-05, %v1773_v27  ;;  %v7367_v29 = vld [vmem:[#allocation117_spill] sm:$0xff] }
 0x398   : > { %v3232_v60 = vpop.eup %3231  ;;  %v2690_v52 = vmul.f32 %v5609_v12, %v2626_v37  ;;  %3253 = vrsqrt.f32 %v2503_v11  ;;  %v2441_v43 = vmul.f32 0.1, %v2264_v55  ;;  %v2442_v16 = vmul.f32 0.1, %v2267_v26  ;;  %7364 = vst [vmem:[#allocation48_spill] sm:$0xff] %v6045_v3  ;;  %7365 = vst [vmem:[#allocation49_spill] sm:$0xff] %v6049_v46 }
 0x399   : > { %v3234_v9 = vpop.eup %3233  ;;  %v1956_v8 = vmul.f32 %v6049_v46, %v3230_v14  ;;  %3255 = vrsqrt.f32 %v2504_v10  ;;  %v1957_v34 = vmul.f32 %v6056_v51, %v3232_v60  ;;  %v1774_v3 = vmul.f32 0.083333336, %v7367_v29 }
 0x39a   : > { %v2819_v32 = vsel %vm2818_vm3, %v5693_v28, %v2690_v52  ;;  %v2628_v37 = vmul.f32 %v5649_v49, %v3234_v9  ;;  %v2505_v11 = vadd.f32 1e-05, %v2441_v43  ;;  %v2506_v55 = vadd.f32 1e-05, %v2442_v16  ;;  %v3236_v26 = vpop.eup %3235  ;;  %v7368_v16 = vld [vmem:[#allocation18_spill] sm:$0xff] }
 0x39b   : > { %3257 = vrsqrt.f32 %v1836_v1  ;;  %2884 = vst.msk [vmem:[%s6040_s4] sm:$0xff] %vm2883_vm4, %v2819_v32  ;;  %v2270_v14 = vpop.xlane.xlu1 %2269  ;;  %v2273_v10 = vpop.xlane.xlu0 %2272  ;;  %v6065_v60 = vsel %vm240_vm0, %v7368_v16, %v2018_v54  ;;  %v7369_v1 = vld [vmem:[#allocation19_spill] sm:$0xff]  ;;  %v2020_v9 = vmul.f32 %v5609_v12, %v1956_v8  ;;  %v2021_v54 = vmul.f32 %v5609_v12, %v1957_v34  ;;  %v6081_v16 = vld [vmem:[%s3590_s18 + $0x130] sm:$0xff] }
 0x39c   : > { %v3238_v46 = vpop.eup %3237  ;;  %v2692_v28 = vmul.f32 %v5609_v12, %v2628_v37  ;;  %3259 = vrsqrt.f32 %v2505_v11  ;;  %v2443_v49 = vmul.f32 0.1, %v2270_v14  ;;  %v2444_v52 = vmul.f32 0.1, %v2273_v10  ;;  %7371 = vst [vmem:[#allocation51_spill] sm:$0xff] %v6081_v16  ;;  %v7372_v34 = vld [vmem:[#allocation20_spill] sm:$0xff] }
 0x39d   : > { %v3240_v43 = vpop.eup %3239  ;;  %v6069_v27 = vsel %vm240_vm0, %v7369_v1, %v2019_v36  ;;  %3261 = vrsqrt.f32 %v2506_v55  ;;  %v1958_v36 = vmul.f32 %v6081_v16, %v3236_v26  ;;  %v1838_v8 = vadd.f32 1e-05, %v1774_v3  ;;  %v7373_v26 = vld [vmem:[#allocation118_spill] sm:$0xff]  ;;  %v7374_v3 = vld [vmem:[#allocation121_spill] sm:$0xff] }
 0x39e   : > { %7370 = vst [vmem:[#allocation50_spill] sm:$0xff] %v6069_v27  ;;  %v6072_v32 = vpop.eup %3241  ;;  %v2821_v37 = vsel %vm2818_vm3, %v5700_v38, %v2692_v28  ;;  %v2629_v11 = vmul.f32 %v5659_v50, %v3240_v43  ;;  %v2507_v29 = vadd.f32 1e-05, %v2443_v49  ;;  %v2508_v14 = vadd.f32 1e-05, %v2444_v52 }
 0x39f   : > { %v6077_v10 = vpop.eup %3243  ;;  %3263 = vrsqrt.f32 %v1837_v61  ;;  %2886 = vst.msk [vmem:[%s6040_s4 + $0x10] sm:$0xff] %vm2883_vm4, %v2821_v37  ;;  %v2276_v55 = vpop.xlane.xlu1 %2275  ;;  %v6091_v52 = vsel %vm240_vm0, %v7372_v34, %v2020_v9  ;;  %v1775_v61 = vmul.f32 0.083333336, %v7373_v26  ;;  %v1776_v43 = vmul.f32 0.083333336, %v7374_v3 }
 0x3a0   : > { %v2279_v1 = vpop.xlane.xlu0 %2278  ;;  %v6086_v51 = vpop.eup %3245  ;;  %v2693_v50 = vmul.f32 %v5609_v12, %v2629_v11  ;;  %3265 = vrsqrt.f32 %v2507_v29  ;;  %v2445_v38 = vmul.f32 0.1, %v2276_v55  ;;  %v2022_v9 = vmul.f32 %v5609_v12, %v1958_v36 }
 0x3a1   : > { %v2446_v28 = vmul.f32 0.1, %v2279_v1  ;;  %v3248_v49 = vpop.eup %3247  ;;  %3267 = vrsqrt.f32 %v2508_v14  ;;  %v7375_v1 = vld [vmem:[#allocation21_spill] sm:$0xff] }
 0x3a2   : > { %v3250_v37 = vpop.eup %3249  ;;  %v2822_v16 = vsel %vm2818_vm3, %v5709_v4, %v2693_v50  ;;  %v2627_v11 = vmul.f32 %v5668_v20, %v3248_v49  ;;  %v2509_v29 = vadd.f32 1e-05, %v2445_v38  ;;  %v6100_v27 = vsel %vm240_vm0, %v7375_v1, %v2021_v54  ;;  %v6110_v54 = vld [vmem:[%s3590_s18 + $0x138] sm:$0xff] }
 0x3a3   : > { %v2510_v55 = vadd.f32 1e-05, %v2446_v28  ;;  %3269 = vrsqrt.f32 %v1838_v8  ;;  %2887 = vst.msk [vmem:[%s6040_s4 + $0x18] sm:$0xff] %vm2883_vm4, %v2822_v16  ;;  %v2630_v14 = vmul.f32 %v5685_v5, %v3250_v37  ;;  %v2282_v34 = vpop.xlane.xlu1 %2281  ;;  %v6106_v3 = vpop.eup %3251  ;;  %v1959_v36 = vmul.f32 %v6110_v54, %v3238_v46 }
 0x3a4   : > { %v2285_v26 = vpop.xlane.xlu0 %2284  ;;  %v2691_v20 = vmul.f32 %v5609_v12, %v2627_v11  ;;  %3271 = vrsqrt.f32 %v2509_v29  ;;  %v2447_v4 = vmul.f32 0.1, %v2282_v34  ;;  %v1839_v8 = vadd.f32 1e-05, %v1775_v61  ;;  %v7376_v29 = vld [vmem:[#allocation87_spill] sm:$0xff] }
 0x3a5   : > { %v2448_v50 = vmul.f32 0.1, %v2285_v26  ;;  %v3254_v38 = vpop.eup %3253  ;;  %v2694_v16 = vmul.f32 %v5609_v12, %v2630_v14  ;;  %3273 = vrsqrt.f32 %v2510_v55  ;;  %v6119_v1 = vsel %vm240_vm0, %v7376_v29, %v2022_v9 }
 0x3a6   : > { %v3256_v5 = vpop.eup %3255  ;;  %v2820_v28 = vsel %vm2818_vm3, %v5724_v40, %v2691_v20  ;;  %v2631_v49 = vmul.f32 %v5716_v22, %v3254_v38  ;;  %v2511_v37 = vadd.f32 1e-05, %v2447_v4  ;;  %v1840_v34 = vadd.f32 1e-05, %v1776_v43  ;;  %v6133_v4 = vld [vmem:[%s3590_s18 + $0x140] sm:$0xff] }
 0x3a7   : > { %v2512_v11 = vadd.f32 1e-05, %v2448_v50  ;;  %2885 = vst.msk [vmem:[%s6040_s4 + $0x8] sm:$0xff] %vm2883_vm4, %v2820_v28  ;;  %v2823_v46 = vsel %vm2818_vm3, %v5741_v31, %v2694_v16  ;;  %v2632_v61 = vmul.f32 %v5733_v7, %v3256_v5  ;;  %v2288_v55 = vpop.xlane.xlu1 %2287  ;;  %v2023_v20 = vmul.f32 %v5609_v12, %v1959_v36 }
 0x3a8   : > { %v2291_v14 = vpop.xlane.xlu0 %2290  ;;  %v6126_v40 = vpop.eup %3257  ;;  %2888 = vst.msk [vmem:[%s6040_s4 + $0x20] sm:$0xff] %vm2883_vm4, %v2823_v46  ;;  %v2695_v22 = vmul.f32 %v5609_v12, %v2631_v49  ;;  %3275 = vrsqrt.f32 %v2511_v37  ;;  %v2449_v9 = vmul.f32 0.1, %v2288_v55  ;;  %v1960_v7 = vmul.f32 %v6133_v4, %v6072_v32  ;;  %v7377_v49 = vld [vmem:[#allocation122_spill] sm:$0xff] }
 0x3a9   : > { %v2450_v26 = vmul.f32 0.1, %v2291_v14  ;;  %v3260_v43 = vpop.eup %3259  ;;  %v2696_v31 = vmul.f32 %v5609_v12, %v2632_v61  ;;  %3277 = vrsqrt.f32 %v2512_v11  ;;  %v1777_v36 = vmul.f32 0.083333336, %v7377_v49  ;;  %v7378_v14 = vld [vmem:[#allocation125_spill] sm:$0xff] }
 0x3aa   : > { %v3262_v50 = vpop.eup %3261  ;;  %v2824_v38 = vsel %vm2818_vm3, %v5754_v0, %v2695_v22  ;;  %v2633_v16 = vmul.f32 %v5749_v17, %v3260_v43  ;;  %v2513_v5 = vadd.f32 1e-05, %v2449_v9  ;;  %3279 = vrsqrt.f32 %v1839_v8 }
 0x3ab   : > { %v2514_v28 = vadd.f32 1e-05, %v2450_v26  ;;  %2889 = vst.msk [vmem:[%s6040_s4 + $0x28] sm:$0xff] %vm2883_vm4, %v2824_v38  ;;  %v2825_v32 = vsel %vm2818_vm3, %v5777_v15, %v2696_v31  ;;  %v2634_v37 = vmul.f32 %v5758_v62, %v3262_v50  ;;  %v2294_v29 = vpop.xlane.xlu1 %2293  ;;  %v2024_v55 = vmul.f32 %v5609_v12, %v1960_v7  ;;  %v7379_v50 = vld [vmem:[#allocation22_spill] sm:$0xff] }
 0x3ac   : > { %v2297_v11 = vpop.xlane.xlu0 %2296  ;;  %v6147_v46 = vpop.eup %3263  ;;  %2890 = vst.msk [vmem:[%s6040_s4 + $0x30] sm:$0xff] %vm2883_vm4, %v2825_v32  ;;  %v2697_v17 = vmul.f32 %v5609_v12, %v2633_v16  ;;  %3281 = vrsqrt.f32 %v2513_v5  ;;  %v2451_v0 = vmul.f32 0.1, %v2294_v29  ;;  %v1778_v22 = vmul.f32 0.083333336, %v7378_v14  ;;  %v6173_v32 = vld [vmem:[%s3590_s18 + $0x148] sm:$0xff] }
 0x3ad   : > { %v2452_v8 = vmul.f32 0.1, %v2297_v11  ;;  %v3266_v61 = vpop.eup %3265  ;;  %v2698_v62 = vmul.f32 %v5609_v12, %v2634_v37  ;;  %3283 = vrsqrt.f32 %v2514_v28  ;;  %v6160_v38 = vsel %vm240_vm0, %v7379_v50, %v2023_v20 }
 0x3ae   : > { %v3268_v15 = vpop.eup %3267  ;;  %v2826_v9 = vsel %vm2818_vm3, %v5793_v21, %v2697_v17  ;;  %v2635_v26 = vmul.f32 %v5768_v13, %v3266_v61  ;;  %v2515_v43 = vadd.f32 1e-05, %v2451_v0  ;;  %3285 = vrsqrt.f32 %v1840_v34 }
 0x3af   : > { %v2516_v31 = vadd.f32 1e-05, %v2452_v8  ;;  %2891 = vst.msk [vmem:[%s6040_s4 + $0x38] sm:$0xff] %vm2883_vm4, %v2826_v9  ;;  %v2827_v7 = vsel %vm2818_vm3, %v5806_v42, %v2698_v62  ;;  %v2636_v16 = vmul.f32 %v5772_v53, %v3268_v15  ;;  %v2300_v5 = vpop.xlane.xlu1 %2299  ;;  %v1961_v42 = vmul.f32 %v6173_v32, %v6077_v10  ;;  %v6200_v15 = vld [vmem:[%s3590_s18 + $0x150] sm:$0xff] }
 0x3b0   : > { %v2303_v28 = vpop.xlane.xlu0 %2302  ;;  %v6167_v21 = vpop.eup %3269  ;;  %2892 = vst.msk [vmem:[%s6040_s4 + $0x40] sm:$0xff] %vm2883_vm4, %v2827_v7  ;;  %v2699_v13 = vmul.f32 %v5609_v12, %v2635_v26  ;;  %3287 = vrsqrt.f32 %v2515_v43  ;;  %v2453_v20 = vmul.f32 0.1, %v2300_v5  ;;  %v1841_v53 = vadd.f32 1e-05, %v1777_v36 }
 0x3b1   : > { %v2454_v49 = vmul.f32 0.1, %v2303_v28  ;;  %v3272_v34 = vpop.eup %3271  ;;  %v2700_v37 = vmul.f32 %v5609_v12, %v2636_v16  ;;  %3289 = vrsqrt.f32 %v2516_v31  ;;  %v6183_v61 = vsel %vm240_vm0, %v5487_v63, %v2024_v55  ;;  %v7380_v16 = vld [vmem:[#allocation126_spill] sm:$0xff] }
 0x3b2   : > { %v3274_v29 = vpop.eup %3273  ;;  %v2828_v11 = vsel %vm2818_vm3, %v5814_v57, %v2699_v13  ;;  %v2637_v17 = vmul.f32 %v5780_v56, %v3272_v34  ;;  %v2517_v0 = vadd.f32 1e-05, %v2453_v20  ;;  %v1842_v14 = vadd.f32 1e-05, %v1778_v22  ;;  %v6195_v57 = vld [vmem:[%s6711_s1] ss:$0 sm:$0xff] }
 0x3b3   : > { %v2518_v8 = vadd.f32 1e-05, %v2454_v49  ;;  %2893 = vst.msk [vmem:[%s6040_s4 + $0x48] sm:$0xff] %vm2883_vm4, %v2828_v11  ;;  %v2829_v12 = vsel %vm2818_vm3, %v5818_v2, %v2700_v37  ;;  %v2638_v10 = vmul.f32 %v5785_v47, %v3274_v29  ;;  %v2306_v36 = vpop.xlane.xlu1 %2305  ;;  %v2025_v2 = vmul.f32 %v6195_v57, %v1961_v42  ;;  %v7381_v37 = vld [vmem:[#allocation129_spill] sm:$0xff] }
 0x3b4   : > { %v2309_v62 = vpop.xlane.xlu0 %2308  ;;  %2894 = vst.msk [vmem:[%s6040_s4 + $0x50] sm:$0xff] %vm2883_vm4, %v2829_v12  ;;  %v2701_v63 = vmul.f32 %v6195_v57, %v2637_v17  ;;  %3291 = vrsqrt.f32 %v2517_v0  ;;  %v2455_v56 = vmul.f32 0.1, %v2306_v36  ;;  %v1962_v47 = vmul.f32 %v6200_v15, %v6086_v51  ;;  %v7382_v12 = vld [vmem:[#allocation23_spill] sm:$0xff] }
 0x3b5   : > { %v2456_v55 = vmul.f32 0.1, %v2309_v62  ;;  %v3276_v22 = vpop.eup %3275  ;;  %v2702_v9 = vmul.f32 %v6195_v57, %v2638_v10  ;;  %3293 = vrsqrt.f32 %v2518_v8  ;;  %v1779_v5 = vmul.f32 0.083333336, %v7380_v16  ;;  %v7383_v62 = vld [vmem:[#allocation98_spill] sm:$0xff] }
 0x3b6   : > { %v3278_v26 = vpop.eup %3277  ;;  %v2830_v43 = vsel %vm2818_vm3, %v5826_v44, %v2701_v63  ;;  %v2639_v31 = vmul.f32 %v5800_v58, %v3276_v22  ;;  %v2519_v50 = vadd.f32 1e-05, %v2455_v56  ;;  %3295 = vrsqrt.f32 %v1841_v53 }
 0x3b7   : > { %v2520_v7 = vadd.f32 1e-05, %v2456_v55  ;;  %2895 = vst.msk [vmem:[%s6040_s4 + $0x58] sm:$0xff] %vm2883_vm4, %v2830_v43  ;;  %v2831_v51 = vsel %vm2818_vm3, %v5835_v41, %v2702_v9  ;;  %v2640_v28 = vmul.f32 %v5821_v25, %v3278_v26  ;;  %v2312_v13 = vpop.xlane.xlu1 %2311  ;;  %v6214_v49 = vpop.eup %3279  ;;  %v2026_v53 = vmul.f32 %v6195_v57, %v1962_v47  ;;  %v6240_v47 = vld [vmem:[%s3590_s18 + $0x158] sm:$0xff] }
 0x3b8   : > { %v2315_v20 = vpop.xlane.xlu0 %2314  ;;  %2896 = vst.msk [vmem:[%s6040_s4 + $0x60] sm:$0xff] %vm2883_vm4, %v2831_v51  ;;  %v2703_v58 = vmul.f32 %v6195_v57, %v2639_v31  ;;  %3297 = vrsqrt.f32 %v2519_v50  ;;  %v2457_v44 = vmul.f32 0.1, %v2312_v13  ;;  %v1780_v29 = vmul.f32 0.083333336, %v7381_v37  ;;  %v7384_v50 = vld [vmem:[#allocation99_spill] sm:$0xff] }
 0x3b9   : > { %v2458_v34 = vmul.f32 0.1, %v2315_v20  ;;  %v3282_v42 = vpop.eup %3281  ;;  %v2704_v25 = vmul.f32 %v6195_v57, %v2640_v28  ;;  %3299 = vrsqrt.f32 %v2520_v7  ;;  %v6227_v10 = vsel %vm240_vm0, %v7382_v12, %v2025_v2  ;;  %v7385_v28 = vld [vmem:[#allocation88_spill] sm:$0xff] }
 0x3ba   : > { %v3284_v41 = vpop.eup %3283  ;;  %v2832_v11 = vsel %vm2818_vm3, %v5856_v48, %v2703_v58  ;;  %v2641_v17 = vmul.f32 %v5830_v30, %v3282_v42  ;;  %v2521_v0 = vadd.f32 1e-05, %v2457_v44  ;;  %3301 = vrsqrt.f32 %v1842_v14  ;;  %v7387_v58 = vld [vmem:[#allocation36_spill] sm:$0xff] }
 0x3bb   : > { %v2522_v8 = vadd.f32 1e-05, %v2458_v34  ;;  %2897 = vst.msk [vmem:[%s6040_s4 + $0x68] sm:$0xff] %vm2883_vm4, %v2832_v11  ;;  %v2833_v36 = vsel %vm2818_vm3, %v5886_v23, %v2704_v25  ;;  %v2642_v63 = vmul.f32 %v7383_v62, %v3284_v41  ;;  %v2318_v56 = vpop.xlane.xlu1 %2317  ;;  %v6234_v48 = vpop.eup %3285  ;;  %v1963_v23 = vmul.f32 %v6240_v47, %v6106_v3  ;;  %v7386_v3 = vld [vmem:[#allocation104_spill] sm:$0xff]  ;;  %v6262_v41 = vld [vmem:[%s3590_s18 + $0x160] sm:$0xff] }
 0x3bc   : > { %v2321_v55 = vpop.xlane.xlu0 %2320  ;;  %2898 = vst.msk [vmem:[%s6040_s4 + $0x70] sm:$0xff] %vm2883_vm4, %v2833_v36  ;;  %v2705_v30 = vmul.f32 %v6195_v57, %v2641_v17  ;;  %3303 = vrsqrt.f32 %v2521_v0  ;;  %v2459_v22 = vmul.f32 0.1, %v2318_v56  ;;  %v1843_v9 = vadd.f32 1e-05, %v1779_v5  ;;  %v7389_v36 = vld [vmem:[#allocation100_spill] sm:$0xff] }
 0x3bd   : > { %v2460_v2 = vmul.f32 0.1, %v2321_v55  ;;  %v3288_v14 = vpop.eup %3287  ;;  %v2706_v26 = vmul.f32 %v6195_v57, %v2642_v63  ;;  %3305 = vrsqrt.f32 %v2522_v8  ;;  %v6250_v13 = vsel %vm240_vm0, %v7385_v28, %v2026_v53  ;;  %v7388_v8 = vld [vmem:[#allocation39_spill] sm:$0xff]  ;;  %v7390_v55 = vld [vmem:[#allocation130_spill] sm:$0xff] }
 0x3be   : > { %v3290_v43 = vpop.eup %3289  ;;  %v2834_v31 = vsel %vm2818_vm3, %v5890_v45, %v2705_v30  ;;  %v2643_v7 = vmul.f32 %v7384_v50, %v3288_v14  ;;  %v2523_v16 = vadd.f32 1e-05, %v2459_v22  ;;  %v1844_v20 = vadd.f32 1e-05, %v1780_v29  ;;  %v7391_v22 = vld [vmem:[#allocation108_spill] sm:$0xff] }
 0x3bf   : > { %v2524_v51 = vadd.f32 1e-05, %v2460_v2  ;;  %2899 = vst.msk [vmem:[%s6040_s4 + $0x78] sm:$0xff] %vm2883_vm4, %v2834_v31  ;;  %v2835_v5 = vsel %vm2818_vm3, %v7386_v3, %v2706_v26  ;;  %v2644_v44 = vmul.f32 %v7387_v58, %v3290_v43  ;;  %v2324_v34 = vpop.xlane.xlu1 %2323  ;;  %v2027_v29 = vmul.f32 %v6195_v57, %v1963_v23  ;;  %v7392_v2 = vld [vmem:[#allocation101_spill] sm:$0xff]  ;;  %v7394_v58 = vld [vmem:[#allocation40_spill] sm:$0xff] }
 0x3c0   : > { %v2327_v42 = vpop.xlane.xlu0 %2326  ;;  %2900 = vst.msk [vmem:[%s6040_s4 + $0x80] sm:$0xff] %vm2883_vm4, %v2835_v5  ;;  %v2707_v45 = vmul.f32 %v6195_v57, %v2643_v7  ;;  %3307 = vrsqrt.f32 %v2523_v16  ;;  %v2461_v37 = vmul.f32 0.1, %v2324_v34  ;;  %v1964_v11 = vmul.f32 %v6262_v41, %v6126_v40  ;;  %v7395_v34 = vld [vmem:[#allocation37_spill] sm:$0xff] }
 0x3c1   : > { %v2462_v25 = vmul.f32 0.1, %v2327_v42  ;;  %v3292_v53 = vpop.eup %3291  ;;  %v2708_v17 = vmul.f32 %v6195_v57, %v2644_v44  ;;  %3309 = vrsqrt.f32 %v2524_v51  ;;  %v1781_v30 = vmul.f32 0.083333336, %v7390_v55  ;;  %v7393_v51 = vld [vmem:[#allocation133_spill] sm:$0xff]  ;;  %v6302_v55 = vld [vmem:[%s3590_s18 + $0x168] sm:$0xff] }
 0x3c2   : > { %v3294_v0 = vpop.eup %3293  ;;  %v2836_v12 = vsel %vm2818_vm3, %v7388_v8, %v2707_v45  ;;  %v2645_v62 = vmul.f32 %v7389_v36, %v3292_v53  ;;  %v2525_v63 = vadd.f32 1e-05, %v2461_v37  ;;  %3311 = vrsqrt.f32 %v1843_v9 }
 0x3c3   : > { %v2526_v56 = vadd.f32 1e-05, %v2462_v25  ;;  %2901 = vst.msk [vmem:[%s6040_s4 + $0x88] sm:$0xff] %vm2883_vm4, %v2836_v12  ;;  %v2837_v40 = vsel %vm2818_vm3, %v7391_v22, %v2708_v17  ;;  %v2646_v14 = vmul.f32 %v7392_v2, %v3294_v0  ;;  %v2330_v23 = vpop.xlane.xlu1 %2329  ;;  %v6276_v43 = vpop.eup %3295  ;;  %v2028_v16 = vmul.f32 %v6195_v57, %v1964_v11  ;;  %v7396_v25 = vld [vmem:[#allocation24_spill] sm:$0xff]  ;;  %v7397_v11 = vld [vmem:[#allocation111_spill] sm:$0xff]  ;;  %v7398_v0 = vld [vmem:[#allocation102_spill] sm:$0xff] }
 0x3c4   : > { %v2333_v26 = vpop.xlane.xlu0 %2332  ;;  %2902 = vst.msk [vmem:[%s6040_s4 + $0x90] sm:$0xff] %vm2883_vm4, %v2837_v40  ;;  %v2709_v31 = vmul.f32 %v6195_v57, %v2645_v62  ;;  %3313 = vrsqrt.f32 %v2525_v63  ;;  %v2463_v9 = vmul.f32 0.1, %v2330_v23  ;;  %v1782_v28 = vmul.f32 0.083333336, %v7393_v51  ;;  %v7399_v23 = vld [vmem:[#allocation112_spill] sm:$0xff] }
 0x3c5   : > { %v2464_v50 = vmul.f32 0.1, %v2333_v26  ;;  %v3298_v7 = vpop.eup %3297  ;;  %v2710_v3 = vmul.f32 %v6195_v57, %v2646_v14  ;;  %3315 = vrsqrt.f32 %v2526_v56  ;;  %v6289_v53 = vsel %vm240_vm0, %v7396_v25, %v2027_v29  ;;  %v7401_v51 = vld [vmem:[#allocation89_spill] sm:$0xff] }
 0x3c6   : > { %v3300_v5 = vpop.eup %3299  ;;  %v2838_v44 = vsel %vm2818_vm3, %v7394_v58, %v2709_v31  ;;  %v2647_v42 = vmul.f32 %v7395_v34, %v3298_v7  ;;  %v2527_v45 = vadd.f32 1e-05, %v2463_v9  ;;  %3317 = vrsqrt.f32 %v1844_v20  ;;  %v7400_v31 = vld [vmem:[#allocation38_spill] sm:$0xff]  ;;  %v7403_v58 = vld [vmem:[#allocation103_spill] sm:$0xff] }
 0x3c7   : > { %v2528_v37 = vadd.f32 1e-05, %v2464_v50  ;;  %2903 = vst.msk [vmem:[%s6040_s4 + $0x98] sm:$0xff] %vm2883_vm4, %v2838_v44  ;;  %v2839_v17 = vsel %vm2818_vm3, %v7397_v11, %v2710_v3  ;;  %v2648_v8 = vmul.f32 %v7398_v0, %v3300_v5  ;;  %v2336_v12 = vpop.xlane.xlu1 %2335  ;;  %v6296_v62 = vpop.eup %3301  ;;  %v1965_v22 = vmul.f32 %v6302_v55, %v6147_v46  ;;  %v7402_v46 = vld [vmem:[#allocation44_spill] sm:$0xff] }
 0x3c8   : > { %v2339_v36 = vpop.xlane.xlu0 %2338  ;;  %2904 = vst.msk [vmem:[%s6040_s4 + $0xa0] sm:$0xff] %vm2883_vm4, %v2839_v17  ;;  %v2711_v63 = vmul.f32 %v6195_v57, %v2647_v42  ;;  %3319 = vrsqrt.f32 %v2527_v45  ;;  %v2465_v29 = vmul.f32 0.1, %v2336_v12  ;;  %v1845_v40 = vadd.f32 1e-05, %v1781_v30  ;;  %v6324_v11 = vld [vmem:[%s3590_s18 + $0x170] sm:$0xff] }
 0x3c9   : > { %v2466_v56 = vmul.f32 0.1, %v2339_v36  ;;  %v3304_v20 = vpop.eup %3303  ;;  %v2712_v2 = vmul.f32 %v6195_v57, %v2648_v8  ;;  %3321 = vrsqrt.f32 %v2528_v37  ;;  %v6312_v3 = vsel %vm240_vm0, %v7401_v51, %v2028_v16  ;;  %v7404_v12 = vld [vmem:[#allocation115_spill] sm:$0xff] }
 0x3ca   : > { %v3306_v14 = vpop.eup %3305  ;;  %v2840_v26 = vsel %vm2818_vm3, %v7399_v23, %v2711_v63  ;;  %v2649_v9 = vmul.f32 %v7400_v31, %v3304_v20  ;;  %v2529_v50 = vadd.f32 1e-05, %v2465_v29  ;;  %v1846_v5 = vadd.f32 1e-05, %v1782_v28  ;;  %v7405_v63 = vld [vmem:[#allocation107_spill] sm:$0xff]  ;;  %v7408_v23 = vld [vmem:[#allocation41_spill] sm:$0xff] }
 0x3cb   : > { %v2530_v7 = vadd.f32 1e-05, %v2466_v56  ;;  %2905 = vst.msk [vmem:[%s6040_s4 + $0xa8] sm:$0xff] %vm2883_vm4, %v2840_v26  ;;  %v2841_v30 = vsel %vm2818_vm3, %v7402_v46, %v2712_v2  ;;  %v2650_v44 = vmul.f32 %v7403_v58, %v3306_v14  ;;  %v2342_v34 = vpop.xlane.xlu1 %2341  ;;  %v2029_v28 = vmul.f32 %v6195_v57, %v1965_v22  ;;  %v7406_v2 = vld [vmem:[#allocation134_spill] sm:$0xff]  ;;  %v7407_v14 = vld [vmem:[#allocation45_spill] sm:$0xff] }
 0x3cc   : > { %v2345_v42 = vpop.xlane.xlu0 %2344  ;;  %2906 = vst.msk [vmem:[%s6040_s4 + $0xb0] sm:$0xff] %vm2883_vm4, %v2841_v30  ;;  %v2713_v45 = vmul.f32 %v6195_v57, %v2649_v9  ;;  %3323 = vrsqrt.f32 %v2529_v50  ;;  %v2467_v37 = vmul.f32 0.1, %v2342_v34  ;;  %v1966_v17 = vmul.f32 %v6324_v11, %v6167_v21  ;;  %v7409_v58 = vld [vmem:[#allocation137_spill] sm:$0xff] }
 0x3cd   : > { %v2468_v25 = vmul.f32 0.1, %v2345_v42  ;;  %v3308_v16 = vpop.eup %3307  ;;  %v2714_v0 = vmul.f32 %v6195_v57, %v2650_v44  ;;  %3325 = vrsqrt.f32 %v2530_v7  ;;  %v1783_v22 = vmul.f32 0.083333336, %v7406_v2 }
 0x3ce   : > { %v3310_v8 = vpop.eup %3309  ;;  %v2842_v36 = vsel %vm2818_vm3, %v7404_v12, %v2713_v45  ;;  %v2651_v29 = vmul.f32 %v7405_v63, %v3308_v16  ;;  %v2531_v56 = vadd.f32 1e-05, %v2467_v37  ;;  %3327 = vrsqrt.f32 %v1845_v40  ;;  %v7410_v45 = vld [vmem:[#allocation116_spill] sm:$0xff]  ;;  %v7412_v12 = vld [vmem:[#allocation25_spill] sm:$0xff]  ;;  %v7413_v63 = vld [vmem:[#allocation43_spill] sm:$0xff] }
 0x3cf   : > { %v2532_v20 = vadd.f32 1e-05, %v2468_v25  ;;  %2907 = vst.msk [vmem:[%s6040_s4 + $0xb8] sm:$0xff] %vm2883_vm4, %v2842_v36  ;;  %v2843_v21 = vsel %vm2818_vm3, %v7407_v14, %v2714_v0  ;;  %v2652_v26 = vmul.f32 %v7408_v23, %v3310_v8  ;;  %v2348_v31 = vpop.xlane.xlu1 %2347  ;;  %v6338_v50 = vpop.eup %3311  ;;  %v2030_v30 = vmul.f32 %v6195_v57, %v1966_v17  ;;  %v7411_v25 = vld [vmem:[#allocation42_spill] sm:$0xff]  ;;  %v6364_v23 = vld [vmem:[%s3590_s18 + $0x178] sm:$0xff] }
 0x3d0   : > { %v2351_v9 = vpop.xlane.xlu0 %2350  ;;  %2908 = vst.msk [vmem:[%s6040_s4 + $0xc0] sm:$0xff] %vm2883_vm4, %v2843_v21  ;;  %v2715_v7 = vmul.f32 %v6195_v57, %v2651_v29  ;;  %3329 = vrsqrt.f32 %v2531_v56  ;;  %v2469_v40 = vmul.f32 0.1, %v2348_v31  ;;  %v1784_v44 = vmul.f32 0.083333336, %v7409_v58 }
 0x3d1   : > { %v2470_v51 = vmul.f32 0.1, %v2351_v9  ;;  %v3314_v46 = vpop.eup %3313  ;;  %v2716_v34 = vmul.f32 %v6195_v57, %v2652_v26  ;;  %3331 = vrsqrt.f32 %v2532_v20  ;;  %v6351_v36 = vsel %vm240_vm0, %v7412_v12, %v2029_v28 }
 0x3d2   : > { %v3316_v42 = vpop.eup %3315  ;;  %v2844_v37 = vsel %vm2818_vm3, %v7410_v45, %v2715_v7  ;;  %v2653_v16 = vmul.f32 %v7411_v25, %v3314_v46  ;;  %v2533_v0 = vadd.f32 1e-05, %v2469_v40  ;;  %3333 = vrsqrt.f32 %v1846_v5  ;;  %v7414_v40 = vld [vmem:[#allocation119_spill] sm:$0xff] }
 0x3d3   : > { %v2534_v8 = vadd.f32 1e-05, %v2470_v51  ;;  %2909 = vst.msk [vmem:[%s6040_s4 + $0xc8] sm:$0xff] %vm2883_vm4, %v2844_v37  ;;  %v2845_v17 = vsel %vm2818_vm3, %v5983_v24, %v2716_v34  ;;  %v2654_v29 = vmul.f32 %v7413_v63, %v3316_v42  ;;  %v2354_v56 = vpop.xlane.xlu1 %2353  ;;  %v6358_v2 = vpop.eup %3317  ;;  %v1967_v24 = vmul.f32 %v6364_v23, %v6214_v49  ;;  %v7415_v34 = vld [vmem:[#allocation26_spill] sm:$0xff]  ;;  %v7416_v49 = vld [vmem:[#allocation124_spill] sm:$0xff] }
 0x3d4   : > { %v2357_v20 = vpop.xlane.xlu0 %2356  ;;  %2910 = vst.msk [vmem:[%s6040_s4 + $0xd0] sm:$0xff] %vm2883_vm4, %v2845_v17  ;;  %v2717_v14 = vmul.f32 %v6195_v57, %v2653_v16  ;;  %3335 = vrsqrt.f32 %v2533_v0  ;;  %v2471_v28 = vmul.f32 0.1, %v2354_v56  ;;  %v1847_v26 = vadd.f32 1e-05, %v1783_v22  ;;  %v7417_v37 = vld [vmem:[#allocation120_spill] sm:$0xff] }
 0x3d5   : > { %v2472_v21 = vmul.f32 0.1, %v2357_v20  ;;  %v3320_v5 = vpop.eup %3319  ;;  %v2718_v31 = vmul.f32 %v6195_v57, %v2654_v29  ;;  %3337 = vrsqrt.f32 %v2534_v8  ;;  %v6374_v42 = vsel %vm240_vm0, %v7415_v34, %v2030_v30  ;;  %v6386_v17 = vld [vmem:[%s3590_s18 + $0x180] sm:$0xff] }
 0x3d6   : > { %v3322_v9 = vpop.eup %3321  ;;  %v2846_v7 = vsel %vm2818_vm3, %v5991_v6, %v2717_v14  ;;  %v2655_v51 = vmul.f32 %v7414_v40, %v3320_v5  ;;  %v2535_v46 = vadd.f32 1e-05, %v2471_v28  ;;  %v1848_v45 = vadd.f32 1e-05, %v1784_v44  ;;  %v7418_v14 = vld [vmem:[#allocation46_spill] sm:$0xff] }
 0x3d7   : > { %v2536_v58 = vadd.f32 1e-05, %v2472_v21  ;;  %2911 = vst.msk [vmem:[%s6040_s4 + $0xd8] sm:$0xff] %vm2883_vm4, %v2846_v7  ;;  %v2847_v22 = vsel %vm2818_vm3, %v7416_v49, %v2718_v31  ;;  %v2656_v25 = vmul.f32 %v7417_v37, %v3322_v9  ;;  %v2360_v16 = vpop.xlane.xlu1 %2359  ;;  %v2031_v44 = vmul.f32 %v6195_v57, %v1967_v24  ;;  %v7419_v31 = vld [vmem:[#allocation138_spill] sm:$0xff]  ;;  %v7420_v9 = vld [vmem:[#allocation123_spill] sm:$0xff] }
 0x3d8   : > { %v2363_v0 = vpop.xlane.xlu0 %2362  ;;  %2912 = vst.msk [vmem:[%s6040_s4 + $0xe0] sm:$0xff] %vm2883_vm4, %v2847_v22  ;;  %v2719_v6 = vmul.f32 %v6195_v57, %v2655_v51  ;;  %3339 = vrsqrt.f32 %v2535_v46  ;;  %v2473_v8 = vmul.f32 0.1, %v2360_v16  ;;  %v1968_v63 = vmul.f32 %v6386_v17, %v6234_v48  ;;  %v7421_v22 = vld [vmem:[#allocation141_spill] sm:$0xff] }
 0x3d9   : > { %v2474_v12 = vmul.f32 0.1, %v2363_v0  ;;  %v3324_v30 = vpop.eup %3323  ;;  %v2720_v29 = vmul.f32 %v6195_v57, %v2656_v25  ;;  %3341 = vrsqrt.f32 %v2536_v58  ;;  %v1785_v24 = vmul.f32 0.083333336, %v7419_v31  ;;  %v7423_v31 = vld [vmem:[#allocation48_spill] sm:$0xff] }
 0x3da   : > { %v3326_v56 = vpop.eup %3325  ;;  %v2848_v20 = vsel %vm2818_vm3, %v6004_v59, %v2719_v6  ;;  %v2657_v28 = vmul.f32 %v7418_v14, %v3324_v30  ;;  %v2537_v21 = vadd.f32 1e-05, %v2473_v8  ;;  %3343 = vrsqrt.f32 %v1847_v26 }
 0x3db   : > { %v2538_v5 = vadd.f32 1e-05, %v2474_v12  ;;  %2913 = vst.msk [vmem:[%s6040_s4 + $0xe8] sm:$0xff] %vm2883_vm4, %v2848_v20  ;;  %v2849_v48 = vsel %vm2818_vm3, %v6017_v19, %v2720_v29  ;;  %v2658_v7 = vmul.f32 %v7420_v9, %v3326_v56  ;;  %v2366_v40 = vpop.xlane.xlu1 %2365  ;;  %v6400_v46 = vpop.eup %3327  ;;  %v2032_v49 = vmul.f32 %v6195_v57, %v1968_v63  ;;  %v7422_v12 = vld [vmem:[#allocation27_spill] sm:$0xff] }
 0x3dc   : > { %v2369_v51 = vpop.xlane.xlu0 %2368  ;;  %2914 = vst.msk [vmem:[%s6040_s4 + $0xf0] sm:$0xff] %vm2883_vm4, %v2849_v48  ;;  %v2721_v59 = vmul.f32 %v6195_v57, %v2657_v28  ;;  %3345 = vrsqrt.f32 %v2537_v21  ;;  %v2475_v26 = vmul.f32 0.1, %v2366_v40  ;;  %v1786_v37 = vmul.f32 0.083333336, %v7421_v22  ;;  %v6426_v28 = vld [vmem:[%s3590_s18 + $0x188] sm:$0xff] }
 0x3dd   : > { %v2476_v58 = vmul.f32 0.1, %v2369_v51  ;;  %v3330_v34 = vpop.eup %3329  ;;  %v2722_v19 = vmul.f32 %v6195_v57, %v2658_v7  ;;  %3347 = vrsqrt.f32 %v2538_v5  ;;  %v6413_v30 = vsel %vm240_vm0, %v7422_v12, %v2031_v44  ;;  %v7424_v9 = vld [vmem:[#allocation47_spill] sm:$0xff] }
 0x3de   : > { %v3332_v25 = vpop.eup %3331  ;;  %v2850_v16 = vsel %vm2818_vm3, %v6021_v35, %v2721_v59  ;;  %v2659_v0 = vmul.f32 %v6007_v18, %v3330_v34  ;;  %v2539_v6 = vadd.f32 1e-05, %v2475_v26  ;;  %3349 = vrsqrt.f32 %v1848_v45  ;;  %v7425_v59 = vld [vmem:[#allocation90_spill] sm:$0xff] }
 0x3df   : > { %v2540_v8 = vadd.f32 1e-05, %v2476_v58  ;;  %2915 = vst.msk [vmem:[%s6040_s4 + $0xf8] sm:$0xff] %vm2883_vm4, %v2850_v16  ;;  %v2851_v63 = vsel %vm2818_vm3, %v6025_v39, %v2722_v19  ;;  %v2660_v29 = vmul.f32 %v6011_v33, %v3332_v25  ;;  %v2372_v56 = vpop.xlane.xlu1 %2371  ;;  %v6420_v35 = vpop.eup %3333  ;;  %v1969_v39 = vmul.f32 %v6426_v28, %v6276_v43 }
 0x3e0   : > { %v2375_v20 = vpop.xlane.xlu0 %2374  ;;  %2916 = vst.msk [vmem:[%s6040_s4 + $0x100] sm:$0xff] %vm2883_vm4, %v2851_v63  ;;  %v2723_v18 = vmul.f32 %v6195_v57, %v2659_v0  ;;  %3351 = vrsqrt.f32 %v2539_v6  ;;  %v2477_v44 = vmul.f32 0.1, %v2372_v56  ;;  %v1849_v33 = vadd.f32 1e-05, %v1785_v24  ;;  %v7426_v24 = vld [vmem:[#allocation49_spill] sm:$0xff] }
 0x3e1   : > { %v2478_v14 = vmul.f32 0.1, %v2375_v20  ;;  %v3336_v45 = vpop.eup %3335  ;;  %v2724_v21 = vmul.f32 %v6195_v57, %v2660_v29  ;;  %3353 = vrsqrt.f32 %v2540_v8  ;;  %v6436_v26 = vsel %vm240_vm0, %v7425_v59, %v2032_v49  ;;  %v6448_v6 = vld [vmem:[%s3590_s18 + $0x190] sm:$0xff]  ;;  %v7427_v63 = vld [vmem:[#allocation50_spill] sm:$0xff]  ;;  %v7428_v56 = vld [vmem:[#allocation127_spill] sm:$0xff] }
 0x3e2   : > { %v3338_v5 = vpop.eup %3337  ;;  %v2852_v48 = vsel %vm2818_vm3, %v7423_v31, %v2723_v18  ;;  %v2661_v7 = vmul.f32 %v7424_v9, %v3336_v45  ;;  %v2541_v40 = vadd.f32 1e-05, %v2477_v44  ;;  %v1850_v58 = vadd.f32 1e-05, %v1786_v37  ;;  %v7431_v59 = vld [vmem:[#allocation145_spill] sm:$0xff] }
 0x3e3   : > { %v2542_v51 = vadd.f32 1e-05, %v2478_v14  ;;  %2917 = vst.msk [vmem:[%s6040_s4 + $0x108] sm:$0xff] %vm2883_vm4, %v2852_v48  ;;  %v2853_v43 = vsel %vm2818_vm3, %v6065_v60, %v2724_v21  ;;  %v2662_v34 = vmul.f32 %v7426_v24, %v3338_v5  ;;  %v2378_v22 = vpop.xlane.xlu1 %2377  ;;  %v2033_v37 = vmul.f32 %v6195_v57, %v1969_v39  ;;  %v7429_v14 = vld [vmem:[#allocation142_spill] sm:$0xff]  ;;  %v7430_v39 = vld [vmem:[#allocation51_spill] sm:$0xff] }
 0x3e4   : > { %v2381_v19 = vpop.xlane.xlu0 %2380  ;;  %2918 = vst.msk [vmem:[%s6040_s4 + $0x110] sm:$0xff] %vm2883_vm4, %v2853_v43  ;;  %v2725_v25 = vmul.f32 %v6195_v57, %v2661_v7  ;;  %3355 = vrsqrt.f32 %v2541_v40  ;;  %v2479_v16 = vmul.f32 0.1, %v2378_v22  ;;  %v1970_v60 = vmul.f32 %v6448_v6, %v6296_v62 }
 0x3e5   : > { %v2480_v0 = vmul.f32 0.1, %v2381_v19  ;;  %v3340_v49 = vpop.eup %3339  ;;  %v2726_v8 = vmul.f32 %v6195_v57, %v2662_v34  ;;  %3357 = vrsqrt.f32 %v2542_v51  ;;  %v1787_v45 = vmul.f32 0.083333336, %v7429_v14 }
 0x3e6   : > { %v3342_v12 = vpop.eup %3341  ;;  %v2854_v29 = vsel %vm2818_vm3, %v7427_v63, %v2725_v25  ;;  %v2663_v20 = vmul.f32 %v7428_v56, %v3340_v49  ;;  %v2543_v18 = vadd.f32 1e-05, %v2479_v16  ;;  %3359 = vrsqrt.f32 %v1849_v33  ;;  %v7432_v16 = vld [vmem:[#allocation91_spill] sm:$0xff] }
 0x3e7   : > { %v2544_v44 = vadd.f32 1e-05, %v2480_v0  ;;  %2919 = vst.msk [vmem:[%s6040_s4 + $0x118] sm:$0xff] %vm2883_vm4, %v2854_v29  ;;  %v2855_v62 = vsel %vm2818_vm3, %v6091_v52, %v2726_v8  ;;  %v2664_v21 = vmul.f32 %v7430_v39, %v3342_v12  ;;  %v2384_v5 = vpop.xlane.xlu1 %2383  ;;  %v6462_v48 = vpop.eup %3343  ;;  %v2034_v51 = vmul.f32 %v6195_v57, %v1970_v60  ;;  %v6488_v29 = vld [vmem:[%s3590_s18 + $0x198] sm:$0xff]  ;;  %v7433_v39 = vld [vmem:[#allocation92_spill] sm:$0xff] }
 0x3e8   : > { %v2387_v31 = vpop.xlane.xlu0 %2386  ;;  %2920 = vst.msk [vmem:[%s6040_s4 + $0x120] sm:$0xff] %vm2883_vm4, %v2855_v62  ;;  %v2727_v9 = vmul.f32 %v6195_v57, %v2663_v20  ;;  %3361 = vrsqrt.f32 %v2543_v18  ;;  %v2481_v33 = vmul.f32 0.1, %v2384_v5  ;;  %v1788_v43 = vmul.f32 0.083333336, %v7431_v59 }
 0x3e9   : > { %v2482_v7 = vmul.f32 0.1, %v2387_v31  ;;  %v3346_v40 = vpop.eup %3345  ;;  %v2728_v52 = vmul.f32 %v6195_v57, %v2664_v21  ;;  %3363 = vrsqrt.f32 %v2544_v44  ;;  %v6475_v0 = vsel %vm240_vm0, %v7432_v16, %v2033_v37 }
 0x3ea   : > { %v3348_v24 = vpop.eup %3347  ;;  %v2856_v34 = vsel %vm2818_vm3, %v6100_v27, %v2727_v9  ;;  %v2665_v22 = vmul.f32 %v6110_v54, %v3346_v40  ;;  %v2545_v19 = vadd.f32 1e-05, %v2481_v33  ;;  %3365 = vrsqrt.f32 %v1850_v58 }
 0x3eb   : > { %v2546_v25 = vadd.f32 1e-05, %v2482_v7  ;;  %2921 = vst.msk [vmem:[%s6040_s4 + $0x128] sm:$0xff] %vm2883_vm4, %v2856_v34  ;;  %v2857_v49 = vsel %vm2818_vm3, %v6119_v1, %v2728_v52  ;;  %v2666_v60 = vmul.f32 %v6133_v4, %v3348_v24  ;;  %v2390_v8 = vpop.xlane.xlu1 %2389  ;;  %v6482_v27 = vpop.eup %3349  ;;  %v1971_v1 = vmul.f32 %v6488_v29, %v6338_v50 }
 0x3ec   : > { %v2393_v12 = vpop.xlane.xlu0 %2392  ;;  %2922 = vst.msk [vmem:[%s6040_s4 + $0x130] sm:$0xff] %vm2883_vm4, %v2857_v49  ;;  %v2729_v54 = vmul.f32 %v6195_v57, %v2665_v22  ;;  %3367 = vrsqrt.f32 %v2545_v19  ;;  %v2483_v37 = vmul.f32 0.1, %v2390_v8  ;;  %v1851_v4 = vadd.f32 1e-05, %v1787_v45  ;;  %v7434_v22 = vld [vmem:[#allocation146_spill] sm:$0xff] }
 0x3ed   : > { %v2484_v63 = vmul.f32 0.1, %v2393_v12  ;;  %v3352_v58 = vpop.eup %3351  ;;  %v2730_v56 = vmul.f32 %v6195_v57, %v2666_v60  ;;  %3369 = vrsqrt.f32 %v2546_v25  ;;  %v6498_v21 = vsel %vm240_vm0, %v7433_v39, %v2034_v51  ;;  %v6510_v51 = vld [vmem:[%s3590_s18 + $0x1a0] sm:$0xff] }
 0x3ee   : > { %v3354_v20 = vpop.eup %3353  ;;  %v2858_v18 = vsel %vm2818_vm3, %v6160_v38, %v2729_v54  ;;  %v2667_v44 = vmul.f32 %v6173_v32, %v3352_v58  ;;  %v2547_v14 = vadd.f32 1e-05, %v2483_v37  ;;  %v1852_v5 = vadd.f32 1e-05, %v1788_v43  ;;  %v7435_v37 = vld [vmem:[#allocation149_spill] sm:$0xff] }
 0x3ef   : > { %v2548_v62 = vadd.f32 1e-05, %v2484_v63  ;;  %2923 = vst.msk [vmem:[%s6040_s4 + $0x138] sm:$0xff] %vm2883_vm4, %v2858_v18  ;;  %v2859_v50 = vsel %vm2818_vm3, %v6183_v61, %v2730_v56  ;;  %v2668_v45 = vmul.f32 %v6200_v15, %v3354_v20  ;;  %v2396_v31 = vpop.xlane.xlu1 %2395  ;;  %v2035_v40 = vmul.f32 %v6195_v57, %v1971_v1 }
 0x3f0   : > { %v2399_v9 = vpop.xlane.xlu0 %2398  ;;  %2924 = vst.msk [vmem:[%s6040_s4 + $0x140] sm:$0xff] %vm2883_vm4, %v2859_v50  ;;  %v2731_v38 = vmul.f32 %v6195_v57, %v2667_v44  ;;  %3371 = vrsqrt.f32 %v2547_v14  ;;  %v2485_v32 = vmul.f32 0.1, %v2396_v31  ;;  %v1972_v61 = vmul.f32 %v6510_v51, %v6358_v2 }
 0x3f1   : > { %v2486_v33 = vmul.f32 0.1, %v2399_v9  ;;  %v3356_v7 = vpop.eup %3355  ;;  %v2732_v15 = vmul.f32 %v6195_v57, %v2668_v45  ;;  %3373 = vrsqrt.f32 %v2548_v62  ;;  %v1789_v19 = vmul.f32 0.083333336, %v7434_v22  ;;  %v7436_v45 = vld [vmem:[#allocation28_spill] sm:$0xff]  ;;  %v3531_v22 = vld [vmem:[%s3590_s18 + $0x1a8] sm:$0xff] }
 0x3f2   : > { %v3358_v59 = vpop.eup %3357  ;;  %v2860_v43 = vsel %vm2818_vm3, %v6227_v10, %v2731_v38  ;;  %v2669_v52 = vmul.f32 %v6240_v47, %v3356_v7  ;;  %v2549_v24 = vadd.f32 1e-05, %v2485_v32  ;;  %3375 = vrsqrt.f32 %v1851_v4 }
 0x3f3   : > { %v2550_v34 = vadd.f32 1e-05, %v2486_v33  ;;  %2925 = vst.msk [vmem:[%s6040_s4 + $0x148] sm:$0xff] %vm2883_vm4, %v2860_v43  ;;  %v2861_v2 = vsel %vm2818_vm3, %v6250_v13, %v2732_v15  ;;  %v2670_v25 = vmul.f32 %v6262_v41, %v3358_v59  ;;  %v2402_v16 = vpop.xlane.xlu1 %2401  ;;  %v6524_v60 = vpop.eup %3359  ;;  %v6530_v54 = vmul.f32 %v6195_v57, %v1972_v61  ;;  %v7437_v61 = vld [vmem:[#allocation150_spill] sm:$0xff] }
 0x3f4   : > { %v2405_v49 = vpop.xlane.xlu0 %2404  ;;  %2926 = vst.msk [vmem:[%s6040_s4 + $0x150] sm:$0xff] %vm2883_vm4, %v2861_v2  ;;  %v2733_v10 = vmul.f32 %v6195_v57, %v2669_v52  ;;  %3377 = vrsqrt.f32 %v2549_v24  ;;  %v2487_v47 = vmul.f32 0.1, %v2402_v16  ;;  %v1790_v13 = vmul.f32 0.083333336, %v7435_v37  ;;  %v3532_v2 = vld [vmem:[%s3590_s18 + $0x1b0] sm:$0xff] }
 0x3f5   : > { %v2488_v8 = vmul.f32 0.1, %v2405_v49  ;;  %v3362_v12 = vpop.eup %3361  ;;  %v2734_v41 = vmul.f32 %v6195_v57, %v2670_v25  ;;  %3379 = vrsqrt.f32 %v2550_v34  ;;  %v1853_v20 = vadd.f32 1e-05, %v1789_v19 }
 0x3f6   : > { %v3364_v63 = vpop.eup %3363  ;;  %v2862_v58 = vsel %vm2818_vm3, %v6289_v53, %v2733_v10  ;;  %v2671_v1 = vmul.f32 %v6302_v55, %v3362_v12  ;;  %v2551_v4 = vadd.f32 1e-05, %v2487_v47  ;;  %3381 = vrsqrt.f32 %v1852_v5 }
 0x3f7   : > { %v2552_v56 = vadd.f32 1e-05, %v2488_v8  ;;  %2927 = vst.msk [vmem:[%s6040_s4 + $0x158] sm:$0xff] %vm2883_vm4, %v2862_v58  ;;  %v2863_v18 = vsel %vm2818_vm3, %v6312_v3, %v2734_v41  ;;  %v2672_v44 = vmul.f32 %v6324_v11, %v3364_v63  ;;  %v2408_v14 = vpop.xlane.xlu1 %2407  ;;  %v6542_v39 = vpop.eup %3365  ;;  %v6549_v31 = vsel %vm240_vm0, %v7436_v45, %v2035_v40  ;;  %v7438_v58 = vld [vmem:[#allocation29_spill] sm:$0xff] }
 0x3f8   : > { %v2411_v62 = vpop.xlane.xlu0 %2410  ;;  %2928 = vst.msk [vmem:[%s6040_s4 + $0x160] sm:$0xff] %vm2883_vm4, %v2863_v18  ;;  %v2735_v53 = vmul.f32 %v6195_v57, %v2671_v1  ;;  %3383 = vrsqrt.f32 %v2551_v4  ;;  %v2489_v55 = vmul.f32 0.1, %v2408_v14  ;;  %v1854_v3 = vadd.f32 1e-05, %v1790_v13 }
 0x3f9   : > { %v2490_v5 = vmul.f32 0.1, %v2411_v62  ;;  %v3368_v50 = vpop.eup %3367  ;;  %v2736_v11 = vmul.f32 %v6195_v57, %v2672_v44  ;;  %3385 = vrsqrt.f32 %v2552_v56  ;;  %v1791_v15 = vmul.f32 0.083333336, %v7437_v61 }
 0x3fa   : > { %v3370_v9 = vpop.eup %3369  ;;  %v2864_v38 = vsel %vm2818_vm3, %v6351_v36, %v2735_v53  ;;  %v2673_v32 = vmul.f32 %v6364_v23, %v3368_v50  ;;  %v2553_v33 = vadd.f32 1e-05, %v2489_v55  ;;  %3387 = vrsqrt.f32 %v1853_v20 }
 0x3fb   : > { %v2554_v7 = vadd.f32 1e-05, %v2490_v5  ;;  %2929 = vst.msk [vmem:[%s6040_s4 + $0x168] sm:$0xff] %vm2883_vm4, %v2864_v38  ;;  %v2865_v40 = vsel %vm2818_vm3, %v6374_v42, %v2736_v11  ;;  %v2674_v59 = vmul.f32 %v6386_v17, %v3370_v9  ;;  %v2414_v43 = vpop.xlane.xlu1 %2413  ;;  %v1973_v19 = vmul.f32 %v3531_v22, %v6400_v46  ;;  %v3534_v9 = vld [vmem:[%s3590_s18 + $0x1c0] sm:$0xff] }
 0x3fc   : > { %v2417_v52 = vpop.xlane.xlu0 %2416  ;;  %2930 = vst.msk [vmem:[%s6040_s4 + $0x170] sm:$0xff] %vm2883_vm4, %v2865_v40  ;;  %v2737_v36 = vmul.f32 %v6195_v57, %v2673_v32  ;;  %3389 = vrsqrt.f32 %v2553_v33  ;;  %v2491_v23 = vmul.f32 0.1, %v2414_v43  ;;  %v1974_v25 = vmul.f32 %v3532_v2, %v6420_v35 }
 0x3fd   : > { %v2492_v24 = vmul.f32 0.1, %v2417_v52  ;;  %v3372_v34 = vpop.eup %3371  ;;  %v2738_v42 = vmul.f32 %v6195_v57, %v2674_v59  ;;  %3391 = vrsqrt.f32 %v2554_v7  ;;  %v1855_v8 = vadd.f32 1e-05, %v1791_v15  ;;  %v7439_v15 = vld [vmem:[#allocation93_spill] sm:$0xff] }
 0x3fe   : > { %v3374_v17 = vpop.eup %3373  ;;  %v2866_v16 = vsel %vm2818_vm3, %v6413_v30, %v2737_v36  ;;  %v2675_v49 = vmul.f32 %v6426_v28, %v3372_v34  ;;  %v2555_v10 = vadd.f32 1e-05, %v2491_v23  ;;  %3393 = vrsqrt.f32 %v1854_v3  ;;  %v3533_v3 = vld [vmem:[%s3590_s18 + $0x1b8] sm:$0xff]  ;;  %v3535_v23 = vld [vmem:[%s3590_s18 + $0x1c8] sm:$0xff] }
 0x3ff   : > { %v2556_v47 = vadd.f32 1e-05, %v2492_v24  ;;  %2931 = vst.msk [vmem:[%s6040_s4 + $0x178] sm:$0xff] %vm2883_vm4, %v2866_v16  ;;  %v2867_v46 = vsel %vm2818_vm3, %v6436_v26, %v2738_v42  ;;  %v2676_v35 = vmul.f32 %v6448_v6, %v3374_v17  ;;  %v2420_v12 = vpop.xlane.xlu1 %2419  ;;  %v6577_v13 = vpop.eup %3375  ;;  %v2806_v1 = vsel %vm240_vm0, %v7438_v58, %v6530_v54 }
 0x400   : > { %v2423_v37 = vpop.xlane.xlu0 %2422  ;;  %2932 = vst.msk [vmem:[%s6040_s4 + $0x180] sm:$0xff] %vm2883_vm4, %v2867_v46  ;;  %v2739_v30 = vmul.f32 %v6195_v57, %v2675_v49  ;;  %3395 = vrsqrt.f32 %v2555_v10  ;;  %v2493_v28 = vmul.f32 0.1, %v2420_v12  ;;  %v2037_v26 = vmul.f32 %v6195_v57, %v1973_v19  ;;  %v7442_v46 = vld [vmem:[#allocation12_spill] sm:$0xff] }
 0x401   : > { %v2494_v41 = vmul.f32 0.1, %v2423_v37  ;;  %v3378_v63 = vpop.eup %3377  ;;  %v2740_v6 = vmul.f32 %v6195_v57, %v2676_v35  ;;  %3397 = vrsqrt.f32 %v2556_v47  ;;  %v2038_v14 = vmul.f32 %v6195_v57, %v1974_v25  ;;  %v3536_v25 = vld [vmem:[%s3590_s18 + $0x1d0] sm:$0xff]  ;;  %v6629_v47 = vld [vmem:[%s6712_s2] ss:$0 sm:$0xff]  ;;  %v7443_v35 = vld [vmem:[#allocation33_spill] sm:$0xff] }
 0x402   : > { %v3380_v4 = vpop.eup %3379  ;;  %v2868_v56 = vsel %vm2818_vm3, %v6475_v0, %v2739_v30  ;;  %v2677_v20 = vmul.f32 %v6488_v29, %v3378_v63  ;;  %v2557_v18 = vadd.f32 1e-05, %v2493_v28  ;;  %3399 = vrsqrt.f32 %v1855_v8  ;;  %v7441_v8 = vld [vmem:[#allocation31_spill] sm:$0xff] }
 0x403   : > { %v2558_v44 = vadd.f32 1e-05, %v2494_v41  ;;  %2933 = vst.msk [vmem:[%s6040_s4 + $0x188] sm:$0xff] %vm2883_vm4, %v2868_v56  ;;  %v2869_v54 = vsel %vm2818_vm3, %v6498_v21, %v2740_v6  ;;  %v2678_v62 = vmul.f32 %v6510_v51, %v3380_v4  ;;  %v2426_v53 = vpop.xlane.xlu1 %2425  ;;  %v6596_v5 = vpop.eup %3381  ;;  %v1975_v11 = vmul.f32 %v3533_v3, %v6462_v48  ;;  %v7440_v48 = vld [vmem:[#allocation94_spill] sm:$0xff]  ;;  %v7444_v41 = vld [vmem:[#allocation32_spill] sm:$0xff] }
 0x404   : > { %v2429_v55 = vpop.xlane.xlu0 %2428  ;;  %2934 = vst.msk [vmem:[%s6040_s4 + $0x190] sm:$0xff] %vm2883_vm4, %v2869_v54  ;;  %v2741_v0 = vmul.f32 %v6195_v57, %v2677_v20  ;;  %3401 = vrsqrt.f32 %v2557_v18  ;;  %v2495_v29 = vmul.f32 0.1, %v2426_v53  ;;  %v1976_v21 = vmul.f32 %v3534_v9, %v6482_v27  ;;  %v7445_v6 = vld [vmem:[#allocation30_spill] sm:$0xff]  ;;  %v3538_v20 = vld [vmem:[%s3590_s18 + $0x1d8] sm:$0xff]  ;;  %v7446_v54 = vld [vmem:[#allocation95_spill] sm:$0xff] }
 0x405   : > { %v2496_v50 = vmul.f32 0.1, %v2429_v55  ;;  %v3384_v45 = vpop.eup %3383  ;;  %v2742_v51 = vmul.f32 %v6195_v57, %v2678_v62  ;;  %3403 = vrsqrt.f32 %v2558_v44  ;;  %v2807_v40 = vsel %vm240_vm0, %v7439_v15, %v2037_v26  ;;  %v3539_v53 = vld [vmem:[%s3590_s18 + $0x1e0] sm:$0xff] }
 0x406   : > { %v3386_v38 = vpop.eup %3385  ;;  %v2870_v32 = vsel %vm2818_vm3, %v6549_v31, %v2741_v0  ;;  %v2679_v33 = vmul.f32 %v3531_v22, %v3384_v45  ;;  %v2559_v7 = vadd.f32 1e-05, %v2495_v29  ;;  %v2808_v59 = vsel %vm240_vm0, %v7440_v48, %v2038_v14  ;;  %v7447_v45 = vld [vmem:[#allocation13_spill] sm:$0xff] }
 0x407   : > { %v2560_v61 = vadd.f32 1e-05, %v2496_v50  ;;  %2935 = vst.msk [vmem:[%s6040_s4 + $0x198] sm:$0xff] %vm2883_vm4, %v2870_v32  ;;  %v2871_v27 = vsel %vm2818_vm3, %v2806_v1, %v2742_v51  ;;  %v2680_v43 = vmul.f32 %v3532_v2, %v3386_v38  ;;  %v2432_v52 = vpop.xlane.xlu1 %2431  ;;  %v3388_v36 = vpop.eup %3387  ;;  %v1977_v31 = vmul.f32 %v3535_v23, %v6524_v60  ;;  %v7449_v38 = vld [vmem:[#allocation14_spill] sm:$0xff] }
 0x408   : > { %2936 = vst.msk [vmem:[%s6040_s4 + $0x1a0] sm:$0xff] %vm2883_vm4, %v2871_v27  ;;  %v2743_v24 = vmul.f32 %v6195_v57, %v2679_v33  ;;  %3405 = vrsqrt.f32 %v2559_v7  ;;  %v2497_v34 = vmul.f32 0.1, %v2432_v52  ;;  %v2039_v19 = vmul.f32 %v6195_v57, %v1975_v11  ;;  %v7451_v33 = vld [vmem:[#allocation96_spill] sm:$0xff] }
 0x409   : > { %v3390_v22 = vpop.eup %3389  ;;  %v1978_v42 = vmul.f32 %v3536_v25, %v6542_v39  ;;  %v2744_v2 = vmul.f32 %v6195_v57, %v2680_v43  ;;  %3407 = vrsqrt.f32 %v2560_v61  ;;  %v2040_v60 = vmul.f32 %v6195_v57, %v1976_v21 }
 0x40a   : > { %v3392_v17 = vpop.eup %3391  ;;  %v2872_v16 = vsel %vm2818_vm3, %v2807_v40, %v2743_v24  ;;  %v2681_v49 = vmul.f32 %v3533_v3, %v3390_v22  ;;  %v2561_v10 = vadd.f32 1e-05, %v2497_v34  ;;  %v1208_v39 = vadd.f32 %v6629_v47, %v7441_v8  ;;  %v7448_v3 = vld [vmem:[#allocation34_spill] sm:$0xff] }
 0x40b   : > { %v1070_v12 = vmul.f32 %v7443_v35, %v7442_v46  ;;  %2937 = vst.msk [vmem:[%s6040_s4 + $0x1a8] sm:$0xff] %vm2883_vm4, %v2872_v16  ;;  %v2873_v37 = vsel %vm2818_vm3, %v2808_v59, %v2744_v2  ;;  %v2682_v30 = vmul.f32 %v3534_v9, %v3392_v17  ;;  %v3394_v28 = vpop.eup %3393  ;;  %v1139_v63 = vmul.f32 %v6195_v57, %v7444_v41  ;;  %v3541_v59 = vld [vmem:[%s3590_s18 + $0x1e8] sm:$0xff]  ;;  %v3543_v46 = vld [vmem:[%s3590_s18 + $0x1f8] sm:$0xff] }
 0x40c   : > { %v2041_v58 = vmul.f32 %v6195_v57, %v1977_v31  ;;  %2938 = vst.msk [vmem:[%s6040_s4 + $0x1b0] sm:$0xff] %vm2883_vm4, %v2873_v37  ;;  %v2745_v1 = vmul.f32 %v6195_v57, %v2681_v49  ;;  %3409 = vrsqrt.f32 %v2561_v10  ;;  %v2809_v4 = vsel %vm240_vm0, %v7445_v6, %v2039_v19  ;;  %v3542_v31 = vld [vmem:[%s3590_s18 + $0x1f0] sm:$0xff] }
 0x40d   : > { %v3396_v26 = vpop.eup %3395  ;;  %v2042_v56 = vmul.f32 %v6195_v57, %v1978_v42  ;;  %v1979_v18 = vmul.f32 %v3538_v20, %v6577_v13  ;;  %v2746_v44 = vmul.f32 %v6195_v57, %v2682_v30  ;;  %v2810_v62 = vsel %vm240_vm0, %v7446_v54, %v2040_v60  ;;  %v7453_v42 = vld [vmem:[#allocation35_spill] sm:$0xff] }
 0x40e   : > { %v3398_v14 = vpop.eup %3397  ;;  %v1980_v55 = vmul.f32 %v3539_v53, %v6596_v5  ;;  %v2874_v0 = vsel %vm2818_vm3, %v2809_v4, %v2745_v1  ;;  %v2683_v29 = vmul.f32 %v3535_v23, %v3396_v26  ;;  %v1140_v50 = vmul.f32 %v6195_v57, %v1070_v12  ;;  %v7450_v5 = vld [vmem:[#allocation97_spill] sm:$0xff]  ;;  %v3540_v57 = vld [vmem:[%s6711_s1] ss:$0 sm:$0xff] }
 0x40f   : > { %v1071_v11 = vmul.f32 %v7448_v3, %v7447_v45  ;;  %2939 = vst.msk [vmem:[%s6040_s4 + $0x1b8] sm:$0xff] %vm2883_vm4, %v2874_v0  ;;  %v2875_v13 = vsel %vm2818_vm3, %v2810_v62, %v2746_v44  ;;  %v2684_v9 = vmul.f32 %v3536_v25, %v3398_v14  ;;  %v3400_v21 = vpop.eup %3399  ;;  %v1209_v51 = vadd.f32 %v6629_v47, %v1139_v63  ;;  %v7452_v25 = vld [vmem:[#allocation65_spill] sm:$0xff] }
 0x410   : > { %v1072_v32 = vmul.f32 %v7450_v5, %v7449_v38  ;;  %v2811_v7 = vsel %vm240_vm0, %v7451_v33, %v2041_v58  ;;  %2940 = vst.msk [vmem:[%s6040_s4 + $0x1c0] sm:$0xff] %vm2883_vm4, %v2875_v13  ;;  %v2747_v61 = vmul.f32 %v3540_v57, %v2683_v29  ;;  %v2812_v40 = vsel %vm240_vm0, %v1208_v39, %v2042_v56 }
 0x411   : > { %v3402_v15 = vpop.eup %3401  ;;  %v2043_v48 = vmul.f32 %v3540_v57, %v1979_v18  ;;  %v1981_v27 = vmul.f32 %v3541_v59, %v3388_v36  ;;  %v2748_v43 = vmul.f32 %v3540_v57, %v2684_v9  ;;  %v2044_v23 = vmul.f32 %v3540_v57, %v1980_v55 }
 0x412   : > { %v3404_v52 = vpop.eup %3403  ;;  %v1982_v24 = vmul.f32 %v3542_v31, %v3394_v28  ;;  %v2876_v34 = vsel %vm2818_vm3, %v2811_v7, %v2747_v61  ;;  %v2685_v22 = vmul.f32 %v3538_v20, %v3402_v15  ;;  %v1141_v19 = vmul.f32 %v3540_v57, %v1071_v11 }
 0x413   : > { %v1073_v2 = vmul.f32 %v7453_v42, %v7452_v25  ;;  %2941 = vst.msk [vmem:[%s6040_s4 + $0x1c8] sm:$0xff] %vm2883_vm4, %v2876_v34  ;;  %v2877_v17 = vsel %vm2818_vm3, %v2812_v40, %v2748_v43  ;;  %v2686_v60 = vmul.f32 %v3539_v53, %v3404_v52  ;;  %v1210_v36 = vadd.f32 %v6629_v47, %v1140_v50 }
 0x414   : > { %v1142_v16 = vmul.f32 %v3540_v57, %v1072_v32  ;;  %2942 = vst.msk [vmem:[%s6040_s4 + $0x1d0] sm:$0xff] %vm2883_vm4, %v2877_v17  ;;  %v2749_v49 = vmul.f32 %v3540_v57, %v2685_v22  ;;  %v2813_v8 = vsel %vm240_vm0, %v1209_v51, %v2043_v48  ;;  %v2045_v39 = vmul.f32 %v3540_v57, %v1981_v27 }
 0x415   : > { %v3406_v10 = vpop.eup %3405  ;;  %v1983_v35 = vmul.f32 %v3543_v46, %v3400_v21  ;;  %v2750_v12 = vmul.f32 %v3540_v57, %v2686_v60  ;;  %v2814_v30 = vsel %vm240_vm0, %v1210_v36, %v2044_v23  ;;  %v2046_v28 = vmul.f32 %v3540_v57, %v1982_v24 }
 0x416   : > { %v3408_v37 = vpop.eup %3407  ;;  %v2878_v41 = vsel %vm2818_vm3, %v2813_v8, %v2749_v49  ;;  %v2687_v63 = vmul.f32 %v3541_v59, %v3406_v10  ;;  %v1211_v58 = vadd.f32 %v6629_v47, %v1141_v19  ;;  %v1143_v1 = vmul.f32 %v3540_v57, %v1073_v2 }
 0x417   : > { %2943 = vst.msk [vmem:[%s6040_s4 + $0x1d8] sm:$0xff] %vm2883_vm4, %v2878_v41  ;;  %v2879_v26 = vsel %vm2818_vm3, %v2814_v30, %v2750_v12  ;;  %v2688_v6 = vmul.f32 %v3542_v31, %v3408_v37  ;;  %v1212_v4 = vadd.f32 %v6629_v47, %v1142_v16  ;;  %v2047_v44 = vmul.f32 %v3540_v57, %v1983_v35 }
 0x418   : > { %2944 = vst.msk [vmem:[%s6040_s4 + $0x1e0] sm:$0xff] %vm2883_vm4, %v2879_v26  ;;  %v2751_v56 = vmul.f32 %v3540_v57, %v2687_v63  ;;  %v2815_v18 = vsel %vm240_vm0, %v1211_v58, %v2045_v39  ;;  %v1213_v55 = vadd.f32 %v6629_v47, %v1143_v1 }
 0x419   : > { %v3410_v20 = vpop.eup %3409  ;;  %v2752_v14 = vmul.f32 %v3540_v57, %v2688_v6  ;;  %v2816_v54 = vsel %vm240_vm0, %v1212_v4, %v2046_v28 }
 0x41a   : > { %v2880_v62 = vsel %vm2818_vm3, %v2815_v18, %v2751_v56  ;;  %v2689_v53 = vmul.f32 %v3543_v46, %v3410_v20  ;;  %v2817_v50 = vsel %vm240_vm0, %v1213_v55, %v2047_v44 }
 0x41b   : > { %2945 = vst.msk [vmem:[%s6040_s4 + $0x1e8] sm:$0xff] %vm2883_vm4, %v2880_v62  ;;  %v2881_v0 = vsel %vm2818_vm3, %v2816_v54, %v2752_v14 }
 0x41c   : > { %2946 = vst.msk [vmem:[%s6040_s4 + $0x1f0] sm:$0xff] %vm2883_vm4, %v2881_v0  ;;  %v2753_v29 = vmul.f32 %v3540_v57, %v2689_v53 }
 0x41e   : > { %v2882_v45 = vsel %vm2818_vm3, %v2817_v50, %v2753_v29 }
 0x41f   : > { %2947 = vst.msk [vmem:[%s6040_s4 + $0x1f8] sm:$0xff] %vm2883_vm4, %v2882_v45 }
 0x420 PF: > { %s13_s12 = sadd.s32 1, %s3550_s12  }
 0x421   : > { %p10_p4 = scmp.ge.s32.totalorder %s13_s12, 4  }
 0x423   :  { %12 = sbr.rel (!%p10_p4) target bundleno = 1 (0x1), region = 62 }

</bundles_post_ra>
